<compile_context>
chip_gen: v5e
topology: v5e:2x2
jax: 0.10.0
libtpu: 0.0.40
codegen_flags: <defaults>
</compile_context>

<pallas_src>
import functools
import math

import jax
import jax.numpy as jnp
from jax.experimental import pallas as pl
from jax.experimental.pallas import tpu as pltpu


def _round_up(a, b):
    return ((a + b - 1) // b) * b


# ----------------------------------------------------------------------------
# Fused kernel: whole Conv1d+ReLU stack for one (batch, L-tile) grid cell.
# ----------------------------------------------------------------------------
def fused_stack_kernel(*refs, specs, L, T):
    """refs = (x_left, x_mid, x_right, w0, b0, w1, b1, ..., o_ref).

    specs : tuple of (c_in, c_out, K) per layer (static)
    L     : true (unpadded) sequence length (static)
    T     : L tile size, multiple of 128 (static)
    """
    n_layers = len(specs)
    x_lo, x_mid, x_hi = refs[0], refs[1], refs[2]
    wb = refs[3:3 + 2 * n_layers]
    o_ref = refs[3 + 2 * n_layers]

    pads = [(k - 1) // 2 for (_, _, k) in specs]
    # Suffix pad sums: S[j] = halo still needed at the input of layer j.
    S = [0] * (n_layers + 1)
    for j in range(n_layers - 1, -1, -1):
        S[j] = S[j + 1] + pads[j]
    P = S[0]                      # total halo on each side of the tile

    l = pl.program_id(1)
    base = l * T                  # original position of this output tile's start

    # Assemble the halo'd input window (C_in0, T + 2P) from 3 adjacent tiles.
    left = x_lo[0][:, T - P:]     # last P samples of the left neighbor tile
    mid = x_mid[0]                # the tile itself
    right = x_hi[0][:, :P]        # first P samples of the right neighbor tile
    a = jnp.concatenate([left, mid, right], axis=-1).astype(jnp.float32)

    TAP_CHUNK = 8                 # taps folded per MXU dot (contraction <= 8*C_in)

    for j, (c_in, c_out, K) in enumerate(specs):
        Wj = T + 2 * S[j]         # this layer's input window length
        Wn = T + 2 * S[j + 1]     # this layer's output window length

        # Reproduce per-layer zero padding: positions outside [0, L) are zero.
        pos = jax.lax.broadcasted_iota(jnp.int32, (1, Wj), 1) + (base - S[j])
        a = jnp.where((pos >= 0) & (pos < L), a, 0.0)

        wmat = wb[2 * j][...]       # (c_out, K * c_in), tap-major columns
        bias = wb[2 * j + 1][...]   # (c_out, 1)

        acc = jnp.zeros((c_out, Wn), jnp.float32)
        for k0 in range(0, K, TAP_CHUNK):
            kc = min(TAP_CHUNK, K - k0)
            # im2col chunk: stack kc shifted windows along the contraction axis.
            cols = jnp.concatenate(
                [a[:, k0 + kk: k0 + kk + Wn] for kk in range(kc)], axis=0)
            acc = acc + jnp.dot(
                wmat[:, k0 * c_in:(k0 + kc) * c_in], cols,
                preferred_element_type=jnp.float32)

        a = jnp.maximum(acc + bias, 0.0)   # bias + ReLU (lane-dense, f32)

    o_ref[0] = a.astype(o_ref.dtype)       # (C_out_last, T) lane-dense store


# ----------------------------------------------------------------------------
# Wrapper: single fused pallas_call for the whole module forward.
# ----------------------------------------------------------------------------
def watermark_extracter_wav_forward(x, params, l_tile=512):
    """x: (N, C_in, L) float32 (PyTorch NCL layout). Returns (N, latent_dim, L)."""
    N, C_in0, L = x.shape

    specs, flat_ws, flat_bs = [], [], []
    for (w, b) in params:
        c_out, c_in, k = w.shape
        specs.append((c_in, c_out, k))
        # (C_out, C_in, K) -> (C_out, K*C_in), tap-major columns (matches im2col).
        flat_ws.append(jnp.transpose(w, (0, 2, 1)).reshape(c_out, k * c_in))
        flat_bs.append(b.reshape(c_out, 1))

    pads = [(k - 1) // 2 for (_, _, k) in specs]
    P = sum(pads)                               # total fused halo per side

    # Tile size: multiple of 128 (lane-dense), at least the halo, not absurdly
    # larger than L.  VMEM use per step is only a few MiB -> safe on v5e/v6e/v7x.
    T = max(l_tile, _round_up(P, 128))
    T = min(T, _round_up(L, 128))
    T = max(T, _round_up(P, 128))
    T = _round_up(T, 128)

    L_p = _round_up(L, T)
    num_l = L_p // T

    # Single pad: one zero tile on each side (halo frame) + round L up to L_p.
    x_work = jnp.pad(x, ((0, 0), (0, 0), (T, T + (L_p - L))))

    C_out_last = specs[-1][1]

    in_specs = [
        pl.BlockSpec((1, C_in0, T), lambda n, l: (n, 0, l)),       # left tile
        pl.BlockSpec((1, C_in0, T), lambda n, l: (n, 0, l + 1)),   # center tile
        pl.BlockSpec((1, C_in0, T), lambda n, l: (n, 0, l + 2)),   # right tile
    ]
    operands = [x_work, x_work, x_work]
    for wmat, bvec in zip(flat_ws, flat_bs):
        in_specs.append(pl.BlockSpec(wmat.shape, lambda n, l: (0, 0)))  # resident
        in_specs.append(pl.BlockSpec(bvec.shape, lambda n, l: (0, 0)))
        operands.extend([wmat, bvec])

    kernel = functools.partial(fused_stack_kernel, specs=tuple(specs), L=L, T=T)

    flops = 2 * N * L_p * sum(k * ci * co for (ci, co, k) in specs)
    bytes_accessed = (3 * x_work.size * 4 + N * C_out_last * L_p * 4
                      + sum(int(w.size) * 4 + int(b.size) * 4 for w, b in params))

    out = pl.pallas_call(
        kernel,
        out_shape=jax.ShapeDtypeStruct((N, C_out_last, L_p), x.dtype),
        grid_spec=pltpu.PrefetchScalarGridSpec(
            num_scalar_prefetch=0,
            grid=(N, num_l),
            in_specs=in_specs,
            out_specs=pl.BlockSpec((1, C_out_last, T), lambda n, l: (n, 0, l)),
        ),
        compiler_params=pltpu.CompilerParams(
            dimension_semantics=("parallel", "parallel"),
            vmem_limit_bytes=32 * 1024 * 1024,
        ),
        cost_estimate=pl.CostEstimate(
            flops=flops, transcendentals=0, bytes_accessed=bytes_accessed),
    )(*operands)

    if L_p != L:
        out = out[:, :, :L]
    return out


# ----------------------------------------------------------------------------
# Module: layer specs + PyTorch-style parameter init.
# ----------------------------------------------------------------------------
def layer_specs(input_channel, latent_dim, n_layers):
    specs = [(input_channel, latent_dim, 7)]
    for i in range(n_layers - 2):
        specs.append((latent_dim, latent_dim, 14 * 2 * i + 3))
    specs.append((latent_dim, latent_dim, 7))
    return specs


def init_params(key, input_channel, latent_dim, n_layers):
    """PyTorch-style uniform(-1/sqrt(fan_in), 1/sqrt(fan_in)) init; weights in
    PyTorch Conv1d layout (C_out, C_in, K)."""
    params = []
    for (c_in, c_out, k) in layer_specs(input_channel, latent_dim, n_layers):
        key, kw, kb = jax.random.split(key, 3)
        bound = 1.0 / math.sqrt(c_in * k)
        w = jax.random.uniform(kw, (c_out, c_in, k), jnp.float32, -bound, bound)
        b = jax.random.uniform(kb, (c_out,), jnp.float32, -bound, bound)
        params.append((w, b))
    return params


# Pure-JAX reference (per-layer "same" conv + ReLU) for the correctness check.
def _forward_ref(x, params):
    y = x
    for (w, b) in params:
        c_out, c_in, k = w.shape
        pad = (k - 1) // 2
        Ly = y.shape[2]
        yp = jnp.pad(y, ((0, 0), (0, 0), (pad, pad)))
        acc = jnp.zeros((y.shape[0], c_out, Ly), jnp.float32)
        for kk in range(k):
            acc = acc + jnp.einsum(
                "ncl,dc->ndl", yp[:, :, kk:kk + Ly], w[:, :, kk],
                precision=jax.lax.Precision.HIGHEST)
        y = jnp.maximum(acc + b[None, :, None], 0.0)
    return y


if __name__ == "__main__":
    # Small conv-shaped example: mono waveform, batch=2, length=512, 2 L-tiles.
    N, input_channel, out_channel, latent_dim, n_layers, L = 2, 1, 32, 32, 4, 512

    key = jax.random.PRNGKey(0)
    key, kx = jax.random.split(key)
    x = jax.random.normal(kx, (N, input_channel, L), dtype=jnp.float32)

    params = init_params(key, input_channel, latent_dim, n_layers)

    y = watermark_extracter_wav_forward(x, params, l_tile=256)
    y = jax.block_until_ready(y)

    y_ref = jax.block_until_ready(_forward_ref(x, params))
    assert y.shape == (N, latent_dim, L)
    max_err = float(jnp.max(jnp.abs(y - y_ref)))
    assert jnp.allclose(y, y_ref, atol=1e-3, rtol=1e-3), (
        f"mismatch vs reference, max abs err {max_err}")

    print("KERNEL_OK")
</pallas_src>

<mosaic_0001>
module attributes {stable_mosaic.version = 11 : i64} {
  func.func @fused_stack_kernel(%arg0: i32, %arg1: i32, %arg2: memref<1x1x256xf32, #tpu.memory_space<vmem>>, %arg3: memref<1x1x256xf32, #tpu.memory_space<vmem>>, %arg4: memref<1x1x256xf32, #tpu.memory_space<vmem>>, %arg5: memref<32x7xf32, #tpu.memory_space<vmem>>, %arg6: memref<32x1xf32, #tpu.memory_space<vmem>>, %arg7: memref<32x96xf32, #tpu.memory_space<vmem>>, %arg8: memref<32x1xf32, #tpu.memory_space<vmem>>, %arg9: memref<32x992xf32, #tpu.memory_space<vmem>>, %arg10: memref<32x1xf32, #tpu.memory_space<vmem>>, %arg11: memref<32x224xf32, #tpu.memory_space<vmem>>, %arg12: memref<32x1xf32, #tpu.memory_space<vmem>>, %arg13: memref<1x32x256xf32, #tpu.memory_space<vmem>>) attributes {dimension_semantics = [#tpu.dimension_semantics<parallel>, #tpu.dimension_semantics<parallel>], iteration_bounds = array<i64: 2, 2>, scalar_prefetch = 0 : i64, scratch_operands = 0 : i64, tpu.core_type = #tpu.core_type<tc>, window_params = [{transform_indices = @transform_0, window_bounds = array<i64: 1, 1, 256>}, {transform_indices = @transform_1, window_bounds = array<i64: 1, 1, 256>}, {transform_indices = @transform_2, window_bounds = array<i64: 1, 1, 256>}, {pipeline_mode = #tpu.pipeline_mode<synchronous>, transform_indices = @transform_3, window_bounds = array<i64: 32, 7>}, {pipeline_mode = #tpu.pipeline_mode<synchronous>, transform_indices = @transform_4, window_bounds = array<i64: 32, 1>}, {pipeline_mode = #tpu.pipeline_mode<synchronous>, transform_indices = @transform_5, window_bounds = array<i64: 32, 96>}, {pipeline_mode = #tpu.pipeline_mode<synchronous>, transform_indices = @transform_6, window_bounds = array<i64: 32, 1>}, {pipeline_mode = #tpu.pipeline_mode<synchronous>, transform_indices = @transform_7, window_bounds = array<i64: 32, 992>}, {pipeline_mode = #tpu.pipeline_mode<synchronous>, transform_indices = @transform_8, window_bounds = array<i64: 32, 1>}, {pipeline_mode = #tpu.pipeline_mode<synchronous>, transform_indices = @transform_9, window_bounds = array<i64: 32, 224>}, {pipeline_mode = #tpu.pipeline_mode<synchronous>, transform_indices = @transform_10, window_bounds = array<i64: 32, 1>}, {transform_indices = @transform_11, window_bounds = array<i64: 1, 32, 256>}]} {
    %c256_i32 = arith.constant 256 : i32
    %0 = arith.muli %arg1, %c256_i32 : i32
    %c0 = arith.constant 0 : index
    %c0_0 = arith.constant 0 : index
    %c0_1 = arith.constant 0 : index
    %1 = vector.load %arg2[%c0, %c0_0, %c0_1] : memref<1x1x256xf32, #tpu.memory_space<vmem>>, vector<1x1x256xf32>
    %2 = vector.shape_cast %1 : vector<1x1x256xf32> to vector<1x256xf32>
    %3 = vector.extract_strided_slice %2 {offsets = [0, 234], sizes = [1, 22], strides = [1, 1]} : vector<1x256xf32> to vector<1x22xf32>
    %c0_2 = arith.constant 0 : index
    %c0_3 = arith.constant 0 : index
    %c0_4 = arith.constant 0 : index
    %4 = vector.load %arg3[%c0_2, %c0_3, %c0_4] : memref<1x1x256xf32, #tpu.memory_space<vmem>>, vector<1x1x256xf32>
    %5 = vector.shape_cast %4 : vector<1x1x256xf32> to vector<1x256xf32>
    %c0_5 = arith.constant 0 : index
    %c0_6 = arith.constant 0 : index
    %c0_7 = arith.constant 0 : index
    %6 = vector.load %arg4[%c0_5, %c0_6, %c0_7] : memref<1x1x256xf32, #tpu.memory_space<vmem>>, vector<1x1x256xf32>
    %7 = vector.shape_cast %6 : vector<1x1x256xf32> to vector<1x256xf32>
    %8 = vector.extract_strided_slice %7 {offsets = [0, 0], sizes = [1, 22], strides = [1, 1]} : vector<1x256xf32> to vector<1x22xf32>
    %9 = tpu.concatenate %3, %5, %8 in 1 : vector<1x22xf32>, vector<1x256xf32>, vector<1x22xf32> -> vector<1x300xf32>
    %10 = tpu.iota {dimensions = array<i32: 1>} : vector<1x300xi32>
    %c22_i32 = arith.constant 22 : i32
    %11 = arith.subi %0, %c22_i32 : i32
    %12 = vector.broadcast %11 : i32 to vector<1x300xi32>
    %13 = arith.addi %10, %12 : vector<1x300xi32>
    %c0_i32 = arith.constant 0 : i32
    %14 = vector.broadcast %c0_i32 : i32 to vector<1x300xi32>
    %15 = arith.cmpi sge, %13, %14 : vector<1x300xi32>
    %c512_i32 = arith.constant 512 : i32
    %16 = vector.broadcast %c512_i32 : i32 to vector<1x300xi32>
    %17 = arith.cmpi slt, %13, %16 : vector<1x300xi32>
    %18 = arith.andi %15, %17 : vector<1x300xi1>
    %cst = arith.constant 0.000000e+00 : f32
    %19 = vector.broadcast %cst : f32 to vector<1x300xf32>
    %20 = arith.select %18, %9, %19 : vector<1x300xi1>, vector<1x300xf32>
    %c0_8 = arith.constant 0 : index
    %c0_9 = arith.constant 0 : index
    %21 = vector.load %arg5[%c0_8, %c0_9] : memref<32x7xf32, #tpu.memory_space<vmem>>, vector<32x7xf32>
    %c0_10 = arith.constant 0 : index
    %c0_11 = arith.constant 0 : index
    %22 = vector.load %arg6[%c0_10, %c0_11] : memref<32x1xf32, #tpu.memory_space<vmem>>, vector<32x1xf32>
    %cst_12 = arith.constant 0.000000e+00 : f32
    %23 = vector.broadcast %cst_12 : f32 to vector<32x294xf32>
    %24 = vector.extract_strided_slice %20 {offsets = [0, 0], sizes = [1, 294], strides = [1, 1]} : vector<1x300xf32> to vector<1x294xf32>
    %25 = vector.extract_strided_slice %20 {offsets = [0, 1], sizes = [1, 294], strides = [1, 1]} : vector<1x300xf32> to vector<1x294xf32>
    %26 = vector.extract_strided_slice %20 {offsets = [0, 2], sizes = [1, 294], strides = [1, 1]} : vector<1x300xf32> to vector<1x294xf32>
    %27 = vector.extract_strided_slice %20 {offsets = [0, 3], sizes = [1, 294], strides = [1, 1]} : vector<1x300xf32> to vector<1x294xf32>
    %28 = vector.extract_strided_slice %20 {offsets = [0, 4], sizes = [1, 294], strides = [1, 1]} : vector<1x300xf32> to vector<1x294xf32>
    %29 = vector.extract_strided_slice %20 {offsets = [0, 5], sizes = [1, 294], strides = [1, 1]} : vector<1x300xf32> to vector<1x294xf32>
    %30 = vector.extract_strided_slice %20 {offsets = [0, 6], sizes = [1, 294], strides = [1, 1]} : vector<1x300xf32> to vector<1x294xf32>
    %31 = tpu.concatenate %24, %25, %26, %27, %28, %29, %30 in 0 : vector<1x294xf32>, vector<1x294xf32>, vector<1x294xf32>, vector<1x294xf32>, vector<1x294xf32>, vector<1x294xf32>, vector<1x294xf32> -> vector<7x294xf32>
    %cst_13 = arith.constant dense<0.000000e+00> : vector<32x294xf32>
    %32 = tpu.matmul %21, %31, %cst_13 {dimension_numbers = #tpu.dot_dimension_numbers<[1], [0], [0], [1], [0, 0, 1, 1], [], []>} : vector<32x7xf32>, vector<7x294xf32>, vector<32x294xf32> -> vector<32x294xf32>
    %33 = arith.addf %23, %32 : vector<32x294xf32>
    %34 = vector.broadcast %22 : vector<32x1xf32> to vector<32x294xf32>
    %35 = arith.addf %33, %34 : vector<32x294xf32>
    %cst_14 = arith.constant 0.000000e+00 : f32
    %36 = vector.broadcast %cst_14 : f32 to vector<32x294xf32>
    %37 = arith.maximumf %35, %36 : vector<32x294xf32>
    %38 = tpu.iota {dimensions = array<i32: 1>} : vector<1x294xi32>
    %c19_i32 = arith.constant 19 : i32
    %39 = arith.subi %0, %c19_i32 : i32
    %40 = vector.broadcast %39 : i32 to vector<1x294xi32>
    %41 = arith.addi %38, %40 : vector<1x294xi32>
    %c0_i32_15 = arith.constant 0 : i32
    %42 = vector.broadcast %c0_i32_15 : i32 to vector<1x294xi32>
    %43 = arith.cmpi sge, %41, %42 : vector<1x294xi32>
    %c512_i32_16 = arith.constant 512 : i32
    %44 = vector.broadcast %c512_i32_16 : i32 to vector<1x294xi32>
    %45 = arith.cmpi slt, %41, %44 : vector<1x294xi32>
    %46 = arith.andi %43, %45 : vector<1x294xi1>
    %cst_17 = arith.constant 0.000000e+00 : f32
    %47 = vector.shape_cast %46 : vector<1x294xi1> to vector<1x294xi1>
    %48 = vector.broadcast %47 : vector<1x294xi1> to vector<32x294xi1>
    %49 = vector.broadcast %cst_17 : f32 to vector<32x294xf32>
    %50 = arith.select %48, %37, %49 : vector<32x294xi1>, vector<32x294xf32>
    %c0_18 = arith.constant 0 : index
    %c0_19 = arith.constant 0 : index
    %51 = vector.load %arg7[%c0_18, %c0_19] : memref<32x96xf32, #tpu.memory_space<vmem>>, vector<32x96xf32>
    %c0_20 = arith.constant 0 : index
    %c0_21 = arith.constant 0 : index
    %52 = vector.load %arg8[%c0_20, %c0_21] : memref<32x1xf32, #tpu.memory_space<vmem>>, vector<32x1xf32>
    %cst_22 = arith.constant 0.000000e+00 : f32
    %53 = vector.broadcast %cst_22 : f32 to vector<32x292xf32>
    %54 = vector.extract_strided_slice %50 {offsets = [0, 0], sizes = [32, 292], strides = [1, 1]} : vector<32x294xf32> to vector<32x292xf32>
    %55 = vector.extract_strided_slice %50 {offsets = [0, 1], sizes = [32, 292], strides = [1, 1]} : vector<32x294xf32> to vector<32x292xf32>
    %56 = vector.extract_strided_slice %50 {offsets = [0, 2], sizes = [32, 292], strides = [1, 1]} : vector<32x294xf32> to vector<32x292xf32>
    %57 = tpu.concatenate %54, %55, %56 in 0 : vector<32x292xf32>, vector<32x292xf32>, vector<32x292xf32> -> vector<96x292xf32>
    %cst_23 = arith.constant dense<0.000000e+00> : vector<32x292xf32>
    %58 = tpu.matmul %51, %57, %cst_23 {dimension_numbers = #tpu.dot_dimension_numbers<[1], [0], [0], [1], [0, 0, 1, 1], [], []>} : vector<32x96xf32>, vector<96x292xf32>, vector<32x292xf32> -> vector<32x292xf32>
    %59 = arith.addf %53, %58 : vector<32x292xf32>
    %60 = vector.broadcast %52 : vector<32x1xf32> to vector<32x292xf32>
    %61 = arith.addf %59, %60 : vector<32x292xf32>
    %cst_24 = arith.constant 0.000000e+00 : f32
    %62 = vector.broadcast %cst_24 : f32 to vector<32x292xf32>
    %63 = arith.maximumf %61, %62 : vector<32x292xf32>
    %64 = tpu.iota {dimensions = array<i32: 1>} : vector<1x292xi32>
    %c18_i32 = arith.constant 18 : i32
    %65 = arith.subi %0, %c18_i32 : i32
    %66 = vector.broadcast %65 : i32 to vector<1x292xi32>
    %67 = arith.addi %64, %66 : vector<1x292xi32>
    %c0_i32_25 = arith.constant 0 : i32
    %68 = vector.broadcast %c0_i32_25 : i32 to vector<1x292xi32>
    %69 = arith.cmpi sge, %67, %68 : vector<1x292xi32>
    %c512_i32_26 = arith.constant 512 : i32
    %70 = vector.broadcast %c512_i32_26 : i32 to vector<1x292xi32>
    %71 = arith.cmpi slt, %67, %70 : vector<1x292xi32>
    %72 = arith.andi %69, %71 : vector<1x292xi1>
    %cst_27 = arith.constant 0.000000e+00 : f32
    %73 = vector.shape_cast %72 : vector<1x292xi1> to vector<1x292xi1>
    %74 = vector.broadcast %73 : vector<1x292xi1> to vector<32x292xi1>
    %75 = vector.broadcast %cst_27 : f32 to vector<32x292xf32>
    %76 = arith.select %74, %63, %75 : vector<32x292xi1>, vector<32x292xf32>
    %c0_28 = arith.constant 0 : index
    %c0_29 = arith.constant 0 : index
    %77 = vector.load %arg9[%c0_28, %c0_29] : memref<32x992xf32, #tpu.memory_space<vmem>>, vector<32x992xf32>
    %c0_30 = arith.constant 0 : index
    %c0_31 = arith.constant 0 : index
    %78 = vector.load %arg10[%c0_30, %c0_31] : memref<32x1xf32, #tpu.memory_space<vmem>>, vector<32x1xf32>
    %cst_32 = arith.constant 0.000000e+00 : f32
    %79 = vector.broadcast %cst_32 : f32 to vector<32x262xf32>
    %80 = vector.extract_strided_slice %76 {offsets = [0, 0], sizes = [32, 262], strides = [1, 1]} : vector<32x292xf32> to vector<32x262xf32>
    %81 = vector.extract_strided_slice %76 {offsets = [0, 1], sizes = [32, 262], strides = [1, 1]} : vector<32x292xf32> to vector<32x262xf32>
    %82 = vector.extract_strided_slice %76 {offsets = [0, 2], sizes = [32, 262], strides = [1, 1]} : vector<32x292xf32> to vector<32x262xf32>
    %83 = vector.extract_strided_slice %76 {offsets = [0, 3], sizes = [32, 262], strides = [1, 1]} : vector<32x292xf32> to vector<32x262xf32>
    %84 = vector.extract_strided_slice %76 {offsets = [0, 4], sizes = [32, 262], strides = [1, 1]} : vector<32x292xf32> to vector<32x262xf32>
    %85 = vector.extract_strided_slice %76 {offsets = [0, 5], sizes = [32, 262], strides = [1, 1]} : vector<32x292xf32> to vector<32x262xf32>
    %86 = vector.extract_strided_slice %76 {offsets = [0, 6], sizes = [32, 262], strides = [1, 1]} : vector<32x292xf32> to vector<32x262xf32>
    %87 = vector.extract_strided_slice %76 {offsets = [0, 7], sizes = [32, 262], strides = [1, 1]} : vector<32x292xf32> to vector<32x262xf32>
    %88 = tpu.concatenate %80, %81, %82, %83, %84, %85, %86, %87 in 0 : vector<32x262xf32>, vector<32x262xf32>, vector<32x262xf32>, vector<32x262xf32>, vector<32x262xf32>, vector<32x262xf32>, vector<32x262xf32>, vector<32x262xf32> -> vector<256x262xf32>
    %89 = vector.extract_strided_slice %77 {offsets = [0, 0], sizes = [32, 256], strides = [1, 1]} : vector<32x992xf32> to vector<32x256xf32>
    %cst_33 = arith.constant dense<0.000000e+00> : vector<32x262xf32>
    %90 = tpu.matmul %89, %88, %cst_33 {dimension_numbers = #tpu.dot_dimension_numbers<[1], [0], [0], [1], [0, 0, 1, 1], [], []>} : vector<32x256xf32>, vector<256x262xf32>, vector<32x262xf32> -> vector<32x262xf32>
    %91 = arith.addf %79, %90 : vector<32x262xf32>
    %92 = vector.extract_strided_slice %76 {offsets = [0, 8], sizes = [32, 262], strides = [1, 1]} : vector<32x292xf32> to vector<32x262xf32>
    %93 = vector.extract_strided_slice %76 {offsets = [0, 9], sizes = [32, 262], strides = [1, 1]} : vector<32x292xf32> to vector<32x262xf32>
    %94 = vector.extract_strided_slice %76 {offsets = [0, 10], sizes = [32, 262], strides = [1, 1]} : vector<32x292xf32> to vector<32x262xf32>
    %95 = vector.extract_strided_slice %76 {offsets = [0, 11], sizes = [32, 262], strides = [1, 1]} : vector<32x292xf32> to vector<32x262xf32>
    %96 = vector.extract_strided_slice %76 {offsets = [0, 12], sizes = [32, 262], strides = [1, 1]} : vector<32x292xf32> to vector<32x262xf32>
    %97 = vector.extract_strided_slice %76 {offsets = [0, 13], sizes = [32, 262], strides = [1, 1]} : vector<32x292xf32> to vector<32x262xf32>
    %98 = vector.extract_strided_slice %76 {offsets = [0, 14], sizes = [32, 262], strides = [1, 1]} : vector<32x292xf32> to vector<32x262xf32>
    %99 = vector.extract_strided_slice %76 {offsets = [0, 15], sizes = [32, 262], strides = [1, 1]} : vector<32x292xf32> to vector<32x262xf32>
    %100 = tpu.concatenate %92, %93, %94, %95, %96, %97, %98, %99 in 0 : vector<32x262xf32>, vector<32x262xf32>, vector<32x262xf32>, vector<32x262xf32>, vector<32x262xf32>, vector<32x262xf32>, vector<32x262xf32>, vector<32x262xf32> -> vector<256x262xf32>
    %101 = vector.extract_strided_slice %77 {offsets = [0, 256], sizes = [32, 256], strides = [1, 1]} : vector<32x992xf32> to vector<32x256xf32>
    %cst_34 = arith.constant dense<0.000000e+00> : vector<32x262xf32>
    %102 = tpu.matmul %101, %100, %cst_34 {dimension_numbers = #tpu.dot_dimension_numbers<[1], [0], [0], [1], [0, 0, 1, 1], [], []>} : vector<32x256xf32>, vector<256x262xf32>, vector<32x262xf32> -> vector<32x262xf32>
    %103 = arith.addf %91, %102 : vector<32x262xf32>
    %104 = vector.extract_strided_slice %76 {offsets = [0, 16], sizes = [32, 262], strides = [1, 1]} : vector<32x292xf32> to vector<32x262xf32>
    %105 = vector.extract_strided_slice %76 {offsets = [0, 17], sizes = [32, 262], strides = [1, 1]} : vector<32x292xf32> to vector<32x262xf32>
    %106 = vector.extract_strided_slice %76 {offsets = [0, 18], sizes = [32, 262], strides = [1, 1]} : vector<32x292xf32> to vector<32x262xf32>
    %107 = vector.extract_strided_slice %76 {offsets = [0, 19], sizes = [32, 262], strides = [1, 1]} : vector<32x292xf32> to vector<32x262xf32>
    %108 = vector.extract_strided_slice %76 {offsets = [0, 20], sizes = [32, 262], strides = [1, 1]} : vector<32x292xf32> to vector<32x262xf32>
    %109 = vector.extract_strided_slice %76 {offsets = [0, 21], sizes = [32, 262], strides = [1, 1]} : vector<32x292xf32> to vector<32x262xf32>
    %110 = vector.extract_strided_slice %76 {offsets = [0, 22], sizes = [32, 262], strides = [1, 1]} : vector<32x292xf32> to vector<32x262xf32>
    %111 = vector.extract_strided_slice %76 {offsets = [0, 23], sizes = [32, 262], strides = [1, 1]} : vector<32x292xf32> to vector<32x262xf32>
    %112 = tpu.concatenate %104, %105, %106, %107, %108, %109, %110, %111 in 0 : vector<32x262xf32>, vector<32x262xf32>, vector<32x262xf32>, vector<32x262xf32>, vector<32x262xf32>, vector<32x262xf32>, vector<32x262xf32>, vector<32x262xf32> -> vector<256x262xf32>
    %113 = vector.extract_strided_slice %77 {offsets = [0, 512], sizes = [32, 256], strides = [1, 1]} : vector<32x992xf32> to vector<32x256xf32>
    %cst_35 = arith.constant dense<0.000000e+00> : vector<32x262xf32>
    %114 = tpu.matmul %113, %112, %cst_35 {dimension_numbers = #tpu.dot_dimension_numbers<[1], [0], [0], [1], [0, 0, 1, 1], [], []>} : vector<32x256xf32>, vector<256x262xf32>, vector<32x262xf32> -> vector<32x262xf32>
    %115 = arith.addf %103, %114 : vector<32x262xf32>
    %116 = vector.extract_strided_slice %76 {offsets = [0, 24], sizes = [32, 262], strides = [1, 1]} : vector<32x292xf32> to vector<32x262xf32>
    %117 = vector.extract_strided_slice %76 {offsets = [0, 25], sizes = [32, 262], strides = [1, 1]} : vector<32x292xf32> to vector<32x262xf32>
    %118 = vector.extract_strided_slice %76 {offsets = [0, 26], sizes = [32, 262], strides = [1, 1]} : vector<32x292xf32> to vector<32x262xf32>
    %119 = vector.extract_strided_slice %76 {offsets = [0, 27], sizes = [32, 262], strides = [1, 1]} : vector<32x292xf32> to vector<32x262xf32>
    %120 = vector.extract_strided_slice %76 {offsets = [0, 28], sizes = [32, 262], strides = [1, 1]} : vector<32x292xf32> to vector<32x262xf32>
    %121 = vector.extract_strided_slice %76 {offsets = [0, 29], sizes = [32, 262], strides = [1, 1]} : vector<32x292xf32> to vector<32x262xf32>
    %122 = vector.extract_strided_slice %76 {offsets = [0, 30], sizes = [32, 262], strides = [1, 1]} : vector<32x292xf32> to vector<32x262xf32>
    %123 = tpu.concatenate %116, %117, %118, %119, %120, %121, %122 in 0 : vector<32x262xf32>, vector<32x262xf32>, vector<32x262xf32>, vector<32x262xf32>, vector<32x262xf32>, vector<32x262xf32>, vector<32x262xf32> -> vector<224x262xf32>
    %124 = vector.extract_strided_slice %77 {offsets = [0, 768], sizes = [32, 224], strides = [1, 1]} : vector<32x992xf32> to vector<32x224xf32>
    %cst_36 = arith.constant dense<0.000000e+00> : vector<32x262xf32>
    %125 = tpu.matmul %124, %123, %cst_36 {dimension_numbers = #tpu.dot_dimension_numbers<[1], [0], [0], [1], [0, 0, 1, 1], [], []>} : vector<32x224xf32>, vector<224x262xf32>, vector<32x262xf32> -> vector<32x262xf32>
    %126 = arith.addf %115, %125 : vector<32x262xf32>
    %127 = vector.broadcast %78 : vector<32x1xf32> to vector<32x262xf32>
    %128 = arith.addf %126, %127 : vector<32x262xf32>
    %cst_37 = arith.constant 0.000000e+00 : f32
    %129 = vector.broadcast %cst_37 : f32 to vector<32x262xf32>
    %130 = arith.maximumf %128, %129 : vector<32x262xf32>
    %131 = tpu.iota {dimensions = array<i32: 1>} : vector<1x262xi32>
    %c3_i32 = arith.constant 3 : i32
    %132 = arith.subi %0, %c3_i32 : i32
    %133 = vector.broadcast %132 : i32 to vector<1x262xi32>
    %134 = arith.addi %131, %133 : vector<1x262xi32>
    %c0_i32_38 = arith.constant 0 : i32
    %135 = vector.broadcast %c0_i32_38 : i32 to vector<1x262xi32>
    %136 = arith.cmpi sge, %134, %135 : vector<1x262xi32>
    %c512_i32_39 = arith.constant 512 : i32
    %137 = vector.broadcast %c512_i32_39 : i32 to vector<1x262xi32>
    %138 = arith.cmpi slt, %134, %137 : vector<1x262xi32>
    %139 = arith.andi %136, %138 : vector<1x262xi1>
    %cst_40 = arith.constant 0.000000e+00 : f32
    %140 = vector.shape_cast %139 : vector<1x262xi1> to vector<1x262xi1>
    %141 = vector.broadcast %140 : vector<1x262xi1> to vector<32x262xi1>
    %142 = vector.broadcast %cst_40 : f32 to vector<32x262xf32>
    %143 = arith.select %141, %130, %142 : vector<32x262xi1>, vector<32x262xf32>
    %c0_41 = arith.constant 0 : index
    %c0_42 = arith.constant 0 : index
    %144 = vector.load %arg11[%c0_41, %c0_42] : memref<32x224xf32, #tpu.memory_space<vmem>>, vector<32x224xf32>
    %c0_43 = arith.constant 0 : index
    %c0_44 = arith.constant 0 : index
    %145 = vector.load %arg12[%c0_43, %c0_44] : memref<32x1xf32, #tpu.memory_space<vmem>>, vector<32x1xf32>
    %cst_45 = arith.constant 0.000000e+00 : f32
    %146 = vector.broadcast %cst_45 : f32 to vector<32x256xf32>
    %147 = vector.extract_strided_slice %143 {offsets = [0, 0], sizes = [32, 256], strides = [1, 1]} : vector<32x262xf32> to vector<32x256xf32>
    %148 = vector.extract_strided_slice %143 {offsets = [0, 1], sizes = [32, 256], strides = [1, 1]} : vector<32x262xf32> to vector<32x256xf32>
    %149 = vector.extract_strided_slice %143 {offsets = [0, 2], sizes = [32, 256], strides = [1, 1]} : vector<32x262xf32> to vector<32x256xf32>
    %150 = vector.extract_strided_slice %143 {offsets = [0, 3], sizes = [32, 256], strides = [1, 1]} : vector<32x262xf32> to vector<32x256xf32>
    %151 = vector.extract_strided_slice %143 {offsets = [0, 4], sizes = [32, 256], strides = [1, 1]} : vector<32x262xf32> to vector<32x256xf32>
    %152 = vector.extract_strided_slice %143 {offsets = [0, 5], sizes = [32, 256], strides = [1, 1]} : vector<32x262xf32> to vector<32x256xf32>
    %153 = vector.extract_strided_slice %143 {offsets = [0, 6], sizes = [32, 256], strides = [1, 1]} : vector<32x262xf32> to vector<32x256xf32>
    %154 = tpu.concatenate %147, %148, %149, %150, %151, %152, %153 in 0 : vector<32x256xf32>, vector<32x256xf32>, vector<32x256xf32>, vector<32x256xf32>, vector<32x256xf32>, vector<32x256xf32>, vector<32x256xf32> -> vector<224x256xf32>
    %cst_46 = arith.constant dense<0.000000e+00> : vector<32x256xf32>
    %155 = tpu.matmul %144, %154, %cst_46 {dimension_numbers = #tpu.dot_dimension_numbers<[1], [0], [0], [1], [0, 0, 1, 1], [], []>} : vector<32x224xf32>, vector<224x256xf32>, vector<32x256xf32> -> vector<32x256xf32>
    %156 = arith.addf %146, %155 : vector<32x256xf32>
    %157 = vector.broadcast %145 : vector<32x1xf32> to vector<32x256xf32>
    %158 = arith.addf %156, %157 : vector<32x256xf32>
    %cst_47 = arith.constant 0.000000e+00 : f32
    %159 = vector.broadcast %cst_47 : f32 to vector<32x256xf32>
    %160 = arith.maximumf %158, %159 : vector<32x256xf32>
    %c0_48 = arith.constant 0 : index
    %c0_49 = arith.constant 0 : index
    %c0_50 = arith.constant 0 : index
    %161 = vector.load %arg13[%c0_48, %c0_49, %c0_50] : memref<1x32x256xf32, #tpu.memory_space<vmem>>, vector<1x32x256xf32>
    %162 = vector.shape_cast %161 : vector<1x32x256xf32> to vector<32x256xf32>
    %163 = vector.shape_cast %160 : vector<32x256xf32> to vector<1x32x256xf32>
    tpu.vector_store %arg13[%c0_48, %c0_49, %c0_50], %163 {strides = array<i32>} : memref<1x32x256xf32, #tpu.memory_space<vmem>>, vector<1x32x256xf32>,
    return
  }
  func.func @transform_0(%arg0: i32, %arg1: i32) -> (i32, i32, i32) {
    %c0_i32 = arith.constant 0 : i32
    %c0_i32_0 = arith.constant 0 : i32
    return %arg0, %c0_i32, %arg1 : i32, i32, i32
  }
  func.func @transform_1(%arg0: i32, %arg1: i32) -> (i32, i32, i32) {
    %c1_i32 = arith.constant 1 : i32
    %0 = arith.addi %arg1, %c1_i32 : i32
    %c0_i32 = arith.constant 0 : i32
    %c0_i32_0 = arith.constant 0 : i32
    return %arg0, %c0_i32, %0 : i32, i32, i32
  }
  func.func @transform_2(%arg0: i32, %arg1: i32) -> (i32, i32, i32) {
    %c2_i32 = arith.constant 2 : i32
    %0 = arith.addi %arg1, %c2_i32 : i32
    %c0_i32 = arith.constant 0 : i32
    %c0_i32_0 = arith.constant 0 : i32
    return %arg0, %c0_i32, %0 : i32, i32, i32
  }
  func.func @transform_3(%arg0: i32, %arg1: i32) -> (i32, i32) {
    %c0_i32 = arith.constant 0 : i32
    %c0_i32_0 = arith.constant 0 : i32
    %c0_i32_1 = arith.constant 0 : i32
    return %c0_i32, %c0_i32_0 : i32, i32
  }
  func.func @transform_4(%arg0: i32, %arg1: i32) -> (i32, i32) {
    %c0_i32 = arith.constant 0 : i32
    %c0_i32_0 = arith.constant 0 : i32
    %c0_i32_1 = arith.constant 0 : i32
    return %c0_i32, %c0_i32_0 : i32, i32
  }
  func.func @transform_5(%arg0: i32, %arg1: i32) -> (i32, i32) {
    %c0_i32 = arith.constant 0 : i32
    %c0_i32_0 = arith.constant 0 : i32
    %c0_i32_1 = arith.constant 0 : i32
    return %c0_i32, %c0_i32_0 : i32, i32
  }
  func.func @transform_6(%arg0: i32, %arg1: i32) -> (i32, i32) {
    %c0_i32 = arith.constant 0 : i32
    %c0_i32_0 = arith.constant 0 : i32
    %c0_i32_1 = arith.constant 0 : i32
    return %c0_i32, %c0_i32_0 : i32, i32
  }
  func.func @transform_7(%arg0: i32, %arg1: i32) -> (i32, i32) {
    %c0_i32 = arith.constant 0 : i32
    %c0_i32_0 = arith.constant 0 : i32
    %c0_i32_1 = arith.constant 0 : i32
    return %c0_i32, %c0_i32_0 : i32, i32
  }
  func.func @transform_8(%arg0: i32, %arg1: i32) -> (i32, i32) {
    %c0_i32 = arith.constant 0 : i32
    %c0_i32_0 = arith.constant 0 : i32
    %c0_i32_1 = arith.constant 0 : i32
    return %c0_i32, %c0_i32_0 : i32, i32
  }
  func.func @transform_9(%arg0: i32, %arg1: i32) -> (i32, i32) {
    %c0_i32 = arith.constant 0 : i32
    %c0_i32_0 = arith.constant 0 : i32
    %c0_i32_1 = arith.constant 0 : i32
    return %c0_i32, %c0_i32_0 : i32, i32
  }
  func.func @transform_10(%arg0: i32, %arg1: i32) -> (i32, i32) {
    %c0_i32 = arith.constant 0 : i32
    %c0_i32_0 = arith.constant 0 : i32
    %c0_i32_1 = arith.constant 0 : i32
    return %c0_i32, %c0_i32_0 : i32, i32
  }
  func.func @transform_11(%arg0: i32, %arg1: i32) -> (i32, i32, i32) {
    %c0_i32 = arith.constant 0 : i32
    %c0_i32_0 = arith.constant 0 : i32
    return %arg0, %c0_i32, %arg1 : i32, i32, i32
  }
}

</mosaic_0001>

<bundles_post_ra>
// kernel: tpu_custom_call.1
= control target key start
LH: loop header
LB: loop body
LE: loop exit
PB: predicated region body
PF: predicated region fallthrough
CT: control target
= control target key end

     0   :  { %s9083_s0 = inlined_call_operand.vmem [shape: f32[2,1,1024], index: 0, kind: input, shape index: {}]   ;;  %s9084_s1 = inlined_call_operand.vmem [shape: f32[2,1,1024], index: 1, kind: input, shape index: {}]   ;;  %s9085_s2 = inlined_call_operand.vmem [shape: f32[2,1,1024], index: 2, kind: input, shape index: {}]   ;;  %s9086_s3 = inlined_call_operand.vmem [shape: f32[32,7], index: 3, kind: input, shape index: {}]   ;;  %s9087_s4 = inlined_call_operand.vmem [shape: f32[32,1], index: 4, kind: input, shape index: {}]   ;;  %s9088_s5 = inlined_call_operand.vmem [shape: f32[32,96], index: 5, kind: input, shape index: {}]   ;;  %s9089_s6 = inlined_call_operand.vmem [shape: f32[32,1], index: 6, kind: input, shape index: {}]   ;;  %s9090_s7 = inlined_call_operand.hbm [shape: f32[32,992], index: 7, kind: input, shape index: {}]   ;;  %s9091_s8 = inlined_call_operand.vmem [shape: f32[32,1], index: 8, kind: input, shape index: {}]   ;;  %s9092_s9 = inlined_call_operand.vmem [shape: f32[32,224], index: 9, kind: input, shape index: {}]   ;;  %s9093_s10 = inlined_call_operand.vmem [shape: f32[32,1], index: 10, kind: input, shape index: {}]   ;;  %s9094_s11 = inlined_call_operand.hbm [shape: f32[2,32,512], index: 11, kind: output, shape index: {}]  }
   0x1   :  { %9396 = sst [smem:[#allocation156_spill]] %s9083_s0 }
   0x2   :  { %9397 = sst [smem:[#allocation157_spill]] %s9090_s7 }
   0x3   :  { %16 = vsyncpa [#allocation3], 0 }
   0x4   :  { %17 = vsyncpa [#allocation4], 0 }
   0x5   :  { %19 = vsyncpa [#allocation4 + $0x1], 0  ;;  %s5437_s17 = smov 0   ;;  %s5439_s18 = smov 0  }
   0x6   :  { %s5441_s19 = smov 0   ;;  %s5443_s20 = smov 0  }
   0x7   :  { %s5445_s21 = smov 0   ;;  %s5447_s22 = smov 0  }
   0x8   :  { %s5449_s23 = smov 0   ;;  %s5451_s24 = smov 0  }
   0x9 LB: > { %9398 = sst [smem:[#allocation8_spill]] %s5329_s17  ;;  %s3877_s25 = sadd.s32 4294967295, %s5357_s24   ;;  %s5357_s24 = sphi %s5451_s24, %s25_s24   ;;  %s5353_s23 = sphi %s5449_s23, %s9928_s23   ;;  %s5349_s22 = sphi %s5447_s22, %s9927_s22   ;;  %s5345_s21 = sphi %s5445_s21, %s9926_s21   ;;  %s5341_s20 = sphi %s5443_s20, %s9925_s20   ;;  %s5337_s19 = sphi %s5441_s19, %s9931_s19   ;;  %s5333_s18 = sphi %s5439_s18, %s9930_s18   ;;  %s5329_s17 = sphi %s5437_s17, %s9929_s17  }
   0xa   : > { %9399 = sst [smem:[#allocation9_spill]] %s5349_s22  ;;  %s3878_s26 = sadd.s32 4294967294, %s5357_s24  }
   0xb   : > { %9400 = sst [smem:[#allocation10_spill]] %s5353_s23  ;;  %s34_s27 = sadd.s32 1, %s5349_s22 }
   0xc   : > { %s37_s28 = sadd.s32 1, %s5353_s23  ;;  %p35_p0 = scmp.ge.s32.totalorder %s34_s27, 2 }
   0xd   : > { %s302_s29 = sadd.s32 1, %s5337_s19  ;;  %p312_p1 = scmp.ne.s32.totalorder %s5337_s19, %s5333_s18 }
   0xe   : > { %p313_p2 = scmp.eq.s32.totalorder %s3877_s25, 3  ;;  %s9933_s27 = smov (%p35_p0, %s34_s27), 0 }
   0xf   : > { %9401 = sst [smem:[#allocation11_spill]] %s9933_s27  ;;  %s9935_s28 = smov (!%p35_p0, %s37_s28), %s5353_s23 }
  0x10   : > { %s298_s30 = ssub.s32 %s5349_s22, %s9933_s27  ;;  %p5489_p3 = por %p313_p2, %p312_p1 }
  0x11   : > { %p39_p4 = scmp.ge.s32.totalorder %s9935_s28, 2  ;;  %p318_p5 = scmp.ne.s32.totalorder %s5333_s18, %s5329_s17 }
  0x12   : > { %p319_p6 = scmp.eq.s32.totalorder %s3878_s26, 3  ;;  %p3879_p7 = scmp.ge.s32.totalorder %s5357_s24, 1 }
  0x13   : > { %s9937_s28 = smov (%p39_p4, %s9935_s28), 0  ;;  %p326_p9 = scmp.lt.s32.totalorder %s5357_s24, 5 }
  0x14   : > { %9403 = sst [smem:[#allocation12_spill]] %s9937_s28  ;;  %p5498_p8 = por %p319_p6, %p318_p5 }
  0x15   : > { %s297_s14 = ssub.s32 %s5353_s23, %s9937_s28  ;;  %p5505_p10 = pnand %p3879_p7, %p326_p9 }
  0x16   : > { %s9404_s13 = scalar_select %p5498_p8, 1, 0 }
  0x17   : > { %s299_s15 = sor.u32 %s298_s30, %s297_s14  ;;  %p5509_p12 = scmp.eq.s32.totalorder %s3877_s25, 0 }
  0x18   : > { %9405 = sst [smem:[#allocation13_spill]] %s9404_s13  ;;  %p300_p11 = scmp.eq.s32.totalorder %s299_s15, 0 }
  0x19   : > { %p3993_p13 = pneg %p5505_p10  ;;  %s9408_s7 = sld [smem:[#allocation157_spill]] }
  0x1a   : > { %s5519_s17 = scalar_select %p300_p11, %s5337_s19, %s302_s29  }
  0x1b   : > { %s5359_s30 = smov [#allocation2]   ;;  %p3994_p0 = pnand %p5509_p12, %p3993_p13 }
  0x1c   : > { %9409 = sst [smem:[#allocation14_spill]] %s5519_s17  ;;  %s351_s14 = sshll.u32 %s5359_s30, 4  ;;  %s352_s14 = int_to_ptr.vmem [resolvable:$true] %s351_s14 }
  0x1d   : > { %s5360_s15 = smov 1024   ;;  %s5361_s25 = smov 64  }
  0x1e   : > { %416 = sbr.rel (%p5505_p10) target bundleno = 1939 (0x793), region = 64 }
  0x1f   : > { %s349_s13 = sshll.u32 %s9408_s7, 4  ;;  %s350_s13 = int_to_ptr.hbm [resolvable:$true] %s349_s13 }
  0x20   : > { %3996 = dma.hbm_to_vmem [thread:$0]  (!%p3994_p0), %s350_s13, 4096, %s352_s14, [#allocation3], %s5360_s15, %s5360_s15, %s5361_s25  }
  0x23   : > { %5320 = dma.done.wait (%p5509_p12), [#allocation3], 4096  }
  0x24   : > { %5322 = vsyncadd (%p5509_p12), [#allocation3], 4294963200  ;;  %s5530_s22 = sshll.u32 %s5341_s20, 1  ;;  %p479_p1 = scmp.lt.s32.totalorder %s5345_s21, 1  ;;  %v538_v7 = vlaneseq  ;;  %vm526_vm2 = vcmask 179200   ;;  %v5369_v62 = vmov 0  }
  0x25   : > { %p481_p2 = scmp.lt.s32.totalorder %s5530_s22, 7  ;;  %s9410_s0 = sld [smem:[#allocation156_spill]]  ;;  %4086 = vset.pattern.permute.xlu1 %v5369_v62  ;;  %4088 = vset.pattern.permute.xlu0 %v5369_v62  ;;  %v563_v63 = vld [vmem:[%s9087_s4] sm:$0xff]  ;;  %vm579_vm10 = vcmask 1039360   ;;  %vm594_vm11 = vcmask 1031168   ;;  %vm609_vm12 = vcmask 1022976  }
  0x26   : > { %s480_s29 = scalar_select %p479_p1, %s5345_s21, 1  ;;  %v539_v9 = vand.u32 127, %v538_v7  ;;  %4087 = vset.pattern.permute.xlu2 %v5369_v62  ;;  %vm660_vm13 = vcmask 1040384   ;;  %vm624_vm14 = vcmask 1014784   ;;  %vm664_vm15 = vcmask 1041408  }
  0x27   : > { %s482_s13 = scalar_select %p481_p2, %s5530_s22, 7 }
  0x28   : > { %s3886_s16 = sshll.u32 %s480_s29, 3  ;;  %s3982_s15 = sadd.s32 2, %s5530_s22  ;;  %v540_v12 = vadd.s32 128, %v539_v9  ;;  %v5572_v22 = vadd.s32 256, %v539_v9 }
  0x29   : > { %s484_s26 = sadd.s32 %s3886_s16, %s482_s13  ;;  %p491_p4 = scmp.lt.s32.totalorder %s3982_s15, 7 }
  0x2a   : > { %s3984_s25 = sadd.s32 4, %s5530_s22  ;;  %s5362_s7 = smov 22   ;;  %9414 = vst [vmem:[#allocation18_spill] sm:$0xff] %v5572_v22 }
  0x2b   : > { %s485_s27 = scalar_lea.vmem %s9410_s0, %s484_s26  ;;  %s9939_s15 = smov (!%p491_p4, %s3982_s15), 7 }
  0x2c   : > { %v511_v0 = vld [vmem:[%s485_s27] sm:$0x3]  ;;  %p502_p5 = scmp.lt.s32.totalorder %s3984_s25, 7  ;;  %s494_s28 = sadd.s32 %s3886_s16, %s9939_s15 }
  0x2d   : > { %v515_v1 = vperm.slane %v511_v0, 1  ;;  %s495_s29 = scalar_lea.vmem %s9084_s1, %s494_s28  ;;  %s3891_s27 = sshll.u32 %s5341_s20, 8 }
  0x2e   : > { %v512_v2 = vld [vmem:[%s495_s29] sm:$0x3]  ;;  %s9941_s25 = smov (!%p502_p5, %s3984_s25), 7  ;;  %s3908_s15 = sadd.s32 4294967277, %s3891_s27 }
  0x2f   : > { %516 = vrot.lane.b32.xlu0 %v515_v1, %s5362_s7  ;;  %v521_v3 = vperm.slane %v512_v2, 1  ;;  %v520_v4 = vperm.slane %v512_v2, 0  ;;  %s505_s13 = sadd.s32 %s3886_s16, %s9941_s25  ;;  %s3958_s0 = sadd.s32 4294967293, %s3891_s27  ;;  %v5548_v8 = vstv %s3908_s15 }
  0x30   : > { %s506_s14 = scalar_lea.vmem %s9085_s2, %s505_s13  ;;  %s3933_s17 = sadd.s32 4294967278, %s3891_s27  ;;  %v5550_v10 = vstv %s3958_s0  ;;  %v5555_v13 = vadd.s32 %v5548_v8, %v539_v9  ;;  %v5564_v16 = vadd.s32 %v5548_v8, %v540_v12 }
  0x31   : > { %524 = vrot.lane.b32.xlu1 %v521_v3, %s5362_s7  ;;  %v513_v5 = vld [vmem:[%s506_s14] sm:$0x3]  ;;  %9411 = vst [vmem:[#allocation15_spill] sm:$0xff] %v5550_v10  ;;  %v5552_v11 = vstv %s3933_s17  ;;  %v5561_v15 = vadd.s32 %v5550_v10, %v539_v9  ;;  %v5570_v18 = vadd.s32 %v5550_v10, %v540_v12  ;;  %s3892_s0 = sadd.s32 4294967274, %s3891_s27  ;;  %s5364_s20 = smov 127  }
  0x32   : > { %v532_v6 = vperm.slane %v513_v5, 0  ;;  %v5558_v14 = vadd.s32 %v5552_v11, %v539_v9  ;;  %v5567_v17 = vadd.s32 %v5552_v11, %v540_v12  ;;  %v543_v19 = vstv %s3892_s0  ;;  %s5365_s23 = smov 125   ;;  %s5366_s28 = smov 124   ;;  %v566_v5 = vld [vmem:[%s9087_s4 + $0x18] sm:$0xff] }
  0x33   : > { %9412 = vst [vmem:[#allocation16_spill] sm:$0xff] %v5561_v15  ;;  %v544_v21 = vadd.s32 %v543_v19, %v539_v9  ;;  %v545_v23 = vadd.s32 %v543_v19, %v540_v12  ;;  %v546_v25 = vadd.s32 %v543_v19, %v5572_v22  ;;  %s5367_s16 = smov 123   ;;  %s5368_s25 = smov 122  }
  0x34   : > { %9413 = vst [vmem:[#allocation17_spill] sm:$0xff] %v5570_v18  ;;  %s5370_s27 = smov 121   ;;  %s5371_s15 = smov 120  }
  0x35   : > { %vm547_vm0 = vcmp.ge.s32.totalorder %v544_v21, 0  ;;  %vm550_vm1 = vcmp.lt.s32.totalorder %v544_v21, 512  ;;  %vm548_vm4 = vcmp.ge.s32.totalorder %v545_v23, 0  ;;  %vm551_vm5 = vcmp.lt.s32.totalorder %v545_v23, 512  ;;  %s5372_s17 = smov 112   ;;  %s5373_s0 = smov 104  }
  0x36   : > { %vm553_vm3 = vmand %vm547_vm0, %vm550_vm1  ;;  %vm549_vm6 = vcmp.ge.s32.totalorder %v546_v25, 0  ;;  %vm552_vm7 = vcmp.lt.s32.totalorder %v546_v25, 512  ;;  %vm639_vm0 = vcmask 1006592   ;;  %vm668_vm1 = vcmask 1042432   ;;  %s475_s26 = sand.u32 1, %s5333_s18  }
  0x37   : > { %522 = vrot.lane.b32.xlu0 %v520_v4, %s5362_s7  ;;  %vm554_vm8 = vmand %vm548_vm4, %vm551_vm5  ;;  %vm676_vm4 = vcmask 1044480   ;;  %vm680_vm5 = vcmask 1045504   ;;  %s3884_s30 = sshll.u32 %s475_s26, 6 }
  0x38   : > { %vm555_vm9 = vmand %vm549_vm6, %vm552_vm7  ;;  %vm717_vm6 = vcmask 1046528   ;;  %vm704_vm7 = vcmask 56320   ;;  %s9027_s14 = scalar_lea.vmem [#allocation5], %s3884_s30 }
  0x39   : > { %533 = vrot.lane.b32.xlu1 %v532_v6, %s5362_s7  ;;  %s5363_s7 = smov 126  }
  0xa1   : > { %v517_v20 = vpop.permute.xlu0 %516 }
  0xa3   : > { %v525_v24 = vpop.permute.xlu1 %524 }
  0xa9   : > { %v523_v26 = vpop.permute.xlu0 %522 }
  0xaa   : > { %v536_v27 = vsel %vm526_vm2, %v517_v20, %v523_v26  ;;  %v527_v31 = vsel %vm526_vm2, %v523_v26, %v525_v24 }
  0xab   : > { %v5576_v28 = vsel %vm553_vm3, %v536_v27, 0.0  ;;  %v534_v32 = vpop.permute.xlu1 %533  ;;  %v5583_v33 = vsel %vm554_vm8, %v527_v31, 0.0  ;;  %vm654_vm3 = vcmask 998400   ;;  %vm831_vm8 = vcmp.ge.s32.totalorder %v5555_v13, 0 }
  0xac   : > { %v585_v29 = vrot.slane %v5576_v28, 6  ;;  %v570_v30 = vrot.slane %v5576_v28, 7  ;;  %v537_v34 = vsel %vm526_vm2, %v525_v24, %v534_v32  ;;  %v600_v37 = vrot.slane %v5576_v28, 5 }
  0xad   : > { %v5586_v35 = vsel %vm555_vm9, %v537_v34, 0.0  ;;  %v571_v38 = vrot.slane %v5583_v33, 7  ;;  %v615_v40 = vrot.slane %v5576_v28, 4  ;;  %v586_v41 = vrot.slane %v5583_v33, 6  ;;  %v560_v34 = vld [vmem:[%s9086_s3 + $0x8] sm:$0xff] }
  0xae   : > { %588 = vrot.lane.b32.xlu1 %v585_v29, %s5363_s7  ;;  %573 = vrot.lane.b32.xlu2 %v570_v30, %s5364_s20  ;;  %v572_v36 = vrot.slane %v5586_v35, 7  ;;  %v587_v39 = vrot.slane %v5586_v35, 6  ;;  %v602_v42 = vrot.slane %v5586_v35, 5  ;;  %v630_v43 = vrot.slane %v5576_v28, 3  ;;  %v559_v29 = vld [vmem:[%s9086_s3] sm:$0xff] }
  0xaf   : > { %v601_v44 = vrot.slane %v5583_v33, 5  ;;  %v617_v45 = vrot.slane %v5586_v35, 4  ;;  %v645_v46 = vrot.slane %v5576_v28, 2  ;;  %v616_v47 = vrot.slane %v5583_v33, 4 }
  0xb0   : > { %577 = vrot.lane.b32.xlu0 %v572_v36, %s5364_s20  ;;  %v632_v48 = vrot.slane %v5586_v35, 3  ;;  %v631_v49 = vrot.slane %v5583_v33, 3  ;;  %v647_v50 = vrot.slane %v5586_v35, 2  ;;  %v646_v51 = vrot.slane %v5583_v33, 2 }
  0xb1   : > { %vm672_vm2 = vcmask 1043456   ;;  %vm834_vm9 = vcmp.lt.s32.totalorder %v5555_v13, 512 }
  0xb6   : > { %603 = vrot.lane.b32.xlu1 %v600_v37, %s5365_s23  ;;  %575 = vrot.lane.b32.xlu2 %v571_v38, %s5364_s20  ;;  %v565_v38 = vld [vmem:[%s9087_s4 + $0x10] sm:$0xff] }
  0xb8   : > { %592 = vrot.lane.b32.xlu0 %v587_v39, %s5363_s7  ;;  %v863_v39 = vld [vmem:[%s9089_s6 + $0x8] sm:$0xff] }
  0xbe   : > { %618 = vrot.lane.b32.xlu1 %v615_v40, %s5366_s28  ;;  %590 = vrot.lane.b32.xlu2 %v586_v41, %s5363_s7 }
  0xc0   : > { %607 = vrot.lane.b32.xlu0 %v602_v42, %s5365_s23 }
  0xc6   : > { %633 = vrot.lane.b32.xlu1 %v630_v43, %s5367_s16  ;;  %605 = vrot.lane.b32.xlu2 %v601_v44, %s5365_s23 }
  0xc8   : > { %622 = vrot.lane.b32.xlu0 %v617_v45, %s5366_s28 }
  0xce   : > { %648 = vrot.lane.b32.xlu1 %v645_v46, %s5368_s25  ;;  %620 = vrot.lane.b32.xlu2 %v616_v47, %s5366_s28 }
  0xd0   : > { %637 = vrot.lane.b32.xlu0 %v632_v48, %s5367_s16 }
  0xd6   : > { %635 = vrot.lane.b32.xlu2 %v631_v49, %s5367_s16  ;;  %686 = vperm.xlu1 %4086, %v563_v63  }
  0xd8   : > { %652 = vrot.lane.b32.xlu0 %v647_v50, %s5368_s25 }
  0xde   : > { %650 = vrot.lane.b32.xlu2 %v646_v51, %s5368_s25  ;;  %701 = vperm.xlu1 %4086, %v566_v5  }
  0xe0   : > { %696 = vperm.xlu0 %4088, %v565_v38  }
  0xe6   : > { %973 = vperm.xlu1 %4086, %v863_v39  }
 0x108   : > { %v574_v52 = vpop.permute.xlu2 %573 }
 0x110   : > { %v576_v53 = vpop.permute.xlu2 %575 }
 0x111   : > { %v580_v3 = vsel %vm579_vm10, %v574_v52, %v576_v53 }
 0x112   : > { %v661_v7 = vsel %vm660_vm13, %v5576_v28, %v580_v3  ;;  %v562_v28 = vld [vmem:[%s9086_s3 + $0x18] sm:$0xff] }
 0x118   : > { %v591_v54 = vpop.permute.xlu2 %590 }
 0x120   : > { %v589_v55 = vpop.permute.xlu1 %588  ;;  %v606_v56 = vpop.permute.xlu2 %605 }
 0x121   : > { %v595_v4 = vsel %vm594_vm11, %v589_v55, %v591_v54  ;;  %v862_v55 = vld [vmem:[%s9089_s6] sm:$0xff] }
 0x122   : > { %v5620_v57 = vpop.permute.xlu0 %577  ;;  %v665_v12 = vsel %vm664_vm15, %v661_v7, %v595_v4  ;;  %968 = vperm.xlu0 %4088, %v862_v55  }
 0x123   : > { %v581_v32 = vsel %vm579_vm10, %v576_v53, %v5620_v57  ;;  %v663_v44 = vsel %vm660_vm13, %v5586_v35, %v5620_v57  ;;  %v561_v35 = vld [vmem:[%s9086_s3 + $0x10] sm:$0xff]  ;;  %v865_v57 = vld [vmem:[%s9089_s6 + $0x18] sm:$0xff] }
 0x124   : > { %v662_v40 = vsel %vm660_vm13, %v5583_v33, %v581_v32  ;;  %vm832_vm13 = vcmp.ge.s32.totalorder %v5564_v16, 0 }
 0x128   : > { %v604_v58 = vpop.permute.xlu1 %603  ;;  %v621_v59 = vpop.permute.xlu2 %620 }
 0x129   : > { %v610_v6 = vsel %vm609_vm12, %v604_v58, %v606_v56  ;;  %v864_v58 = vld [vmem:[%s9089_s6 + $0x10] sm:$0xff] }
 0x12a   : > { %v5622_v60 = vpop.permute.xlu0 %592  ;;  %v669_v20 = vsel %vm668_vm1, %v665_v12, %v610_v6  ;;  %983 = vperm.xlu0 %4088, %v865_v57  }
 0x12b   : > { %v596_v36 = vsel %vm594_vm11, %v591_v54, %v5622_v60  ;;  %v667_v46 = vsel %vm664_vm15, %v663_v44, %v5622_v60 }
 0x12c   : > { %v666_v42 = vsel %vm664_vm15, %v662_v40, %v596_v36  ;;  %vm835_vm15 = vcmp.lt.s32.totalorder %v5564_v16, 512 }
 0x130   : > { %v619_v61 = vpop.permute.xlu1 %618  ;;  %v636_v0 = vpop.permute.xlu2 %635 }
 0x131   : > { %v625_v9 = vsel %vm624_vm14, %v619_v61, %v621_v59 }
 0x132   : > { %v608_v1 = vpop.permute.xlu0 %607  ;;  %v673_v23 = vsel %vm672_vm2, %v669_v20, %v625_v9  ;;  %v830_v20 = vadd.s32 %v5548_v8, %v5572_v22 }
 0x133   : > { %v611_v37 = vsel %vm609_vm12, %v606_v56, %v608_v1  ;;  %v671_v48 = vsel %vm668_vm1, %v667_v46, %v608_v1  ;;  %v564_v56 = vld [vmem:[%s9087_s4 + $0x8] sm:$0xff] }
 0x134   : > { %v670_v45 = vsel %vm668_vm1, %v666_v42, %v611_v37  ;;  %691 = vperm.xlu2 %4087, %v564_v56   ;;  %vm5721_vm1 = vmand %vm831_vm8, %vm834_vm9  ;;  %vm1104_vm8 = vcmp.ge.s32.totalorder %v5567_v17, 0  ;;  %vm1107_vm9 = vcmp.lt.s32.totalorder %v5567_v17, 512 }
 0x138   : > { %v634_v2 = vpop.permute.xlu1 %633  ;;  %v651_v24 = vpop.permute.xlu2 %650 }
 0x139   : > { %v640_v19 = vsel %vm639_vm0, %v634_v2, %v636_v0 }
 0x13a   : > { %v623_v21 = vpop.permute.xlu0 %622  ;;  %v677_v27 = vsel %vm676_vm4, %v673_v23, %v640_v19 }
 0x13b   : > { %v626_v41 = vsel %vm624_vm14, %v621_v59, %v623_v21  ;;  %v675_v51 = vsel %vm672_vm2, %v671_v48, %v623_v21 }
 0x13c   : > { %v674_v47 = vsel %vm672_vm2, %v670_v45, %v626_v41  ;;  %978 = vperm.xlu2 %4087, %v864_v58   ;;  %vm5727_vm2 = vmand %vm832_vm13, %vm835_vm15  ;;  %vm1103_vm13 = vcmp.ge.s32.totalorder %v5558_v14, 0  ;;  %vm1106_vm15 = vcmp.lt.s32.totalorder %v5558_v14, 512 }
 0x140   : > { %v649_v25 = vpop.permute.xlu1 %648 }
 0x141   : > { %v655_v26 = vsel %vm654_vm3, %v649_v25, %v651_v24 }
 0x142   : > { %v681_v30 = vsel %vm680_vm5, %v677_v27, %v655_v26  ;;  %v638_v31 = vpop.permute.xlu0 %637 }
 0x143   : > { %3893 = vmatpush.msk.msra.mxu0 %vm717_vm6, %v681_v30  ;;  %3985 = vmatpush.msk.msra.mxu2 %vm717_vm6, %v681_v30  ;;  %v641_v43 = vsel %vm639_vm0, %v636_v0, %v638_v31  ;;  %v679_v53 = vsel %vm676_vm4, %v675_v51, %v638_v31 }
 0x144   : > { %3897 = vmatmul.msk.f32.vlgmr.msra.gmra.mxu2 %vm704_vm7, %v562_v28  ;;  %3894 = vmatmul.msk.f32.vlgmr.msra.gmra.mxu0 %vm704_vm7, %v559_v29  ;;  %v678_v50 = vsel %vm676_vm4, %v674_v47, %v641_v43  ;;  %vm833_vm4 = vcmp.ge.s32.totalorder %v830_v20, 0 }
 0x148   : > { %v687_v60 = vpop.permute.xlu1 %686 }
 0x14a   : > { %v653_v33 = vpop.permute.xlu0 %652 }
 0x14b   : > { %v656_v49 = vsel %vm654_vm3, %v651_v24, %v653_v33  ;;  %v683_v54 = vsel %vm680_vm5, %v679_v53, %v653_v33 }
 0x14c   : > { %3895 = vmatmul.msk.f32.gmra.mxu0 %vm704_vm7, %v560_v34  ;;  %v682_v52 = vsel %vm680_vm5, %v678_v50, %v656_v49  ;;  %vm836_vm5 = vcmp.lt.s32.totalorder %v830_v20, 512 }
 0x14d   : > { %3898 = vmatpush.msk.msra.mxu1 %vm717_vm6, %v682_v52  ;;  %3986 = vmatpush.msk.msrb.mxu2 %vm717_vm6, %v682_v52 }
 0x14e   : > { %3902 = vmatmul.msk.f32.vlgmr.msrb.gmra.mxu2 %vm704_vm7, %v562_v28  ;;  %3899 = vmatmul.msk.f32.vlgmr.msra.gmra.mxu1 %vm704_vm7, %v559_v29 }
 0x14f   : > { %3903 = vmatpush.msk.msra.mxu2 %vm717_vm6, %v683_v54  ;;  %vm5752_vm6 = vmand %vm833_vm4, %vm836_vm5 }
 0x150   : > { %v702_v45 = vpop.permute.xlu1 %701  ;;  %vm5946_vm4 = vmand %vm1104_vm8, %vm1107_vm9  ;;  %vm1466_vm8 = vcmask 990208   ;;  %vm2380_vm9 = vcmask 916480  }
 0x151   : > { %vm5956_vm5 = vmand %vm1103_vm13, %vm1106_vm15  ;;  %vm1679_vm13 = vcmask 982016   ;;  %vm2895_vm15 = vcmask 850944  }
 0x152   : > { %v697_v23 = vpop.permute.xlu0 %696 }
 0x154   : > { %3896 = vmatmul.msk.f32.gmra.mxu0 %vm704_vm7, %v561_v35 }
 0x156   : > { %3904 = vmatmul.msk.f32.vlgmr.msra.gmra.mxu2 %vm704_vm7, %v559_v29  ;;  %3900 = vmatmul.msk.f32.gmra.mxu1 %vm704_vm7, %v560_v34 }
 0x15e   : > { %3905 = vmatmul.msk.f32.gmra.mxu2 %vm704_vm7, %v560_v34  ;;  %3901 = vmatmul.msk.f32.gmra.mxu1 %vm704_vm7, %v561_v35 }
 0x166   : > { %3906 = vmatmul.msk.f32.gmra.mxu2 %vm704_vm7, %v561_v35 }
 0x16e   : > { %3907 = vmatmul.msk.f32.gmra.mxu2 %vm704_vm7, %v562_v28  ;;  %vm986_vm7 = vcmask 785408  }
 0x18e   : > { %v692_v9 = vpop.permute.xlu2 %691 }
 0x1c1   : > { %v744_v59 = vpop.f32.mrf.mxu0 }
 0x1c2   : > { %v5714_v61 = vadd.f32 %v744_v59, %v687_v60 }
 0x1c4   : > { %v9101_v0 = vmax.f32 %v5714_v61, 0.0 }
 0x1c6   : > { %v846_v13 = vsel %vm5721_vm1, %v9101_v0, 0.0 }
 0x1c7   : > { %v753_v62 = vpop.f32.mrf.mxu2 }
 0x1c8   : > { %v5784_v33 = vadd.f32 %v753_v62, %v702_v45 }
 0x1c9   : > { %v747_v63 = vpop.f32.mrf.mxu0 }
 0x1ca   : > { %v5744_v21 = vadd.f32 %v747_v63, %v692_v9  ;;  %v823_v51 = vmax.f32 %v5784_v33, 0.0 }
 0x1cb   : > { %v773_v1 = vpop.f32.mrf.mxu1 }
 0x1cc   : > { %v5725_v3 = vadd.f32 %v773_v1, %v687_v60  ;;  %v817_v25 = vmax.f32 %v5744_v21, 0.0  ;;  %v855_v53 = vsel %vm5721_vm1, %v823_v51, 0.0  ;;  %v859_v21 = vld [vmem:[%s9088_s5 + $0x8] sm:$0xff] }
 0x1ce   : > { %v815_v5 = vmax.f32 %v5725_v3, 0.0  ;;  %v849_v8 = vsel %vm5721_vm1, %v817_v25, 0.0  ;;  %v860_v3 = vld [vmem:[%s9088_s5 + $0x10] sm:$0xff] }
 0x1d0   : > { %v847_v16 = vsel %vm5727_vm2, %v815_v5, 0.0 }
 0x1d1   : > { %v782_v6 = vpop.f32.mrf.mxu2  ;;  %v4094_v7 = vpack.i.bf16 %v847_v16, %v846_v13  ;;  %v750_v19 = vpop.f32.mrf.mxu0 }
 0x1d2   : > { %v5746_v24 = vadd.f32 %v750_v19, %v697_v23  ;;  %v5805_v54 = vadd.f32 %v782_v6, %v702_v45  ;;  %v5828_v13 = vpop.permute.xlu2 %978 }
 0x1d3   : > { %v776_v12 = vpop.f32.mrf.mxu1  ;;  %4095 = vrot.lane.b32.xlu0 %v4094_v7, %s5363_s7  ;;  %4090 = vrot.lane.b32.xlu2 %v4094_v7, %s5364_s20  ;;  %v5834_v7 = vpop.permute.xlu0 %968 }
 0x1d4   : > { %v820_v28 = vmax.f32 %v5746_v24, 0.0  ;;  %v5763_v34 = vadd.f32 %v776_v12, %v692_v9  ;;  %v824_v58 = vmax.f32 %v5805_v54, 0.0  ;;  %v9421_v24 = vmax.f32 %v5714_v61, 0.0  ;;  %v861_v61 = vld [vmem:[%s9088_s5 + $0x18] sm:$0xff] }
 0x1d6   : > { %v852_v37 = vsel %vm5721_vm1, %v820_v28, 0.0  ;;  %v818_v43 = vmax.f32 %v5763_v34, 0.0  ;;  %v856_v62 = vsel %vm5727_vm2, %v824_v58, 0.0  ;;  %v9428_v34 = vmov 0 }
 0x1d7   : > { %v9429_v34 = vsel %vm5956_vm5, 4294967295, %v9428_v34 }
 0x1d8   : > { %v850_v47 = vsel %vm5727_vm2, %v818_v43, 0.0  ;;  %9430 = vst [vmem:[#allocation23_spill] sm:$0xff] %v9429_v34 }
 0x1d9   : > { %v802_v26 = vpop.f32.mrf.mxu2 }
 0x1da   : > { %v5749_v27 = vadd.f32 %v802_v26, %v687_v60 }
 0x1db   : > { %v779_v30 = vpop.f32.mrf.mxu1  ;;  %v5838_v19 = vpop.permute.xlu0 %983 }
 0x1dc   : > { %v816_v31 = vmax.f32 %v5749_v27, 0.0  ;;  %v5761_v32 = vadd.f32 %v779_v30, %v697_v23 }
 0x1de   : > { %v848_v36 = vsel %vm5752_vm6, %v816_v31, 0.0  ;;  %v821_v38 = vmax.f32 %v5761_v32, 0.0 }
 0x1df   : > { %v4109_v39 = vpack.i.bf16 %v849_v8, %v848_v36 }
 0x1e0   : > { %v853_v40 = vsel %vm5727_vm2, %v821_v38, 0.0 }
 0x1e1   : > { %v805_v41 = vpop.f32.mrf.mxu2  ;;  %4110 = vrot.lane.b32.xlu1 %v4109_v39, %s5364_s20  ;;  %v4099_v42 = vpack.i.bf16 %v853_v40, %v852_v37 }
 0x1e2   : > { %v5780_v44 = vadd.f32 %v805_v41, %v692_v9  ;;  %v5836_v9 = vpop.permute.xlu1 %973 }
 0x1e3   : > { %4100 = vrot.lane.b32.xlu0 %v4099_v42, %s5364_s20 }
 0x1e4   : > { %v819_v46 = vmax.f32 %v5780_v44, 0.0  ;;  %v9432_v44 = vmov 0 }
 0x1e6   : > { %v851_v48 = vsel %vm5752_vm6, %v819_v46, 0.0 }
 0x1e7   : > { %v4119_v49 = vpack.i.bf16 %v851_v48, %v850_v47 }
 0x1e9   : > { %v808_v50 = vpop.f32.mrf.mxu2  ;;  %4115 = vrot.lane.b32.xlu1 %v4109_v39, %s5363_s7  ;;  %4120 = vrot.lane.b32.xlu2 %v4119_v49, %s5364_s20 }
 0x1ea   : > { %v5797_v52 = vadd.f32 %v808_v50, %v697_v23 }
 0x1eb   : > { %4105 = vrot.lane.b32.xlu0 %v4099_v42, %s5363_s7 }
 0x1ec   : > { %v822_v35 = vmax.f32 %v5797_v52, 0.0 }
 0x1ee   : > { %v854_v55 = vsel %vm5752_vm6, %v822_v35, 0.0 }
 0x1ef   : > { %v4129_v56 = vpack.i.bf16 %v855_v53, %v854_v55 }
 0x1f1   : > { %v811_v57 = vpop.f32.mrf.mxu2  ;;  %4125 = vrot.lane.b32.xlu2 %v4119_v49, %s5363_s7  ;;  %4130 = vrot.lane.b32.xlu1 %v4129_v56, %s5364_s20 }
 0x1f2   : > { %v5814_v59 = vadd.f32 %v811_v57, %v702_v45 }
 0x1f4   : > { %v825_v60 = vmax.f32 %v5814_v59, 0.0 }
 0x1f6   : > { %v857_v63 = vsel %vm5752_vm6, %v825_v60, 0.0 }
 0x1f7   : > { %v4139_v1 = vpack.i.bf16 %v857_v63, %v856_v62 }
 0x1f9   : > { %4140 = vrot.lane.b32.xlu2 %v4139_v1, %s5364_s20  ;;  %4135 = vrot.lane.b32.xlu1 %v4129_v56, %s5363_s7 }
 0x201   : > { %4145 = vrot.lane.b32.xlu2 %v4139_v1, %s5363_s7 }
 0x22d   : > { %v5830_v16 = vpop.permute.xlu2 %4090 }
 0x243   : > { %v5832_v6 = vpop.permute.xlu2 %4120 }
 0x245   : > { %v4096_v26 = vpop.permute.xlu0 %4095 }
 0x246   : > { %v4098_v1 = vunpack.i.h.bf16 %v4096_v26 }
 0x24b   : > { %v4126_v12 = vpop.permute.xlu2 %4125 }
 0x24c   : > { %v4127_v45 = vunpack.i.l.bf16 %v4126_v12  ;;  %v4128_v48 = vunpack.i.h.bf16 %v4126_v12 }
 0x24e   : > { %v949_v12 = vsel %vm594_vm11, %v4127_v45, %v4128_v48 }
 0x253   : > { %v5840_v20 = vpop.permute.xlu1 %4110  ;;  %v4141_v23 = vpop.permute.xlu2 %4140 }
 0x255   : > { %v4101_v40 = vpop.permute.xlu0 %4100 }
 0x256   : > { %v4103_v0 = vunpack.i.h.bf16 %v4101_v40 }
 0x25b   : > { %v4116_v30 = vpop.permute.xlu1 %4115  ;;  %v4146_v8 = vpop.permute.xlu2 %4145 }
 0x25c   : > { %v4147_v36 = vunpack.i.l.bf16 %v4146_v8  ;;  %v4148_v37 = vunpack.i.h.bf16 %v4146_v8  ;;  %v4118_v56 = vunpack.i.h.bf16 %v4116_v30  ;;  %v4117_v63 = vunpack.i.l.bf16 %v4116_v30 }
 0x25d   : > { %v4106_v42 = vpop.permute.xlu0 %4105  ;;  %v4097_v8 = vunpack.i.l.bf16 %v4096_v26  ;;  %v4122_v26 = vunpack.i.l.bf16 %v5832_v6 }
 0x25e   : > { %1061 = vmatpush.msrb.mxu1 %v4148_v37  ;;  %v953_v39 = vsel %vm594_vm11, %v4147_v36, %v4148_v37  ;;  %v4108_v49 = vunpack.i.h.bf16 %v4106_v42  ;;  %v4107_v50 = vunpack.i.l.bf16 %v4106_v42  ;;  %v4142_v37 = vunpack.i.l.bf16 %v4141_v23 }
 0x25f   : > { %1032 = vmatpush.msrb.mxu0 %v953_v39  ;;  %v4143_v42 = vunpack.i.h.bf16 %v4141_v23  ;;  %v947_v30 = vsel %vm594_vm11, %v4098_v1, %v4117_v63 }
 0x260   : > { %v950_v39 = vsel %vm594_vm11, %v4107_v50, %v4108_v49  ;;  %v4113_v50 = vunpack.i.h.bf16 %v5840_v20 }
 0x261   : > { %v909_v23 = vsel %vm579_vm10, %v4142_v37, %v4143_v42 }
 0x263   : > { %v4131_v41 = vpop.permute.xlu1 %4130 }
 0x26b   : > { %v4136_v47 = vpop.permute.xlu1 %4135 }
 0x26c   : > { %v4138_v53 = vunpack.i.h.bf16 %v4136_v47  ;;  %v4137_v55 = vunpack.i.l.bf16 %v4136_v47  ;;  %v4133_v47 = vunpack.i.h.bf16 %v4131_v41 }
 0x26e   : > { %1062 = vmatpush.msrb.mxu1 %v4137_v55  ;;  %v952_v57 = vsel %vm594_vm11, %v4138_v53, %v4147_v36  ;;  %v951_v62 = vsel %vm594_vm11, %v4108_v49, %v4137_v55  ;;  %v948_v36 = vsel %vm594_vm11, %v4118_v56, %v4127_v45  ;;  %v4132_v53 = vunpack.i.l.bf16 %v4131_v41 }
 0x26f   : > { %1003 = vmatpush.msra.mxu3 %v952_v57  ;;  %1033 = vmatpush.msrb.mxu0 %v951_v62  ;;  %v4102_v55 = vunpack.i.l.bf16 %v4101_v40  ;;  %v946_v49 = vsel %vm594_vm11, %v4097_v8, %v4098_v1  ;;  %v908_v45 = vsel %vm579_vm10, %v4133_v47, %v4142_v37  ;;  %v4112_v56 = vunpack.i.l.bf16 %v5840_v20 }
 0x270   : > { %1063 = vmatpush.msrb.mxu1 %v4128_v48  ;;  %v4123_v48 = vunpack.i.h.bf16 %v5832_v6  ;;  %v907_v41 = vsel %vm579_vm10, %v4103_v0, %v4132_v53  ;;  %v4093_v40 = vunpack.i.h.bf16 %v5830_v16  ;;  %v4092_v57 = vunpack.i.l.bf16 %v5830_v16 }
 0x271   : > { %1004 = vmatpush.msra.mxu3 %v950_v39  ;;  %1034 = vmatpush.msrb.mxu0 %v949_v12  ;;  %v906_v6 = vsel %vm579_vm10, %v4102_v55, %v4103_v0  ;;  %v858_v0 = vld [vmem:[%s9088_s5] sm:$0xff] }
 0x272   : > { %1064 = vmatpush.msrb.mxu1 %v4117_v63  ;;  %v905_v62 = vsel %vm579_vm10, %v4122_v26, %v4123_v48  ;;  %v904_v63 = vsel %vm579_vm10, %v4113_v50, %v4122_v26  ;;  %v903_v1 = vsel %vm579_vm10, %v4093_v40, %v4112_v56  ;;  %v902_v16 = vsel %vm579_vm10, %v4092_v57, %v4093_v40 }
 0x273   : > { %1005 = vmatpush.msra.mxu3 %v948_v36  ;;  %1035 = vmatpush.msrb.mxu0 %v947_v30 }
 0x274   : > { %1065 = vmatpush.msrb.mxu1 %v4143_v42 }
 0x275   : > { %1006 = vmatpush.msra.mxu3 %v946_v49  ;;  %1036 = vmatpush.msrb.mxu0 %v909_v23 }
 0x276   : > { %1066 = vmatpush.msrb.mxu1 %v4132_v53 }
 0x277   : > { %1007 = vmatpush.msra.mxu3 %v908_v45  ;;  %1037 = vmatpush.msrb.mxu0 %v907_v41 }
 0x278   : > { %1067 = vmatpush.msrb.mxu1 %v4123_v48 }
 0x279   : > { %1008 = vmatpush.msra.mxu3 %v906_v6  ;;  %1038 = vmatpush.msrb.mxu0 %v905_v62 }
 0x27a   : > { %1068 = vmatpush.msrb.mxu1 %v4112_v56 }
 0x27b   : > { %1009 = vmatpush.msra.mxu3 %v904_v63  ;;  %1039 = vmatpush.msrb.mxu0 %v903_v1 }
 0x27c   : > { %3925 = vmatpush.msk.msrb.mxu1 %vm5752_vm6, %v825_v60 }
 0x27d   : > { %1010 = vmatpush.msra.mxu3 %v902_v16  ;;  %3917 = vmatpush.msk.msrb.mxu0 %vm5727_vm2, %v824_v58 }
 0x27e   : > { %3926 = vmatpush.msk.msrb.mxu1 %vm5752_vm6, %v822_v35 }
 0x27f   : > { %3909 = vmatpush.msk.msra.mxu3 %vm5721_vm1, %v823_v51  ;;  %3918 = vmatpush.msk.msrb.mxu0 %vm5727_vm2, %v821_v38 }
 0x280   : > { %3927 = vmatpush.msk.msrb.mxu1 %vm5752_vm6, %v819_v46 }
 0x281   : > { %3910 = vmatpush.msk.msra.mxu3 %vm5721_vm1, %v820_v28  ;;  %3919 = vmatpush.msk.msrb.mxu0 %vm5727_vm2, %v818_v43 }
 0x282   : > { %3928 = vmatpush.msk.msrb.mxu1 %vm5752_vm6, %v816_v31  ;;  %v9423_v31 = vmov 0 }
 0x283   : > { %3911 = vmatpush.msk.msra.mxu3 %vm5721_vm1, %v817_v25  ;;  %3920 = vmatpush.msk.msrb.mxu0 %vm5727_vm2, %v815_v5  ;;  %v1102_v5 = vadd.s32 %v5552_v11, %v5572_v22  ;;  %v9424_v31 = vsel %vm5946_vm4, 4294967295, %v9423_v31 }
 0x284   : > { %3929 = vmatmul.msk.f32.vlgmr.msrb.gmra.mxu1 %vm986_vm7, %v858_v0  ;;  %3921 = vmatmul.msk.f32.vlgmr.msrb.gmra.mxu0 %vm986_vm7, %v858_v0  ;;  %9425 = vst [vmem:[#allocation20_spill] sm:$0xff] %v9424_v31 }
 0x285   : > { %3912 = vmatpush.msk.msra.mxu3 %vm5721_vm1, %v9421_v24  ;;  %vm1105_vm1 = vcmp.ge.s32.totalorder %v1102_v5, 0  ;;  %vm1108_vm2 = vcmp.lt.s32.totalorder %v1102_v5, 512 }
 0x286   : > { %3913 = vmatmul.msk.f32.vlgmr.msra.gmra.mxu3 %vm986_vm7, %v858_v0  ;;  %vm5965_vm6 = vmand %vm1105_vm1, %vm1108_vm2 }
 0x287   : > { %v9433_v44 = vsel %vm5965_vm6, 4294967295, %v9432_v44 }
 0x288   : > { %9434 = vst [vmem:[#allocation25_spill] sm:$0xff] %v9433_v44 }
 0x28c   : > { %3930 = vmatmul.msk.f32.gmra.mxu1 %vm986_vm7, %v859_v21  ;;  %3922 = vmatmul.msk.f32.gmra.mxu0 %vm986_vm7, %v859_v21 }
 0x28e   : > { %3914 = vmatmul.msk.f32.gmra.mxu3 %vm986_vm7, %v859_v21 }
 0x294   : > { %3931 = vmatmul.msk.f32.gmra.mxu1 %vm986_vm7, %v860_v3  ;;  %3923 = vmatmul.msk.f32.gmra.mxu0 %vm986_vm7, %v860_v3 }
 0x296   : > { %3915 = vmatmul.msk.f32.gmra.mxu3 %vm986_vm7, %v860_v3 }
 0x29c   : > { %3932 = vmatmul.msk.f32.gmra.mxu1 %vm986_vm7, %v861_v61  ;;  %3924 = vmatmul.msk.f32.gmra.mxu0 %vm986_vm7, %v861_v61 }
 0x29e   : > { %3916 = vmatmul.msk.f32.gmra.mxu3 %vm986_vm7, %v861_v61 }
 0x301   : > { %v1074_v2 = vpop.f32.mrf.mxu1  ;;  %v1045_v4 = vpop.f32.mrf.mxu0 }
 0x302   : > { %v5939_v25 = vadd.f32 %v1045_v4, %v5834_v7  ;;  %v5971_v33 = vadd.f32 %v1074_v2, %v5834_v7 }
 0x304   : > { %9422 = vst [vmem:[#allocation19_spill] sm:$0xff] %v5939_v25  ;;  %v9103_v29 = vmax.f32 %v5939_v25, 0.0 }
 0x305   : > { %9435 = vst [vmem:[#allocation26_spill] sm:$0xff] %v5971_v33 }
 0x306   : > { %v1119_v51 = vsel %vm5946_vm4, %v9103_v29, 0.0 }
 0x309   : > { %v1077_v27 = vpop.f32.mrf.mxu1  ;;  %v1016_v28 = vpop.f32.mrf.mxu3 }
 0x30a   : > { %v5951_v11 = vadd.f32 %v1077_v27, %v5836_v9  ;;  %v5954_v32 = vadd.f32 %v1016_v28, %v5834_v7  ;;  %v1048_v17 = vpop.f32.mrf.mxu0  ;;  %v9102_v7 = vmax.f32 %v5971_v33, 0.0 }
 0x30b   : > { %v5961_v14 = vadd.f32 %v1048_v17, %v5836_v9 }
 0x30c   : > { %9426 = vst [vmem:[#allocation21_spill] sm:$0xff] %v5951_v11  ;;  %v9104_v38 = vmax.f32 %v5951_v11, 0.0  ;;  %v9110_v43 = vmax.f32 %v5954_v32, 0.0  ;;  %v1120_v37 = vsel %vm5965_vm6, %v9102_v7, 0.0 }
 0x30d   : > { %9427 = vst [vmem:[#allocation22_spill] sm:$0xff] %v5954_v32  ;;  %v9105_v46 = vmax.f32 %v5961_v14, 0.0 }
 0x30e   : > { %9431 = vst [vmem:[#allocation24_spill] sm:$0xff] %v5961_v14  ;;  %v1123_v52 = vsel %vm5965_vm6, %v9104_v38, 0.0  ;;  %v1118_v35 = vsel %vm5956_vm5, %v9110_v43, 0.0 }
 0x30f   : > { %v1122_v54 = vsel %vm5946_vm4, %v9105_v46, 0.0  ;;  %v5989_v58 = vpack.i.bf16 %v1119_v51, %v1118_v35 }
 0x310   : > { %v5991_v59 = vpack.i.bf16 %v1123_v52, %v1122_v54 }
 0x311   : > { %v1019_v60 = vpop.f32.mrf.mxu3  ;;  %4195 = vrot.lane.b32.xlu1 %v5989_v58, %s5364_s20  ;;  %v1080_v23 = vpop.f32.mrf.mxu1 }
 0x312   : > { %4240 = vrot.lane.b32.xlu0 %v5991_v59, %s5364_s20  ;;  %v5999_v20 = vadd.f32 %v1019_v60, %v5836_v9  ;;  %v1051_v42 = vpop.f32.mrf.mxu0  ;;  %v6102_v1 = vadd.f32 %v1080_v23, %v5828_v13 }
 0x313   : > { %v6022_v36 = vadd.f32 %v1051_v42, %v5828_v13 }
 0x314   : > { %9436 = vst [vmem:[#allocation27_spill] sm:$0xff] %v5999_v20  ;;  %v9111_v8 = vmax.f32 %v5999_v20, 0.0  ;;  %v9106_v0 = vmax.f32 %v6102_v1, 0.0 }
 0x315   : > { %9438 = vst [vmem:[#allocation29_spill] sm:$0xff] %v6022_v36  ;;  %v9107_v53 = vmax.f32 %v6022_v36, 0.0 }
 0x316   : > { %v1121_v39 = vsel %vm5956_vm5, %v9111_v8, 0.0  ;;  %9444 = vst [vmem:[#allocation35_spill] sm:$0xff] %v6102_v1  ;;  %v6123_v24 = vsel %vm5965_vm6, %v9106_v0, 0.0 }
 0x317   : > { %v6010_v12 = vpack.i.bf16 %v1121_v39, %v1120_v37  ;;  %v1125_v55 = vsel %vm5946_vm4, %v9107_v53, 0.0  ;;  %9446 = vst [vmem:[#allocation37_spill] sm:$0xff] %v6123_v24 }
 0x319   : > { %v1022_v47 = vpop.f32.mrf.mxu3  ;;  %4150 = vrot.lane.b32.xlu2 %v6010_v12, %s5364_s20  ;;  %4200 = vrot.lane.b32.xlu1 %v5989_v58, %s5363_s7  ;;  %v1083_v48 = vpop.f32.mrf.mxu1 }
 0x31a   : > { %4245 = vrot.lane.b32.xlu0 %v5991_v59, %s5363_s7  ;;  %v6019_v9 = vadd.f32 %v1022_v47, %v5828_v13  ;;  %v1054_v50 = vpop.f32.mrf.mxu0  ;;  %v6073_v45 = vadd.f32 %v1083_v48, %v5838_v19 }
 0x31b   : > { %v6076_v41 = vadd.f32 %v1054_v50, %v5838_v19 }
 0x31c   : > { %9437 = vst [vmem:[#allocation28_spill] sm:$0xff] %v6019_v9  ;;  %v9112_v30 = vmax.f32 %v6019_v9, 0.0  ;;  %v9108_v56 = vmax.f32 %v6073_v45, 0.0 }
 0x31d   : > { %9439 = vst [vmem:[#allocation30_spill] sm:$0xff] %v6073_v45  ;;  %v9109_v40 = vmax.f32 %v6076_v41, 0.0 }
 0x31e   : > { %v1124_v26 = vsel %vm5956_vm5, %v9112_v30, 0.0  ;;  %9440 = vst [vmem:[#allocation31_spill] sm:$0xff] %v6076_v41  ;;  %v6093_v62 = vsel %vm5965_vm6, %v9108_v56, 0.0 }
 0x31f   : > { %v6040_v49 = vpack.i.bf16 %v1125_v55, %v1124_v26  ;;  %9442 = vst [vmem:[#allocation33_spill] sm:$0xff] %v6093_v62  ;;  %v6099_v63 = vsel %vm5946_vm4, %v9109_v40, 0.0 }
 0x320   : > { %9443 = vst [vmem:[#allocation34_spill] sm:$0xff] %v6099_v63 }
 0x321   : > { %4155 = vrot.lane.b32.xlu2 %v6010_v12, %s5363_s7  ;;  %4205 = vrot.lane.b32.xlu1 %v5989_v58, %s5365_s23  ;;  %v1025_v57 = vpop.f32.mrf.mxu3 }
 0x322   : > { %4250 = vrot.lane.b32.xlu0 %v5991_v59, %s5365_s23  ;;  %v6087_v6 = vadd.f32 %v1025_v57, %v5838_v19  ;;  %v4374_v19 = vpack.i.bf16 %v6093_v62, %v6099_v63 }
 0x324   : > { %9441 = vst [vmem:[#allocation32_spill] sm:$0xff] %v6087_v6  ;;  %v9113_v16 = vmax.f32 %v6087_v6, 0.0 }
 0x326   : > { %v6117_v13 = vsel %vm5956_vm5, %v9113_v16, 0.0 }
 0x327   : > { %9445 = vst [vmem:[#allocation36_spill] sm:$0xff] %v6117_v13  ;;  %v4284_v21 = vpack.i.bf16 %v6117_v13, %v6123_v24 }
 0x329   : > { %4160 = vrot.lane.b32.xlu2 %v6010_v12, %s5365_s23  ;;  %4210 = vrot.lane.b32.xlu1 %v5989_v58, %s5366_s28 }
 0x32a   : > { %4255 = vrot.lane.b32.xlu0 %v5991_v59, %s5366_s28 }
 0x331   : > { %4165 = vrot.lane.b32.xlu2 %v6010_v12, %s5366_s28  ;;  %4215 = vrot.lane.b32.xlu1 %v5989_v58, %s5367_s16 }
 0x332   : > { %4260 = vrot.lane.b32.xlu0 %v5991_v59, %s5367_s16 }
 0x339   : > { %4170 = vrot.lane.b32.xlu2 %v6010_v12, %s5367_s16  ;;  %4220 = vrot.lane.b32.xlu1 %v5989_v58, %s5368_s25 }
 0x33a   : > { %4265 = vrot.lane.b32.xlu0 %v5991_v59, %s5368_s25 }
 0x341   : > { %4175 = vrot.lane.b32.xlu2 %v6010_v12, %s5368_s25  ;;  %4225 = vrot.lane.b32.xlu1 %v5989_v58, %s5370_s27 }
 0x342   : > { %4270 = vrot.lane.b32.xlu0 %v5991_v59, %s5370_s27 }
 0x349   : > { %4180 = vrot.lane.b32.xlu2 %v6010_v12, %s5370_s27  ;;  %4230 = vrot.lane.b32.xlu1 %v5989_v58, %s5371_s15 }
 0x34a   : > { %4275 = vrot.lane.b32.xlu0 %v5991_v59, %s5371_s15 }
 0x351   : > { %4185 = vrot.lane.b32.xlu2 %v6010_v12, %s5371_s15  ;;  %4235 = vrot.lane.b32.xlu1 %v5989_v58, %s5372_s17 }
 0x352   : > { %4280 = vrot.lane.b32.xlu0 %v5991_v59, %s5372_s17 }
 0x359   : > { %4190 = vrot.lane.b32.xlu2 %v6010_v12, %s5372_s17  ;;  %4330 = vrot.lane.b32.xlu1 %v6040_v49, %s5364_s20 }
 0x35a   : > { %4375 = vrot.lane.b32.xlu0 %v4374_v19, %s5364_s20 }
 0x361   : > { %4285 = vrot.lane.b32.xlu2 %v4284_v21, %s5364_s20  ;;  %4335 = vrot.lane.b32.xlu1 %v6040_v49, %s5363_s7 }
 0x362   : > { %4380 = vrot.lane.b32.xlu0 %v4374_v19, %s5363_s7 }
 0x369   : > { %4290 = vrot.lane.b32.xlu2 %v4284_v21, %s5363_s7  ;;  %4340 = vrot.lane.b32.xlu1 %v6040_v49, %s5365_s23 }
 0x36a   : > { %4385 = vrot.lane.b32.xlu0 %v4374_v19, %s5365_s23 }
 0x371   : > { %4295 = vrot.lane.b32.xlu2 %v4284_v21, %s5365_s23  ;;  %4345 = vrot.lane.b32.xlu1 %v6040_v49, %s5366_s28 }
 0x372   : > { %4390 = vrot.lane.b32.xlu0 %v4374_v19, %s5366_s28 }
 0x373   : > { %v4151_v3 = vpop.permute.xlu2 %4150 }
 0x374   : > { %v6170_v42 = vunpack.i.l.bf16 %v4151_v3 }
 0x376   : > { %9448 = vst [vmem:[#allocation39_spill] sm:$0xff] %v6170_v42 }
 0x379   : > { %4300 = vrot.lane.b32.xlu2 %v4284_v21, %s5366_s28  ;;  %4350 = vrot.lane.b32.xlu1 %v6040_v49, %s5367_s16 }
 0x37a   : > { %4395 = vrot.lane.b32.xlu0 %v4374_v19, %s5367_s16 }
 0x37b   : > { %v6143_v61 = vpop.permute.xlu2 %4155 }
 0x37c   : > { %v6202_v29 = vunpack.i.l.bf16 %v6143_v61  ;;  %v4158_v43 = vunpack.i.h.bf16 %v6143_v61 }
 0x37e   : > { %9454 = vst [vmem:[#allocation45_spill] sm:$0xff] %v6202_v29 }
 0x381   : > { %4305 = vrot.lane.b32.xlu2 %v4284_v21, %s5367_s16  ;;  %4355 = vrot.lane.b32.xlu1 %v6040_v49, %s5368_s25 }
 0x382   : > { %4400 = vrot.lane.b32.xlu0 %v4374_v19, %s5368_s25 }
 0x383   : > { %v6149_v2 = vpop.permute.xlu2 %4160  ;;  %v4196_v4 = vpop.permute.xlu1 %4195 }
 0x384   : > { %v4241_v5 = vpop.permute.xlu0 %4240  ;;  %v4198_v54 = vunpack.i.h.bf16 %v4196_v4  ;;  %v4197_v60 = vunpack.i.l.bf16 %v4196_v4  ;;  %v6248_v8 = vunpack.i.l.bf16 %v6149_v2  ;;  %v4163_v33 = vunpack.i.h.bf16 %v6149_v2 }
 0x385   : > { %v6165_v37 = vunpack.i.h.bf16 %v4241_v5  ;;  %v4242_v39 = vunpack.i.l.bf16 %v4241_v5 }
 0x386   : > { %v6178_v23 = vsel %vm579_vm10, %v4197_v60, %v4198_v54  ;;  %v6182_v48 = vsel %vm579_vm10, %v4198_v54, %v6170_v42  ;;  %v4153_v54 = vunpack.i.h.bf16 %v4151_v3  ;;  %9459 = vst [vmem:[#allocation50_spill] sm:$0xff] %v6248_v8 }
 0x387   : > { %9447 = vst [vmem:[#allocation38_spill] sm:$0xff] %v6165_v37  ;;  %v6186_v50 = vsel %vm579_vm10, %v4242_v39, %v6165_v37  ;;  %v6190_v57 = vpack.i.bf16 %v6182_v48, %v6178_v23 }
 0x388   : > { %9449 = vst [vmem:[#allocation40_spill] sm:$0xff] %v6178_v23  ;;  %v6194_v5 = vpack.i.bf16 %v6165_v37, %v6186_v50 }
 0x389   : > { %4310 = vrot.lane.b32.xlu2 %v4284_v21, %s5368_s25  ;;  %4360 = vrot.lane.b32.xlu1 %v6040_v49, %s5370_s27  ;;  %9450 = vst [vmem:[#allocation41_spill] sm:$0xff] %v6182_v48 }
 0x38a   : > { %4405 = vrot.lane.b32.xlu0 %v4374_v19, %s5370_s27  ;;  %9451 = vst [vmem:[#allocation42_spill] sm:$0xff] %v6186_v50 }
 0x38b   : > { %v6155_v27 = vpop.permute.xlu2 %4165  ;;  %v4201_v28 = vpop.permute.xlu1 %4200  ;;  %9452 = vst [vmem:[#allocation43_spill] sm:$0xff] %v6190_v57 }
 0x38c   : > { %v4246_v17 = vpop.permute.xlu0 %4245  ;;  %v4202_v4 = vunpack.i.l.bf16 %v4201_v28  ;;  %v6294_v25 = vunpack.i.l.bf16 %v6155_v27 }
 0x38d   : > { %v6196_v60 = vunpack.i.h.bf16 %v4246_v17  ;;  %v4247_v7 = vunpack.i.l.bf16 %v4246_v17  ;;  %v6213_v17 = vsel %vm579_vm10, %v4153_v54, %v4242_v39 }
 0x38e   : > { %9455 = vst [vmem:[#allocation46_spill] sm:$0xff] %v6213_v17  ;;  %v6228_v53 = vpack.i.bf16 %v6213_v17, %v6170_v42 }
 0x38f   : > { %9453 = vst [vmem:[#allocation44_spill] sm:$0xff] %v6196_v60  ;;  %v6224_v0 = vsel %vm594_vm11, %v4247_v7, %v6196_v60 }
 0x390   : > { %9457 = vst [vmem:[#allocation48_spill] sm:$0xff] %v6224_v0 }
 0x391   : > { %4315 = vrot.lane.b32.xlu2 %v4284_v21, %s5370_s27  ;;  %4365 = vrot.lane.b32.xlu1 %v6040_v49, %s5371_s15  ;;  %9465 = vst [vmem:[#allocation56_spill] sm:$0xff] %v6294_v25  ;;  %s3977_s27 = sshll.u32 %s5345_s21, 4 }
 0x392   : > { %4410 = vrot.lane.b32.xlu0 %v4374_v19, %s5371_s15 }
 0x393   : > { %v6161_v51 = vpop.permute.xlu2 %4170  ;;  %v4206_v52 = vpop.permute.xlu1 %4205 }
 0x394   : > { %v6163_v35 = vpop.permute.xlu0 %4250  ;;  %v4208_v39 = vunpack.i.h.bf16 %v4206_v52  ;;  %v4207_v54 = vunpack.i.l.bf16 %v4206_v52 }
 0x395   : > { %v4252_v40 = vunpack.i.l.bf16 %v6163_v35 }
 0x396   : > { %v6262_v18 = vsel %vm609_vm12, %v4207_v54, %v4208_v39  ;;  %v6266_v61 = vsel %vm609_vm12, %v4208_v39, %v6248_v8 }
 0x397   : > { %9462 = vst [vmem:[#allocation53_spill] sm:$0xff] %v6266_v61  ;;  %v6278_v22 = vpack.i.bf16 %v6266_v61, %v6262_v18 }
 0x399   : > { %4320 = vrot.lane.b32.xlu2 %v4284_v21, %s5371_s15  ;;  %4370 = vrot.lane.b32.xlu1 %v6040_v49, %s5372_s17 }
 0x39a   : > { %4415 = vrot.lane.b32.xlu0 %v4374_v19, %s5372_s17  ;;  %v4203_v19 = vunpack.i.h.bf16 %v4201_v28 }
 0x39b   : > { %v6173_v47 = vpop.permute.xlu2 %4175  ;;  %v4211_v26 = vpop.permute.xlu1 %4210 }
 0x39c   : > { %v6175_v55 = vpop.permute.xlu0 %4255  ;;  %v6220_v3 = vsel %vm594_vm11, %v4203_v19, %v6202_v29 }
 0x39d   : > { %9456 = vst [vmem:[#allocation47_spill] sm:$0xff] %v6220_v3  ;;  %v6285_v39 = vunpack.i.h.bf16 %v6175_v55  ;;  %v4257_v62 = vunpack.i.l.bf16 %v6175_v55  ;;  %v6305_v55 = vsel %vm609_vm12, %v4163_v33, %v4252_v40 }
 0x39f   : > { %9464 = vst [vmem:[#allocation55_spill] sm:$0xff] %v6285_v39  ;;  %v6316_v36 = vsel %vm624_vm14, %v4257_v62, %v6285_v39 }
 0x3a0   : > { %9469 = vst [vmem:[#allocation60_spill] sm:$0xff] %v6316_v36 }
 0x3a1   : > { %4325 = vrot.lane.b32.xlu2 %v4284_v21, %s5372_s17  ;;  %4420 = vrot.lane.b32.xlu1 %v6190_v57, %s5371_s15  ;;  %v6216_v21 = vsel %vm594_vm11, %v4202_v4, %v4203_v19  ;;  %v6236_v4 = vpack.i.bf16 %v6196_v60, %v6224_v0  ;;  %v6239_v19 = vunpack.i.h.bf16 %v6163_v35  ;;  %v6259_v35 = vsel %vm594_vm11, %v4158_v43, %v4247_v7 }
 0x3a2   : > { %4485 = vrot.lane.b32.xlu0 %v6194_v5, %s5371_s15  ;;  %v6232_v56 = vpack.i.bf16 %v6220_v3, %v6216_v21  ;;  %9461 = vst [vmem:[#allocation52_spill] sm:$0xff] %v6259_v35  ;;  %v6274_v10 = vpack.i.bf16 %v6259_v35, %v6202_v29  ;;  %v4213_v43 = vunpack.i.h.bf16 %v4211_v26  ;;  %v4212_v7 = vunpack.i.l.bf16 %v4211_v26 }
 0x3a3   : > { %v6206_v28 = vpop.permute.xlu2 %4180  ;;  %v6208_v38 = vpop.permute.xlu1 %4215  ;;  %9458 = vst [vmem:[#allocation49_spill] sm:$0xff] %v6239_v19  ;;  %v6270_v15 = vsel %vm609_vm12, %v4252_v40, %v6239_v19  ;;  %v6390_v60 = vunpack.i.l.bf16 %v6173_v47 }
 0x3a4   : > { %v6210_v46 = vpop.permute.xlu0 %4260  ;;  %9463 = vst [vmem:[#allocation54_spill] sm:$0xff] %v6270_v15  ;;  %v6282_v54 = vpack.i.bf16 %v6239_v19, %v6270_v15  ;;  %v6308_v1 = vsel %vm624_vm14, %v4212_v7, %v4213_v43  ;;  %v6312_v2 = vsel %vm624_vm14, %v4213_v43, %v6294_v25  ;;  %v4218_v33 = vunpack.i.h.bf16 %v6208_v38 }
 0x3a5   : > { %9467 = vst [vmem:[#allocation58_spill] sm:$0xff] %v6308_v1  ;;  %v6324_v44 = vpack.i.bf16 %v6312_v2, %v6308_v1  ;;  %v4217_v40 = vunpack.i.l.bf16 %v6208_v38  ;;  %v6330_v43 = vpack.i.bf16 %v6285_v39, %v6316_v36  ;;  %v6333_v7 = vunpack.i.h.bf16 %v6210_v46 }
 0x3a6   : > { %9468 = vst [vmem:[#allocation59_spill] sm:$0xff] %v6312_v2  ;;  %v4262_v45 = vunpack.i.l.bf16 %v6210_v46  ;;  %v4168_v2 = vunpack.i.h.bf16 %v6155_v27  ;;  %v6342_v1 = vunpack.i.l.bf16 %v6161_v51 }
 0x3a7   : > { %9470 = vst [vmem:[#allocation61_spill] sm:$0xff] %v6324_v44  ;;  %v6356_v41 = vsel %vm639_vm0, %v4217_v40, %v4218_v33 }
 0x3a8   : > { %9471 = vst [vmem:[#allocation62_spill] sm:$0xff] %v6333_v7  ;;  %v6353_v46 = vsel %vm624_vm14, %v4168_v2, %v4257_v62  ;;  %v6360_v27 = vsel %vm639_vm0, %v4218_v33, %v6342_v1  ;;  %v6364_v42 = vsel %vm639_vm0, %v4262_v45, %v6333_v7 }
 0x3a9   : > { %4480 = vrot.lane.b32.xlu2 %v6228_v53, %s5371_s15  ;;  %4425 = vrot.lane.b32.xlu1 %v6232_v56, %s5371_s15  ;;  %9472 = vst [vmem:[#allocation63_spill] sm:$0xff] %v6342_v1  ;;  %v6368_v48 = vpack.i.bf16 %v6353_v46, %v6294_v25  ;;  %v6372_v37 = vpack.i.bf16 %v6360_v27, %v6356_v41  ;;  %v4173_v25 = vunpack.i.h.bf16 %v6161_v51 }
 0x3aa   : > { %4495 = vrot.lane.b32.xlu0 %v6236_v4, %s5371_s15  ;;  %9475 = vst [vmem:[#allocation66_spill] sm:$0xff] %v6353_v46  ;;  %v6378_v33 = vpack.i.bf16 %v6333_v7, %v6364_v42 }
 0x3ab   : > { %v6252_v52 = vpop.permute.xlu2 %4185  ;;  %v6254_v30 = vpop.permute.xlu1 %4220  ;;  %9476 = vst [vmem:[#allocation67_spill] sm:$0xff] %v6356_v41 }
 0x3ac   : > { %9460 = vst [vmem:[#allocation51_spill] sm:$0xff] %v6252_v52  ;;  %v6256_v16 = vpop.permute.xlu0 %4265  ;;  %v4223_v62 = vunpack.i.h.bf16 %v6254_v30  ;;  %v4222_v2 = vunpack.i.l.bf16 %v6254_v30 }
 0x3ad   : > { %9477 = vst [vmem:[#allocation68_spill] sm:$0xff] %v6360_v27  ;;  %v6381_v40 = vunpack.i.h.bf16 %v6256_v16  ;;  %v4267_v29 = vunpack.i.l.bf16 %v6256_v16  ;;  %v6401_v16 = vsel %vm639_vm0, %v4173_v25, %v4262_v45 }
 0x3ae   : > { %9478 = vst [vmem:[#allocation69_spill] sm:$0xff] %v6364_v42  ;;  %v6404_v20 = vsel %vm654_vm3, %v4222_v2, %v4223_v62  ;;  %v6408_v51 = vsel %vm654_vm3, %v4223_v62, %v6390_v60  ;;  %v6416_v9 = vpack.i.bf16 %v6401_v16, %v6342_v1  ;;  %v4178_v1 = vunpack.i.h.bf16 %v6173_v47 }
 0x3af   : > { %9479 = vst [vmem:[#allocation70_spill] sm:$0xff] %v6381_v40  ;;  %v6412_v24 = vsel %vm654_vm3, %v4267_v29, %v6381_v40 }
 0x3b0   : > { %9480 = vst [vmem:[#allocation71_spill] sm:$0xff] %v6390_v60  ;;  %v6426_v62 = vpack.i.bf16 %v6381_v40, %v6412_v24 }
 0x3b1   : > { %4490 = vrot.lane.b32.xlu2 %v6274_v10, %s5371_s15  ;;  %4430 = vrot.lane.b32.xlu1 %v6278_v22, %s5371_s15  ;;  %9483 = vst [vmem:[#allocation74_spill] sm:$0xff] %v6401_v16 }
 0x3b2   : > { %4505 = vrot.lane.b32.xlu0 %v6282_v54, %s5371_s15  ;;  %9484 = vst [vmem:[#allocation75_spill] sm:$0xff] %v6404_v20 }
 0x3b3   : > { %v6298_v26 = vpop.permute.xlu2 %4190  ;;  %v6300_v11 = vpop.permute.xlu1 %4225  ;;  %9485 = vst [vmem:[#allocation76_spill] sm:$0xff] %v6408_v51 }
 0x3b4   : > { %9466 = vst [vmem:[#allocation57_spill] sm:$0xff] %v6298_v26  ;;  %v6302_v14 = vpop.permute.xlu0 %4270  ;;  %v6320_v26 = vpack.i.bf16 %v6305_v55, %v6248_v8  ;;  %v4228_v25 = vunpack.i.h.bf16 %v6300_v11  ;;  %v4227_v45 = vunpack.i.l.bf16 %v6300_v11  ;;  %v6438_v11 = vunpack.i.l.bf16 %v6206_v28 }
 0x3b5   : > { %9486 = vst [vmem:[#allocation77_spill] sm:$0xff] %v6412_v24  ;;  %v6429_v2 = vunpack.i.h.bf16 %v6302_v14 }
 0x3b6   : > { %9488 = vst [vmem:[#allocation79_spill] sm:$0xff] %v6438_v11  ;;  %v6450_v6 = vsel %vm1466_vm8, %v4227_v45, %v4228_v25  ;;  %v6454_v47 = vsel %vm1466_vm8, %v4228_v25, %v6438_v11 }
 0x3b7   : > { %9487 = vst [vmem:[#allocation78_spill] sm:$0xff] %v6429_v2  ;;  %v6466_v36 = vpack.i.bf16 %v6454_v47, %v6450_v6 }
 0x3b8   : > { %9490 = vst [vmem:[#allocation81_spill] sm:$0xff] %v6450_v6 }
 0x3b9   : > { %4500 = vrot.lane.b32.xlu2 %v6320_v26, %s5371_s15  ;;  %4435 = vrot.lane.b32.xlu1 %v6324_v44, %s5371_s15  ;;  %9491 = vst [vmem:[#allocation82_spill] sm:$0xff] %v6454_v47 }
 0x3ba   : > { %4515 = vrot.lane.b32.xlu0 %v6330_v43, %s5371_s15 }
 0x3bb   : > { %v6346_v38 = vpop.permute.xlu2 %4285  ;;  %v6348_v39 = vpop.permute.xlu1 %4230 }
 0x3bc   : > { %9473 = vst [vmem:[#allocation64_spill] sm:$0xff] %v6348_v39  ;;  %v6350_v31 = vpop.permute.xlu0 %4275  ;;  %v6561_v41 = vunpack.i.l.bf16 %v6346_v38 }
 0x3bd   : > { %9474 = vst [vmem:[#allocation65_spill] sm:$0xff] %v6350_v31 }
 0x3be   : > { %9498 = vst [vmem:[#allocation89_spill] sm:$0xff] %v6561_v41 }
 0x3c1   : > { %4510 = vrot.lane.b32.xlu2 %v6368_v48, %s5371_s15  ;;  %4440 = vrot.lane.b32.xlu1 %v6372_v37, %s5371_s15 }
 0x3c2   : > { %4525 = vrot.lane.b32.xlu0 %v6378_v33, %s5371_s15 }
 0x3c3   : > { %v6394_v30 = vpop.permute.xlu2 %4290  ;;  %v6396_v7 = vpop.permute.xlu1 %4235 }
 0x3c4   : > { %9481 = vst [vmem:[#allocation72_spill] sm:$0xff] %v6396_v7  ;;  %v6398_v32 = vpop.permute.xlu0 %4280  ;;  %v6420_v7 = vpack.i.bf16 %v6408_v51, %v6404_v20  ;;  %v6602_v19 = vunpack.i.l.bf16 %v6394_v30 }
 0x3c5   : > { %9482 = vst [vmem:[#allocation73_spill] sm:$0xff] %v6398_v32  ;;  %v4272_v32 = vunpack.i.l.bf16 %v6302_v14  ;;  %v6447_v14 = vsel %vm654_vm3, %v4178_v1, %v4267_v29  ;;  %v4183_v1 = vunpack.i.h.bf16 %v6206_v28 }
 0x3c6   : > { %9489 = vst [vmem:[#allocation80_spill] sm:$0xff] %v6447_v14  ;;  %v6462_v61 = vpack.i.bf16 %v6447_v14, %v6390_v60 }
 0x3c7   : > { %v6458_v23 = vsel %vm1466_vm8, %v4272_v32, %v6429_v2  ;;  %9504 = vst [vmem:[#allocation95_spill] sm:$0xff] %v6602_v19 }
 0x3c8   : > { %9492 = vst [vmem:[#allocation83_spill] sm:$0xff] %v6458_v23  ;;  %v6470_v29 = vpack.i.bf16 %v6429_v2, %v6458_v23  ;;  %v6486_v2 = vsel %vm1466_vm8, %v4183_v1, %v4272_v32 }
 0x3c9   : > { %4520 = vrot.lane.b32.xlu2 %v6416_v9, %s5371_s15  ;;  %4445 = vrot.lane.b32.xlu1 %v6420_v7, %s5371_s15  ;;  %9493 = vst [vmem:[#allocation84_spill] sm:$0xff] %v6486_v2  ;;  %v6490_v23 = vpack.i.bf16 %v6486_v2, %v6438_v11 }
 0x3ca   : > { %4535 = vrot.lane.b32.xlu0 %v6426_v62, %s5371_s15 }
 0x3cb   : > { %v6442_v40 = vpop.permute.xlu2 %4295  ;;  %v4331_v51 = vpop.permute.xlu1 %4330 }
 0x3cc   : > { %v6444_v34 = vpop.permute.xlu0 %4375  ;;  %v4332_v8 = vunpack.i.l.bf16 %v4331_v51 }
 0x3cd   : > { %v6529_v11 = vunpack.i.h.bf16 %v6444_v34  ;;  %v4377_v2 = vunpack.i.l.bf16 %v6444_v34  ;;  %v4333_v34 = vunpack.i.h.bf16 %v4331_v51 }
 0x3cf   : > { %9494 = vst [vmem:[#allocation85_spill] sm:$0xff] %v6529_v11  ;;  %v6546_v46 = vsel %vm579_vm10, %v4377_v2, %v6529_v11 }
 0x3d0   : > { %9496 = vst [vmem:[#allocation87_spill] sm:$0xff] %v6546_v46 }
 0x3d1   : > { %4530 = vrot.lane.b32.xlu2 %v6462_v61, %s5371_s15  ;;  %4450 = vrot.lane.b32.xlu1 %v6466_v36, %s5371_s15 }
 0x3d2   : > { %4545 = vrot.lane.b32.xlu0 %v6470_v29, %s5371_s15 }
 0x3d3   : > { %v6479_v25 = vpop.permute.xlu2 %4300  ;;  %v6481_v45 = vpop.permute.xlu1 %4335 }
 0x3d4   : > { %v6483_v47 = vpop.permute.xlu0 %4380  ;;  %v4337_v27 = vunpack.i.l.bf16 %v6481_v45 }
 0x3d9   : > { %4540 = vrot.lane.b32.xlu2 %v6490_v23, %s5371_s15  ;;  %4455 = vrot.lane.b32.xlu1 %v6190_v57, %s5372_s17 }
 0x3da   : > { %4555 = vrot.lane.b32.xlu0 %v6194_v5, %s5372_s17 }
 0x3db   : > { %v6498_v28 = vpop.permute.xlu2 %4305  ;;  %v6500_v60 = vpop.permute.xlu1 %4340 }
 0x3dc   : > { %v6502_v6 = vpop.permute.xlu0 %4385 }
 0x3dd   : > { %v6593_v50 = vunpack.i.h.bf16 %v6502_v6 }
 0x3df   : > { %9503 = vst [vmem:[#allocation94_spill] sm:$0xff] %v6593_v50 }
 0x3e1   : > { %4550 = vrot.lane.b32.xlu2 %v6228_v53, %s5372_s17  ;;  %4460 = vrot.lane.b32.xlu1 %v6232_v56, %s5372_s17 }
 0x3e2   : > { %4565 = vrot.lane.b32.xlu0 %v6236_v4, %s5372_s17 }
 0x3e3   : > { %v6510_v32 = vpop.permute.xlu2 %4310  ;;  %v6512_v1 = vpop.permute.xlu1 %4345 }
 0x3e4   : > { %v6514_v5 = vpop.permute.xlu0 %4390 }
 0x3e5   : > { %v4392_v57 = vunpack.i.l.bf16 %v6514_v5 }
 0x3e9   : > { %4560 = vrot.lane.b32.xlu2 %v6274_v10, %s5372_s17  ;;  %4465 = vrot.lane.b32.xlu1 %v6278_v22, %s5372_s17 }
 0x3ea   : > { %4575 = vrot.lane.b32.xlu0 %v6282_v54, %s5372_s17 }
 0x3eb   : > { %v6522_v53 = vpop.permute.xlu2 %4315  ;;  %v6524_v56 = vpop.permute.xlu1 %4350 }
 0x3ec   : > { %v6526_v4 = vpop.permute.xlu0 %4395 }
 0x3f1   : > { %4570 = vrot.lane.b32.xlu2 %v6320_v26, %s5372_s17  ;;  %4470 = vrot.lane.b32.xlu1 %v6324_v44, %s5372_s17  ;;  %v6550_v26 = vpack.i.bf16 %v6529_v11, %v6546_v46  ;;  %v6553_v44 = vunpack.i.h.bf16 %v6483_v47 }
 0x3f2   : > { %4585 = vrot.lane.b32.xlu0 %v6330_v43, %s5372_s17  ;;  %v4382_v43 = vunpack.i.l.bf16 %v6483_v47  ;;  %v6572_v47 = vsel %vm579_vm10, %v4332_v8, %v4333_v34 }
 0x3f3   : > { %v6538_v10 = vpop.permute.xlu2 %4320  ;;  %v6540_v22 = vpop.permute.xlu1 %4355  ;;  %9497 = vst [vmem:[#allocation88_spill] sm:$0xff] %v6553_v44 }
 0x3f4   : > { %9495 = vst [vmem:[#allocation86_spill] sm:$0xff] %v6538_v10  ;;  %v6542_v54 = vpop.permute.xlu0 %4400 }
 0x3f5   : > { %9500 = vst [vmem:[#allocation91_spill] sm:$0xff] %v6572_v47  ;;  %v4402_v31 = vunpack.i.l.bf16 %v6542_v54 }
 0x3f9   : > { %4580 = vrot.lane.b32.xlu2 %v6368_v48, %s5372_s17  ;;  %4475 = vrot.lane.b32.xlu1 %v6372_v37, %s5372_s17  ;;  %v6576_v48 = vsel %vm579_vm10, %v4333_v34, %v6561_v41  ;;  %v6580_v37 = vsel %vm594_vm11, %v4382_v43, %v6553_v44  ;;  %v4387_v34 = vunpack.i.l.bf16 %v6502_v6 }
 0x3fa   : > { %4655 = vrot.lane.b32.xlu0 %v6550_v26, %s5371_s15  ;;  %9501 = vst [vmem:[#allocation92_spill] sm:$0xff] %v6576_v48  ;;  %v6584_v13 = vpack.i.bf16 %v6576_v48, %v6572_v47  ;;  %v6590_v8 = vpack.i.bf16 %v6553_v44, %v6580_v37  ;;  %v4288_v47 = vunpack.i.h.bf16 %v6346_v38 }
 0x3fb   : > { %v6565_v51 = vpop.permute.xlu2 %4325  ;;  %v6567_v11 = vpop.permute.xlu1 %4360  ;;  %9502 = vst [vmem:[#allocation93_spill] sm:$0xff] %v6580_v37  ;;  %v6624_v63 = vsel %vm609_vm12, %v4387_v34, %v6593_v50 }
 0x3fc   : > { %9499 = vst [vmem:[#allocation90_spill] sm:$0xff] %v6565_v51  ;;  %v6569_v46 = vpop.permute.xlu0 %4405  ;;  %v4338_v51 = vunpack.i.h.bf16 %v6481_v45  ;;  %v6613_v6 = vsel %vm579_vm10, %v4288_v47, %v4377_v2  ;;  %v4343_v2 = vunpack.i.h.bf16 %v6500_v60  ;;  %v6641_v47 = vunpack.i.h.bf16 %v6514_v5 }
 0x3fd   : > { %9507 = vst [vmem:[#allocation98_spill] sm:$0xff] %v6613_v6  ;;  %v6628_v42 = vpack.i.bf16 %v6613_v6, %v6561_v41  ;;  %v4293_v41 = vunpack.i.h.bf16 %v6394_v30  ;;  %v6650_v6 = vunpack.i.l.bf16 %v6442_v40  ;;  %v4407_v10 = vunpack.i.l.bf16 %v6569_v46 }
 0x3fe   : > { %v6620_v38 = vsel %vm594_vm11, %v4338_v51, %v6602_v19  ;;  %9510 = vst [vmem:[#allocation101_spill] sm:$0xff] %v6624_v63  ;;  %v6672_v20 = vsel %vm624_vm14, %v4392_v57, %v6641_v47 }
 0x3ff   : > { %9509 = vst [vmem:[#allocation100_spill] sm:$0xff] %v6620_v38  ;;  %v6661_v5 = vsel %vm594_vm11, %v4293_v41, %v4382_v43  ;;  %v6668_v30 = vsel %vm609_vm12, %v4343_v2, %v6650_v6  ;;  %v4348_v41 = vunpack.i.h.bf16 %v6512_v1  ;;  %v4347_v43 = vunpack.i.l.bf16 %v6512_v1 }
 0x400   : > { %9511 = vst [vmem:[#allocation102_spill] sm:$0xff] %v6641_v47  ;;  %v6676_v3 = vpack.i.bf16 %v6661_v5, %v6602_v19  ;;  %v4298_v19 = vunpack.i.h.bf16 %v6442_v40 }
 0x401   : > { %4590 = vrot.lane.b32.xlu2 %v6416_v9, %s5372_s17  ;;  %4595 = vrot.lane.b32.xlu1 %v6584_v13, %s5371_s15  ;;  %v6616_v9 = vsel %vm594_vm11, %v4337_v27, %v4338_v51  ;;  %v4342_v27 = vunpack.i.l.bf16 %v6500_v60  ;;  %v6638_v51 = vpack.i.bf16 %v6593_v50, %v6624_v63  ;;  %9512 = vst [vmem:[#allocation103_spill] sm:$0xff] %v6650_v6 }
 0x402   : > { %4665 = vrot.lane.b32.xlu0 %v6590_v8, %s5371_s15  ;;  %9508 = vst [vmem:[#allocation99_spill] sm:$0xff] %v6616_v9  ;;  %v6632_v16 = vpack.i.bf16 %v6620_v38, %v6616_v9 }
 0x403   : > { %v6606_v45 = vpop.permute.xlu2 %4480  ;;  %v6608_v37 = vpop.permute.xlu1 %4365  ;;  %9515 = vst [vmem:[#allocation106_spill] sm:$0xff] %v6661_v5  ;;  %v6664_v50 = vsel %vm609_vm12, %v4342_v27, %v4343_v2  ;;  %v6686_v2 = vpack.i.bf16 %v6641_v47, %v6672_v20  ;;  %v6689_v27 = vunpack.i.h.bf16 %v6526_v4  ;;  %v6698_v5 = vunpack.i.l.bf16 %v6479_v25 }
 0x404   : > { %9505 = vst [vmem:[#allocation96_spill] sm:$0xff] %v6608_v37  ;;  %v6610_v44 = vpop.permute.xlu0 %4410 }
 0x405   : > { %9506 = vst [vmem:[#allocation97_spill] sm:$0xff] %v6610_v44  ;;  %v6716_v40 = vsel %vm624_vm14, %v4348_v41, %v6698_v5 }
 0x406   : > { %9516 = vst [vmem:[#allocation107_spill] sm:$0xff] %v6664_v50 }
 0x407   : > { %9517 = vst [vmem:[#allocation108_spill] sm:$0xff] %v6668_v30 }
 0x408   : > { %9518 = vst [vmem:[#allocation109_spill] sm:$0xff] %v6672_v20 }
 0x409   : > { %4650 = vrot.lane.b32.xlu2 %v6628_v42, %s5371_s15  ;;  %4600 = vrot.lane.b32.xlu1 %v6632_v16, %s5371_s15  ;;  %9519 = vst [vmem:[#allocation110_spill] sm:$0xff] %v6689_v27 }
 0x40a   : > { %4675 = vrot.lane.b32.xlu0 %v6638_v51, %s5371_s15  ;;  %9520 = vst [vmem:[#allocation111_spill] sm:$0xff] %v6698_v5 }
 0x40b   : > { %v6654_v60 = vpop.permute.xlu2 %4490  ;;  %v6656_v63 = vpop.permute.xlu1 %4370  ;;  %9524 = vst [vmem:[#allocation115_spill] sm:$0xff] %v6716_v40 }
 0x40c   : > { %9513 = vst [vmem:[#allocation104_spill] sm:$0xff] %v6656_v63  ;;  %v6658_v9 = vpop.permute.xlu0 %4415  ;;  %v6680_v63 = vpack.i.bf16 %v6668_v30, %v6664_v50  ;;  %v6712_v50 = vsel %vm624_vm14, %v4347_v43, %v4348_v41  ;;  %v6737_v43 = vunpack.i.h.bf16 %v6542_v54 }
 0x40d   : > { %9514 = vst [vmem:[#allocation105_spill] sm:$0xff] %v6658_v9  ;;  %v4397_v9 = vunpack.i.l.bf16 %v6526_v4  ;;  %v6709_v4 = vsel %vm609_vm12, %v4298_v19, %v4387_v34  ;;  %v6728_v52 = vpack.i.bf16 %v6716_v40, %v6712_v50  ;;  %v4353_v19 = vunpack.i.h.bf16 %v6524_v56 }
 0x40e   : > { %9522 = vst [vmem:[#allocation113_spill] sm:$0xff] %v6709_v4  ;;  %v6724_v48 = vpack.i.bf16 %v6709_v4, %v6650_v6  ;;  %v4352_v34 = vunpack.i.l.bf16 %v6524_v56  ;;  %v4303_v40 = vunpack.i.h.bf16 %v6479_v25  ;;  %v6768_v4 = vsel %vm654_vm3, %v4402_v31, %v6737_v43 }
 0x40f   : > { %9523 = vst [vmem:[#allocation114_spill] sm:$0xff] %v6712_v50  ;;  %v6720_v39 = vsel %vm639_vm0, %v4397_v9, %v6689_v27  ;;  %v6746_v50 = vunpack.i.l.bf16 %v6498_v28 }
 0x410   : > { %9525 = vst [vmem:[#allocation116_spill] sm:$0xff] %v6720_v39  ;;  %v6734_v41 = vpack.i.bf16 %v6689_v27, %v6720_v39  ;;  %v6757_v54 = vsel %vm624_vm14, %v4303_v40, %v4392_v57  ;;  %v6760_v6 = vsel %vm639_vm0, %v4352_v34, %v4353_v19  ;;  %v4358_v57 = vunpack.i.h.bf16 %v6540_v22 }
 0x411   : > { %4660 = vrot.lane.b32.xlu2 %v6676_v3, %s5371_s15  ;;  %4605 = vrot.lane.b32.xlu1 %v6680_v63, %s5371_s15  ;;  %9526 = vst [vmem:[#allocation117_spill] sm:$0xff] %v6737_v43  ;;  %v6764_v25 = vsel %vm639_vm0, %v4353_v19, %v6746_v50  ;;  %v4357_v40 = vunpack.i.l.bf16 %v6540_v22  ;;  %v6782_v19 = vpack.i.bf16 %v6737_v43, %v6768_v4  ;;  %v6785_v34 = vunpack.i.h.bf16 %v6569_v46 }
 0x412   : > { %4685 = vrot.lane.b32.xlu0 %v6686_v2, %s5371_s15  ;;  %9527 = vst [vmem:[#allocation118_spill] sm:$0xff] %v6746_v50  ;;  %v6776_v37 = vpack.i.bf16 %v6764_v25, %v6760_v6 }
 0x413   : > { %v6702_v1 = vpop.permute.xlu2 %4500  ;;  %v6704_v47 = vpop.permute.xlu1 %4420  ;;  %9529 = vst [vmem:[#allocation120_spill] sm:$0xff] %v6757_v54  ;;  %v6816_v44 = vsel %vm1466_vm8, %v4407_v10, %v6785_v34 }
 0x414   : > { %9521 = vst [vmem:[#allocation112_spill] sm:$0xff] %v6704_v47  ;;  %v6706_v20 = vpop.permute.xlu0 %4485 }
 0x415   : > { %9530 = vst [vmem:[#allocation121_spill] sm:$0xff] %v6760_v6 }
 0x416   : > { %9531 = vst [vmem:[#allocation122_spill] sm:$0xff] %v6764_v25 }
 0x417   : > { %9532 = vst [vmem:[#allocation123_spill] sm:$0xff] %v6768_v4  ;;  %v6807_v4 = vsel %vm654_vm3, %v4357_v40, %v4358_v57  ;;  %v4362_v40 = vunpack.i.l.bf16 %v6567_v11 }
 0x418   : > { %9533 = vst [vmem:[#allocation124_spill] sm:$0xff] %v6785_v34 }
 0x419   : > { %4670 = vrot.lane.b32.xlu2 %v6724_v48, %s5371_s15  ;;  %4610 = vrot.lane.b32.xlu1 %v6728_v52, %s5371_s15  ;;  %9537 = vst [vmem:[#allocation128_spill] sm:$0xff] %v6807_v4 }
 0x41a   : > { %4695 = vrot.lane.b32.xlu0 %v6734_v41, %s5371_s15  ;;  %9539 = vst [vmem:[#allocation130_spill] sm:$0xff] %v6816_v44 }
 0x41b   : > { %v6750_v56 = vpop.permute.xlu2 %4510  ;;  %v6752_v27 = vpop.permute.xlu1 %4425 }
 0x41c   : > { %9528 = vst [vmem:[#allocation119_spill] sm:$0xff] %v6750_v56  ;;  %v6754_v39 = vpop.permute.xlu0 %4495  ;;  %v6772_v56 = vpack.i.bf16 %v6757_v54, %v6698_v5  ;;  %v4308_v5 = vunpack.i.h.bf16 %v6498_v28  ;;  %v6794_v54 = vunpack.i.l.bf16 %v6510_v32 }
 0x41e   : > { %9534 = vst [vmem:[#allocation125_spill] sm:$0xff] %v6794_v54  ;;  %v6804_v46 = vsel %vm654_vm3, %v4358_v57, %v6794_v54  ;;  %v6812_v28 = vsel %vm639_vm0, %v4308_v5, %v4397_v9  ;;  %v4363_v57 = vunpack.i.h.bf16 %v6567_v11  ;;  %v4714_v9 = vpack.i.bf16 %v6785_v34, %v6816_v44 }
 0x41f   : > { %9536 = vst [vmem:[#allocation127_spill] sm:$0xff] %v6804_v46  ;;  %v6824_v35 = vpack.i.bf16 %v6804_v46, %v6807_v4  ;;  %v4313_v5 = vunpack.i.h.bf16 %v6510_v32 }
 0x420   : > { %9538 = vst [vmem:[#allocation129_spill] sm:$0xff] %v6812_v28  ;;  %v6851_v17 = vsel %vm1466_vm8, %v4362_v40, %v4363_v57 }
 0x421   : > { %4680 = vrot.lane.b32.xlu2 %v6772_v56, %s5371_s15  ;;  %4615 = vrot.lane.b32.xlu1 %v6776_v37, %s5371_s15  ;;  %v6844_v11 = vsel %vm654_vm3, %v4313_v5, %v4402_v31  ;;  %9542 = vst [vmem:[#allocation133_spill] sm:$0xff] %v6851_v17  ;;  %v4318_v31 = vunpack.i.h.bf16 %v6522_v53 }
 0x422   : > { %4705 = vrot.lane.b32.xlu0 %v6782_v19, %s5371_s15  ;;  %v6857_v25 = vpack.i.bf16 %v6844_v11, %v6794_v54 }
 0x423   : > { %v6798_v22 = vpop.permute.xlu2 %4520  ;;  %v6800_v43 = vpop.permute.xlu1 %4430  ;;  %v6872_v5 = vsel %vm1466_vm8, %v4318_v31, %v4407_v10 }
 0x424   : > { %9535 = vst [vmem:[#allocation126_spill] sm:$0xff] %v6798_v22  ;;  %v6809_v6 = vpop.permute.xlu0 %4505  ;;  %v6820_v22 = vpack.i.bf16 %v6812_v28, %v6746_v50  ;;  %v6836_v50 = vunpack.i.l.bf16 %v6522_v53 }
 0x425   : > { %9543 = vst [vmem:[#allocation134_spill] sm:$0xff] %v6872_v5 }
 0x426   : > { %9540 = vst [vmem:[#allocation131_spill] sm:$0xff] %v6836_v50  ;;  %v6848_v47 = vsel %vm1466_vm8, %v4363_v57, %v6836_v50 }
 0x427   : > { %9541 = vst [vmem:[#allocation132_spill] sm:$0xff] %v6848_v47 }
 0x429   : > { %4690 = vrot.lane.b32.xlu2 %v6820_v22, %s5371_s15  ;;  %4620 = vrot.lane.b32.xlu1 %v6824_v35, %s5371_s15 }
 0x42a   : > { %4715 = vrot.lane.b32.xlu0 %v4714_v9, %s5371_s15  ;;  %v4624_v9 = vpack.i.bf16 %v6848_v47, %v6851_v17  ;;  %v4709_v47 = vpack.i.bf16 %v6872_v5, %v6836_v50 }
 0x42b   : > { %v6839_v28 = vpop.permute.xlu2 %4530  ;;  %v6841_v46 = vpop.permute.xlu1 %4435 }
 0x42c   : > { %v6853_v32 = vpop.permute.xlu0 %4515 }
 0x431   : > { %4700 = vrot.lane.b32.xlu2 %v6857_v25, %s5371_s15  ;;  %4625 = vrot.lane.b32.xlu1 %v4624_v9, %s5371_s15 }
 0x432   : > { %4720 = vrot.lane.b32.xlu0 %v6378_v33, %s5372_s17 }
 0x433   : > { %v6867_v57 = vpop.permute.xlu2 %4540  ;;  %v6869_v40 = vpop.permute.xlu1 %4440 }
 0x434   : > { %v6874_v54 = vpop.permute.xlu0 %4525 }
 0x439   : > { %4710 = vrot.lane.b32.xlu2 %v4709_v47, %s5371_s15  ;;  %4630 = vrot.lane.b32.xlu1 %v6584_v13, %s5372_s17  ;;  %v4769_v47 = vpack.i.bf16 %v6836_v50, %v6785_v34  ;;  %s3750_s15 = sadd.s32 %s3977_s27, %s5530_s22 }
 0x43a   : > { %4740 = vrot.lane.b32.xlu0 %v6426_v62, %s5372_s17 }
 0x43b   : > { %v6883_v33 = vpop.permute.xlu2 %4550  ;;  %v6885_v53 = vpop.permute.xlu1 %4445 }
 0x43c   : > { %9544 = vst [vmem:[#allocation135_spill] sm:$0xff] %v6883_v33  ;;  %v6887_v17 = vpop.permute.xlu0 %4535 }
 0x441   : > { %4735 = vrot.lane.b32.xlu2 %v6462_v61, %s5372_s17  ;;  %4635 = vrot.lane.b32.xlu1 %v6632_v16, %s5372_s17 }
 0x442   : > { %4760 = vrot.lane.b32.xlu0 %v6470_v29, %s5372_s17 }
 0x443   : > { %v6895_v10 = vpop.permute.xlu2 %4560  ;;  %v6897_v13 = vpop.permute.xlu1 %4450 }
 0x444   : > { %9545 = vst [vmem:[#allocation136_spill] sm:$0xff] %v6895_v10  ;;  %v6899_v62 = vpop.permute.xlu0 %4545 }
 0x449   : > { %4755 = vrot.lane.b32.xlu2 %v6490_v23, %s5372_s17  ;;  %4640 = vrot.lane.b32.xlu1 %v6680_v63, %s5372_s17 }
 0x44a   : > { %4770 = vrot.lane.b32.xlu0 %v4769_v47, %s5372_s17  ;;  %v4804_v47 = vpack.i.bf16 %v6807_v4, %v6620_v38 }
 0x44b   : > { %v6908_v61 = vpop.permute.xlu2 %4570  ;;  %v6910_v16 = vpop.permute.xlu1 %4455 }
 0x44c   : > { %9546 = vst [vmem:[#allocation137_spill] sm:$0xff] %v6908_v61  ;;  %v6912_v29 = vpop.permute.xlu0 %4555  ;;  %v9293_v34 = vunpack.i.l.bf16 %v6908_v61 }
 0x44d   : > { %9547 = vst [vmem:[#allocation138_spill] sm:$0xff] %v6910_v16  ;;  %v4799_v16 = vpack.i.bf16 %v6262_v18, %v6270_v15  ;;  %v9587_v15 = vld [vmem:[#allocation121_spill] sm:$0xff] }
 0x44e   : > { %9548 = vst [vmem:[#allocation139_spill] sm:$0xff] %v6912_v29  ;;  %v9292_v29 = vunpack.i.l.bf16 %v6895_v10 }
 0x451   : > { %4765 = vrot.lane.b32.xlu2 %v4624_v9, %s5372_s17  ;;  %4645 = vrot.lane.b32.xlu1 %v6728_v52, %s5372_s17 }
 0x452   : > { %4785 = vrot.lane.b32.xlu0 %v5991_v59, %s5373_s0  ;;  %v4563_v59 = vunpack.i.h.bf16 %v6895_v10 }
 0x453   : > { %v6919_v23 = vpop.permute.xlu2 %4580  ;;  %v6921_v63 = vpop.permute.xlu1 %4460 }
 0x454   : > { %9549 = vst [vmem:[#allocation140_spill] sm:$0xff] %v6919_v23  ;;  %v6923_v31 = vpop.permute.xlu0 %4565  ;;  %v9557_v4 = vunpack.i.h.bf16 %v6921_v63 }
 0x455   : > { %9550 = vst [vmem:[#allocation141_spill] sm:$0xff] %v6921_v63 }
 0x456   : > { %9551 = vst [vmem:[#allocation142_spill] sm:$0xff] %v6923_v31  ;;  %v6956_v38 = vsel %vm2380_vm9, %v9557_v4, %v9292_v29 }
 0x457   : > { %9558 = vst [vmem:[#allocation147_spill] sm:$0xff] %v6956_v38  ;;  %v4427_v38 = vunpack.i.l.bf16 %v6752_v27 }
 0x459   : > { %4780 = vrot.lane.b32.xlu2 %v6010_v12, %s5373_s0  ;;  %4725 = vrot.lane.b32.xlu1 %v6776_v37, %s5372_s17  ;;  %v9555_v37 = vunpack.i.l.bf16 %v6923_v31 }
 0x45a   : > { %4805 = vrot.lane.b32.xlu0 %v4804_v47, %s5373_s0  ;;  %v4573_v47 = vunpack.i.h.bf16 %v6908_v61 }
 0x45b   : > { %v6935_v9 = vpop.permute.xlu2 %4590  ;;  %v6937_v33 = vpop.permute.xlu1 %4465  ;;  %v6947_v52 = vsel %vm2380_vm9, %v4563_v59, %v9555_v37 }
 0x45c   : > { %9552 = vst [vmem:[#allocation143_spill] sm:$0xff] %v6935_v9  ;;  %v6940_v50 = vpop.permute.xlu0 %4575  ;;  %v9560_v59 = vunpack.i.h.bf16 %v6937_v33 }
 0x45d   : > { %9553 = vst [vmem:[#allocation144_spill] sm:$0xff] %v6937_v33  ;;  %v9294_v12 = vunpack.i.l.bf16 %v6940_v50 }
 0x45e   : > { %9554 = vst [vmem:[#allocation145_spill] sm:$0xff] %v6940_v50  ;;  %v6970_v37 = vsel %vm2380_vm9, %v9560_v59, %v9293_v34  ;;  %v9582_v50 = vld [vmem:[#allocation65_spill] sm:$0xff] }
 0x45f   : > { %9556 = vst [vmem:[#allocation146_spill] sm:$0xff] %v6947_v52  ;;  %v6963_v31 = vsel %vm2380_vm9, %v4573_v47, %v9294_v12  ;;  %v4583_v12 = vunpack.i.h.bf16 %v6919_v23  ;;  %v9572_v52 = vld [vmem:[#allocation112_spill] sm:$0xff] }
 0x460   : > { %9559 = vst [vmem:[#allocation148_spill] sm:$0xff] %v6963_v31 }
 0x461   : > { %9561 = vst [vmem:[#allocation149_spill] sm:$0xff] %v6970_v37  ;;  %4800 = vrot.lane.b32.xlu2 %v4799_v16, %s5373_s0  ;;  %4730 = vrot.lane.b32.xlu1 %v6420_v7, %s5372_s17 }
 0x462   : > { %4815 = vrot.lane.b32.xlu0 %v6550_v26, %s5372_s17 }
 0x463   : > { %v6977_v4 = vpop.permute.xlu2 %4650  ;;  %v6979_v29 = vpop.permute.xlu1 %4470 }
 0x464   : > { %9562 = vst [vmem:[#allocation150_spill] sm:$0xff] %v6979_v29  ;;  %v6981_v47 = vpop.permute.xlu0 %4585  ;;  %v9299_v34 = vunpack.i.h.bf16 %v6979_v29 }
 0x465   : > { %9563 = vst [vmem:[#allocation151_spill] sm:$0xff] %v6981_v47  ;;  %v9300_v59 = vunpack.i.l.bf16 %v6981_v47 }
 0x469   : > { %4810 = vrot.lane.b32.xlu2 %v6628_v42, %s5372_s17  ;;  %4745 = vrot.lane.b32.xlu1 %v6824_v35, %s5372_s17  ;;  %v9298_v42 = vunpack.i.l.bf16 %v6919_v23  ;;  %v7006_v35 = vsel %vm2380_vm9, %v4583_v12, %v9300_v59  ;;  %v9302_v12 = vunpack.i.l.bf16 %v6935_v9 }
 0x46a   : > { %4825 = vrot.lane.b32.xlu0 %v6590_v8, %s5372_s17  ;;  %9565 = vst [vmem:[#allocation153_spill] sm:$0xff] %v7006_v35 }
 0x46b   : > { %v6989_v16 = vpop.permute.xlu2 %4660  ;;  %v6991_v7 = vpop.permute.xlu1 %4475  ;;  %v7015_v8 = vsel %vm2380_vm9, %v9299_v34, %v9298_v42 }
 0x46c   : > { %9564 = vst [vmem:[#allocation152_spill] sm:$0xff] %v6991_v7  ;;  %v6993_v26 = vpop.permute.xlu0 %4655  ;;  %v9303_v47 = vunpack.i.h.bf16 %v6991_v7  ;;  %v4432_v7 = vunpack.i.l.bf16 %v6800_v43 }
 0x46d   : > { %9566 = vst [vmem:[#allocation154_spill] sm:$0xff] %v7015_v8 }
 0x471   : > { %4820 = vrot.lane.b32.xlu2 %v6676_v3, %s5372_s17  ;;  %4750 = vrot.lane.b32.xlu1 %v6466_v36, %s5372_s17 }
 0x472   : > { %4835 = vrot.lane.b32.xlu0 %v6638_v51, %s5372_s17  ;;  %v7034_v51 = vsel %vm2380_vm9, %v9303_v47, %v9302_v12 }
 0x473   : > { %v7017_v10 = vpop.permute.xlu2 %4670  ;;  %v7019_v3 = vpop.permute.xlu1 %4595  ;;  %9567 = vst [vmem:[#allocation155_spill] sm:$0xff] %v7034_v51  ;;  %v4433_v51 = vunpack.i.h.bf16 %v6800_v43 }
 0x474   : > { %v7021_v36 = vpop.permute.xlu0 %4665 }
 0x475   : > { %v9569_v61 = vunpack.i.h.bf16 %v7021_v36 }
 0x479   : > { %4830 = vrot.lane.b32.xlu2 %v6724_v48, %s5372_s17  ;;  %4775 = vrot.lane.b32.xlu1 %v5989_v58, %s5373_s0  ;;  %v4673_v48 = vunpack.i.h.bf16 %v7017_v10 }
 0x47a   : > { %4845 = vrot.lane.b32.xlu0 %v6686_v2, %s5372_s17 }
 0x47b   : > { %v7038_v42 = vpop.permute.xlu2 %4680  ;;  %v7040_v34 = vpop.permute.xlu1 %4600 }
 0x47c   : > { %v7042_v59 = vpop.permute.xlu0 %4675 }
 0x47d   : > { %v9306_v58 = vunpack.i.h.bf16 %v7042_v59  ;;  %v4677_v23 = vunpack.i.l.bf16 %v7042_v59 }
 0x47f   : > { %v1710_v8 = vsel %vm1679_vm13, %v4673_v48, %v4677_v23  ;;  %v1711_v12 = vsel %vm1679_vm13, %v4677_v23, %v9306_v58  ;;  %v9309_v48 = vunpack.i.l.bf16 %v7017_v10  ;;  %v4503_v58 = vunpack.i.h.bf16 %v6702_v1 }
 0x480   : > { %1840 = vmatpush.msrb.mxu2 %v1710_v8  ;;  %1898 = vmatpush.msra.mxu0 %v1711_v12  ;;  %v4507_v8 = vunpack.i.l.bf16 %v6809_v6  ;;  %v9310_v12 = vunpack.i.h.bf16 %v6809_v6 }
 0x481   : > { %4840 = vrot.lane.b32.xlu2 %v6772_v56, %s5372_s17  ;;  %4790 = vrot.lane.b32.xlu1 %v6040_v49, %s5373_s0 }
 0x482   : > { %4855 = vrot.lane.b32.xlu0 %v6734_v41, %s5372_s17  ;;  %v4794_v41 = vpack.i.bf16 %v6305_v55, %v6668_v30  ;;  %v1707_v43 = vsel %vm1679_vm13, %v4507_v8, %v9310_v12  ;;  %v9313_v12 = vunpack.i.h.bf16 %v6754_v39 }
 0x483   : > { %v7057_v2 = vpop.permute.xlu2 %4690  ;;  %v4606_v47 = vpop.permute.xlu1 %4605 }
 0x484   : > { %v7060_v35 = vpop.permute.xlu0 %4685  ;;  %v4608_v29 = vunpack.i.h.bf16 %v4606_v47  ;;  %v4607_v23 = vunpack.i.l.bf16 %v4606_v47  ;;  %v4667_v47 = vunpack.i.l.bf16 %v7021_v36 }
 0x486   : > { %v1708_v56 = vsel %vm1679_vm13, %v4607_v23, %v4608_v29  ;;  %v1709_v49 = vsel %vm1679_vm13, %v4608_v29, %v9309_v48  ;;  %v1706_v29 = vsel %vm1679_vm13, %v4503_v58, %v4507_v8  ;;  %v1704_v48 = vsel %vm1679_vm13, %v4432_v7, %v4433_v51 }
 0x487   : > { %1841 = vmatpush.msrb.mxu2 %v1708_v56  ;;  %1899 = vmatpush.msra.mxu0 %v1709_v49  ;;  %v4663_v56 = vunpack.i.h.bf16 %v6989_v16  ;;  %v4602_v49 = vunpack.i.l.bf16 %v7040_v34  ;;  %v1703_v7 = vsel %vm1679_vm13, %v4667_v47, %v9569_v61  ;;  %v4869_v61 = vpack.i.bf16 %v6816_v44, %v6872_v5 }
 0x489   : > { %4850 = vrot.lane.b32.xlu2 %v6820_v22, %s5372_s17  ;;  %4795 = vrot.lane.b32.xlu1 %v4794_v41, %s5373_s0  ;;  %v4603_v22 = vunpack.i.h.bf16 %v7040_v34  ;;  %v4497_v34 = vunpack.i.l.bf16 %v6754_v39 }
 0x48a   : > { %4865 = vrot.lane.b32.xlu0 %v6782_v19, %s5372_s17  ;;  %1842 = vmatpush.msrb.mxu2 %v1706_v29  ;;  %v9568_v19 = vunpack.i.l.bf16 %v6702_v1  ;;  %v1702_v29 = vsel %vm1679_vm13, %v4663_v56, %v4667_v47  ;;  %v4493_v56 = vunpack.i.h.bf16 %v6654_v60  ;;  %v9314_v47 = vunpack.i.l.bf16 %v6654_v60 }
 0x48b   : > { %1900 = vmatpush.msra.mxu0 %v1707_v43  ;;  %v7088_v58 = vpop.permute.xlu2 %4700  ;;  %v7090_v41 = vpop.permute.xlu1 %4610  ;;  %v9312_v43 = vunpack.i.l.bf16 %v6989_v16 }
 0x48c   : > { %v7093_v23 = vpop.permute.xlu0 %4695  ;;  %1843 = vmatpush.msrb.mxu2 %v1704_v48  ;;  %v1705_v8 = vsel %vm1679_vm13, %v4433_v51, %v9568_v19  ;;  %v4428_v48 = vunpack.i.h.bf16 %v6752_v27  ;;  %v1700_v51 = vsel %vm1679_vm13, %v4602_v49, %v4603_v22  ;;  %v9317_v27 = vunpack.i.h.bf16 %v6993_v26 }
 0x48d   : > { %1901 = vmatpush.msra.mxu0 %v1705_v8  ;;  %v1701_v19 = vsel %vm1679_vm13, %v4603_v22, %v9312_v43  ;;  %v4884_v8 = vpack.i.bf16 %v6216_v21, %v6412_v24  ;;  %v4657_v49 = vunpack.i.l.bf16 %v6993_v26  ;;  %v1698_v22 = vsel %vm1679_vm13, %v4493_v56, %v4497_v34  ;;  %v9576_v24 = vld [vmem:[#allocation97_spill] sm:$0xff] }
 0x48e   : > { %1844 = vmatpush.msrb.mxu2 %v1702_v29  ;;  %v1699_v29 = vsel %vm1679_vm13, %v4497_v34, %v9313_v12  ;;  %v1697_v34 = vsel %vm1679_vm13, %v4428_v48, %v9314_v47  ;;  %v4487_v56 = vunpack.i.l.bf16 %v6706_v20  ;;  %v4412_v37 = vunpack.i.l.bf16 %v9576_v24 }
 0x48f   : > { %1902 = vmatpush.msra.mxu0 %v1703_v7 }
 0x490   : > { %1845 = vmatpush.msrb.mxu2 %v1700_v51 }
 0x491   : > { %1903 = vmatpush.msra.mxu0 %v1701_v19  ;;  %4860 = vrot.lane.b32.xlu2 %v6857_v25, %s5372_s17  ;;  %v1696_v25 = vsel %vm1679_vm13, %v4427_v38, %v4428_v48  ;;  %v4653_v19 = vunpack.i.h.bf16 %v6977_v4  ;;  %v4879_v48 = vpack.i.bf16 %v6447_v14, %v6224_v0  ;;  %v9583_v14 = vunpack.i.h.bf16 %v9576_v24 }
 0x492   : > { %4885 = vrot.lane.b32.xlu0 %v4884_v8, %s5373_s0  ;;  %4870 = vrot.lane.b32.xlu1 %v4869_v61, %s5372_s17  ;;  %v4598_v8 = vunpack.i.h.bf16 %v7019_v3  ;;  %v4597_v61 = vunpack.i.l.bf16 %v7019_v3  ;;  %v4483_v3 = vunpack.i.h.bf16 %v6606_v45  ;;  %s3978_s17 = sshll.u32 %s3750_s15, 3 }
 0x493   : > { %1846 = vmatpush.msrb.mxu2 %v1698_v22  ;;  %1904 = vmatpush.msra.mxu0 %v1699_v29  ;;  %v7127_v7 = vpop.permute.xlu2 %4710  ;;  %v7129_v51 = vpop.permute.xlu1 %4615  ;;  %v1694_v38 = vsel %vm1679_vm13, %v4653_v19, %v4657_v49  ;;  %v1695_v29 = vsel %vm1679_vm13, %v4657_v49, %v9317_v27  ;;  %v4423_v22 = vunpack.i.h.bf16 %v9572_v52  ;;  %v4422_v19 = vunpack.i.l.bf16 %v9572_v52 }
 0x494   : > { %v7135_v43 = vpop.permute.xlu0 %4705  ;;  %v1692_v63 = vsel %vm1679_vm13, %v4597_v61, %v4598_v8  ;;  %v9573_v49 = vunpack.i.l.bf16 %v6977_v4  ;;  %v1687_v61 = vsel %vm1679_vm13, %v4412_v37, %v9583_v14 }
 0x495   : > { %1847 = vmatpush.msrb.mxu2 %v1696_v25  ;;  %1905 = vmatpush.msra.mxu0 %v1697_v34  ;;  %v9570_v25 = vld [vmem:[#allocation122_spill] sm:$0xff] }
 0x496   : > { %v9571_v34 = vld [vmem:[#allocation46_spill] sm:$0xff]  ;;  %v1693_v27 = vsel %vm1679_vm13, %v4598_v8, %v9573_v49 }
 0x497   : > { %1848 = vmatpush.msrb.mxu2 %v1694_v38  ;;  %1906 = vmatpush.msra.mxu0 %v1695_v29  ;;  %v4899_v47 = vpack.i.bf16 %v9571_v34, %v9570_v25  ;;  %v9574_v38 = vld [vmem:[#allocation127_spill] sm:$0xff]  ;;  %v9575_v29 = vld [vmem:[#allocation52_spill] sm:$0xff]  ;;  %v1690_v25 = vsel %vm1679_vm13, %v4483_v3, %v4487_v56 }
 0x498   : > { %v4874_v12 = vpack.i.bf16 %v9575_v29, %v9574_v38 }
 0x499   : > { %1849 = vmatpush.msrb.mxu2 %v1692_v63  ;;  %1907 = vmatpush.msra.mxu0 %v1693_v27  ;;  %v9577_v63 = vunpack.i.h.bf16 %v6706_v20 }
 0x49a   : > { %4880 = vrot.lane.b32.xlu2 %v4879_v48, %s5373_s0  ;;  %4900 = vrot.lane.b32.xlu0 %v4899_v47, %s5373_s0  ;;  %v9579_v48 = vld [vmem:[#allocation86_spill] sm:$0xff]  ;;  %v9580_v47 = vld [vmem:[#allocation96_spill] sm:$0xff] }
 0x49b   : > { %4875 = vrot.lane.b32.xlu1 %v4874_v12, %s5373_s0  ;;  %1850 = vmatpush.msrb.mxu2 %v1690_v25  ;;  %v1691_v27 = vsel %vm1679_vm13, %v4487_v56, %v9577_v63  ;;  %v7170_v8 = vpop.permute.xlu2 %4735  ;;  %v7172_v49 = vpop.permute.xlu1 %4620  ;;  %v4323_v38 = vunpack.i.h.bf16 %v9579_v48  ;;  %v4368_v31 = vunpack.i.h.bf16 %v9580_v47  ;;  %v4367_v3 = vunpack.i.l.bf16 %v9580_v47 }
 0x49c   : > { %9578 = vst [vmem:[#allocation46_spill] sm:$0xff] %v7170_v8  ;;  %1908 = vmatpush.msra.mxu0 %v1691_v27  ;;  %v7177_v52 = vpop.permute.xlu0 %4715  ;;  %v1688_v12 = vsel %vm1679_vm13, %v4422_v19, %v4423_v22  ;;  %v4713_v25 = vunpack.i.h.bf16 %v7127_v7  ;;  %v9581_v63 = vunpack.i.l.bf16 %v6606_v45  ;;  %v4277_v47 = vunpack.i.l.bf16 %v9582_v50 }
 0x49d   : > { %v4717_v56 = vunpack.i.l.bf16 %v7177_v52  ;;  %1851 = vmatpush.msrb.mxu2 %v1688_v12  ;;  %v1686_v27 = vsel %vm1679_vm13, %v4323_v38, %v4412_v37  ;;  %v9584_v0 = vunpack.i.h.bf16 %v7177_v52  ;;  %v9586_v38 = vld [vmem:[#allocation92_spill] sm:$0xff]  ;;  %v9589_v14 = vunpack.i.l.bf16 %v9579_v48 }
 0x49e   : > { %v1689_v33 = vsel %vm1679_vm13, %v4423_v22, %v9581_v63  ;;  %v9585_v63 = vld [vmem:[#allocation51_spill] sm:$0xff]  ;;  %v4894_v19 = vpack.i.bf16 %v9587_v15, %v9586_v38  ;;  %v9603_v38 = vld [vmem:[#allocation49_spill] sm:$0xff] }
 0x49f   : > { %1909 = vmatpush.msra.mxu0 %v1689_v33  ;;  %1852 = vmatpush.msrb.mxu2 %v1686_v27  ;;  %v1742_v12 = vsel %vm1679_vm13, %v4713_v25, %v4717_v56  ;;  %v1743_v22 = vsel %vm1679_vm13, %v4717_v56, %v9584_v0  ;;  %v4188_v44 = vunpack.i.h.bf16 %v9585_v63  ;;  %v1684_v33 = vsel %vm1679_vm13, %v4367_v3, %v4368_v31  ;;  %v9588_v27 = vld [vmem:[#allocation64_spill] sm:$0xff]  ;;  %v9590_v0 = vld [vmem:[#allocation47_spill] sm:$0xff] }
 0x4a0   : > { %1869 = vmatpush.msrb.mxu3 %v1742_v12  ;;  %v4233_v30 = vunpack.i.h.bf16 %v9588_v27  ;;  %v4232_v5 = vunpack.i.l.bf16 %v9588_v27  ;;  %v1685_v37 = vsel %vm1679_vm13, %v4368_v31, %v9589_v14  ;;  %1927 = vmatpush.msra.mxu1 %v1743_v22  ;;  %v9591_v25 = vld [vmem:[#allocation75_spill] sm:$0xff]  ;;  %v9329_v14 = vunpack.i.l.bf16 %v7127_v7 }
 0x4a1   : > { %1910 = vmatpush.msra.mxu0 %v1687_v61  ;;  %1853 = vmatpush.msrb.mxu2 %v1684_v33  ;;  %v4889_v56 = vpack.i.bf16 %v9591_v25, %v9590_v0  ;;  %v9592_v3 = vld [vmem:[#allocation43_spill] sm:$0xff]  ;;  %v1682_v12 = vsel %vm1679_vm13, %v4188_v44, %v4277_v47  ;;  %v9593_v33 = vunpack.i.h.bf16 %v9582_v50  ;;  %v9596_v44 = vunpack.i.l.bf16 %v9585_v63 }
 0x4a2   : > { %4895 = vrot.lane.b32.xlu2 %v4894_v19, %s5373_s0  ;;  %4915 = vrot.lane.b32.xlu0 %v9592_v3, %s5373_s0  ;;  %v7222_v3 = vld [vmem:[#allocation2 + $0x10] sm:$0xff]  ;;  %v9604_v0 = vunpack.i.l.bf16 %v7017_v10  ;;  %v9607_v10 = vunpack.i.h.bf16 %v6809_v6 }
 0x4a3   : > { %1911 = vmatpush.msra.mxu0 %v1685_v37  ;;  %4890 = vrot.lane.b32.xlu1 %v4889_v56, %s5373_s0  ;;  %v1683_v31 = vsel %vm1679_vm13, %v4277_v47, %v9593_v33  ;;  %v7217_v22 = vpop.permute.xlu2 %4755  ;;  %v4626_v27 = vpop.permute.xlu1 %4625  ;;  %v1680_v56 = vsel %vm1679_vm13, %v4232_v5, %v4233_v30  ;;  %v1681_v15 = vsel %vm1679_vm13, %v4233_v30, %v9596_v44  ;;  %v9597_v33 = vld [vmem:[#allocation113_spill] sm:$0xff]  ;;  %v4547_v5 = vunpack.i.l.bf16 %v6899_v62  ;;  %v9599_v30 = vld [vmem:[#allocation74_spill] sm:$0xff] }
 0x4a4   : > { %9594 = vst [vmem:[#allocation112_spill] sm:$0xff] %v7217_v22  ;;  %1854 = vmatpush.msrb.mxu2 %v1682_v12  ;;  %v7220_v19 = vpop.permute.xlu0 %4720  ;;  %v4628_v37 = vunpack.i.h.bf16 %v4626_v27  ;;  %v4627_v61 = vunpack.i.l.bf16 %v4626_v27  ;;  %v9598_v27 = vunpack.i.h.bf16 %v7042_v59  ;;  %v4452_v44 = vunpack.i.l.bf16 %v6897_v13  ;;  %v9605_v59 = vld [vmem:[#allocation42_spill] sm:$0xff]  ;;  %v7271_v6 = vld [vmem:[#allocation2 + $0x50] sm:$0xff] }
 0x4a5   : > { %1912 = vmatpush.msra.mxu0 %v1683_v31  ;;  %9595 = vst [vmem:[#allocation52_spill] sm:$0xff] %v7220_v19  ;;  %v4543_v31 = vunpack.i.h.bf16 %v6867_v57 }
 0x4a6   : > { %1855 = vmatpush.msrb.mxu2 %v1680_v56  ;;  %v1740_v47 = vsel %vm1679_vm13, %v4627_v61, %v4628_v37  ;;  %v1741_v12 = vsel %vm1679_vm13, %v4628_v37, %v9329_v14  ;;  %v4453_v61 = vunpack.i.h.bf16 %v6897_v13  ;;  %v9601_v37 = vld [vmem:[#allocation107_spill] sm:$0xff]  ;;  %v9602_v14 = vld [vmem:[#allocation34_spill] sm:$0xff] }
 0x4a7   : > { %1913 = vmatpush.msra.mxu0 %v1681_v15  ;;  %1856 = vmatmul.f32.vlgmr.msrb.gmra.mxu2 %v7222_v3  ;;  %v9600_v15 = vld [vmem:[#allocation69_spill] sm:$0xff]  ;;  %v4929_v25 = vpack.i.bf16 %v9603_v38, %v9602_v14 }
 0x4a8   : > { %1956 = vmatpush.msra.mxu2 %v9598_v27  ;;  %1870 = vmatpush.msrb.mxu3 %v1740_v47  ;;  %v4909_v56 = vpack.i.bf16 %v9600_v15, %v9599_v30  ;;  %v9606_v47 = vld [vmem:[#allocation94_spill] sm:$0xff]  ;;  %v4707_v15 = vunpack.i.l.bf16 %v7135_v43  ;;  %v9330_v30 = vunpack.i.h.bf16 %v7135_v43  ;;  %v1736_v14 = vsel %vm1679_vm13, %v4452_v44, %v4453_v61 }
 0x4a9   : > { %2014 = vmatpush.msrb.mxu0 %v9597_v33  ;;  %1928 = vmatpush.msra.mxu1 %v1741_v12  ;;  %v4904_v27 = vpack.i.bf16 %v9606_v47, %v9605_v59  ;;  %v9612_v44 = vld [vmem:[#allocation106_spill] sm:$0xff] }
 0x4aa   : > { %1957 = vmatpush.msra.mxu2 %v9604_v0  ;;  %4910 = vrot.lane.b32.xlu2 %v4909_v56, %s5373_s0  ;;  %v1738_v0 = vsel %vm1679_vm13, %v4543_v31, %v4547_v5  ;;  %v9608_v56 = vunpack.i.h.bf16 %v6899_v62  ;;  %v4623_v31 = vunpack.i.h.bf16 %v7172_v49 }
 0x4ab   : > { %2015 = vmatpush.msrb.mxu0 %v9601_v37  ;;  %4930 = vrot.lane.b32.xlu0 %v4929_v25, %s5373_s0  ;;  %v7253_v13 = vpop.permute.xlu2 %4765  ;;  %v7255_v12 = vpop.permute.xlu1 %4630 }
 0x4ac   : > { %1958 = vmatpush.msra.mxu2 %v9607_v10  ;;  %4905 = vrot.lane.b32.xlu1 %v4904_v27, %s5373_s0  ;;  %v7266_v25 = vpop.permute.xlu0 %4740  ;;  %v4703_v27 = vunpack.i.h.bf16 %v7088_v58  ;;  %v4622_v10 = vunpack.i.l.bf16 %v7172_v49  ;;  %v9332_v49 = vunpack.i.l.bf16 %v7088_v58 }
 0x4ad   : > { %2016 = vmatpush.msrb.mxu0 %v6305_v55  ;;  %v1739_v55 = vsel %vm1679_vm13, %v4547_v5, %v9608_v56  ;;  %9609 = vst [vmem:[#allocation97_spill] sm:$0xff] %v7266_v25  ;;  %1871 = vmatpush.msrb.mxu3 %v1738_v0  ;;  %v9610_v5 = vunpack.i.l.bf16 %v6702_v1  ;;  %v9611_v56 = vunpack.i.l.bf16 %v6867_v57  ;;  %v9613_v1 = vunpack.i.h.bf16 %v7021_v36 }
 0x4ae   : > { %1929 = vmatpush.msra.mxu1 %v1739_v55  ;;  %v4593_v55 = vunpack.i.h.bf16 %v6935_v9  ;;  %v1734_v59 = vsel %vm1679_vm13, %v4703_v27, %v4707_v15  ;;  %v9616_v27 = vld [vmem:[#allocation99_spill] sm:$0xff]  ;;  %v1732_v36 = vsel %vm1679_vm13, %v4622_v10, %v4623_v31  ;;  %v4533_v10 = vunpack.i.h.bf16 %v6839_v28  ;;  %1914 = vmatmul.f32.vlgmr.msra.gmra.mxu0 %v7222_v3 }
 0x4af   : > { %1959 = vmatpush.msra.mxu2 %v9610_v5  ;;  %2017 = vmatpush.msrb.mxu0 %v6262_v18  ;;  %v1737_v0 = vsel %vm1679_vm13, %v4453_v61, %v9611_v56  ;;  %v1735_v18 = vsel %vm1679_vm13, %v4707_v15, %v9330_v30  ;;  %v9614_v61 = vunpack.i.l.bf16 %v7220_v19  ;;  %v4537_v56 = vunpack.i.l.bf16 %v6887_v17 }
 0x4b0   : > { %1872 = vmatpush.msrb.mxu3 %v1736_v14  ;;  %1930 = vmatpush.msra.mxu1 %v1737_v0  ;;  %v4447_v0 = vunpack.i.l.bf16 %v6885_v53  ;;  %v9617_v15 = vunpack.i.l.bf16 %v6989_v16 }
 0x4b1   : > { %1859 = vmatmul.f32.gmra.mxu2 %v7271_v6  ;;  %2018 = vmatpush.msrb.mxu0 %v9612_v44  ;;  %v7295_v14 = vsel %vm2380_vm9, %v4593_v55, %v9614_v61  ;;  %v1733_v55 = vsel %vm1679_vm13, %v4623_v31, %v9332_v49  ;;  %v9619_v61 = vld [vmem:[#allocation36_spill] sm:$0xff]  ;;  %v9335_v31 = vunpack.i.h.bf16 %v7093_v23  ;;  %v9627_v49 = vunpack.i.l.bf16 %v6654_v60 }
 0x4b2   : > { %1960 = vmatpush.msra.mxu2 %v9613_v1  ;;  %1873 = vmatpush.msrb.mxu3 %v1734_v59  ;;  %9615 = vst [vmem:[#allocation86_spill] sm:$0xff] %v7295_v14  ;;  %v4448_v59 = vunpack.i.h.bf16 %v6885_v53  ;;  %v9618_v1 = vld [vmem:[#allocation68_spill] sm:$0xff]  ;;  %v9621_v53 = vld [vmem:[#allocation101_spill] sm:$0xff] }
 0x4b3   : > { %1931 = vmatpush.msra.mxu1 %v1735_v18  ;;  %2019 = vmatpush.msrb.mxu0 %v9616_v27  ;;  %v4924_v30 = vpack.i.bf16 %v9619_v61, %v9618_v1  ;;  %v7310_v18 = vpop.permute.xlu2 %4780  ;;  %v7312_v5 = vpop.permute.xlu1 %4635  ;;  %v4944_v16 = vpack.i.bf16 %v9601_v37, %v9621_v53  ;;  %v9625_v61 = vunpack.i.h.bf16 %v6754_v39  ;;  %v9626_v37 = vunpack.i.h.bf16 %v6887_v17 }
 0x4b4   : > { %1961 = vmatpush.msra.mxu2 %v9617_v15  ;;  %1874 = vmatpush.msrb.mxu3 %v1732_v36  ;;  %9620 = vst [vmem:[#allocation96_spill] sm:$0xff] %v7310_v18  ;;  %v9622_v36 = vld [vmem:[#allocation103_spill] sm:$0xff]  ;;  %v7320_v14 = vpop.permute.xlu0 %4760  ;;  %v4738_v39 = vunpack.i.h.bf16 %v7170_v8  ;;  %v4443_v1 = vunpack.i.h.bf16 %v6869_v40 }
 0x4b5   : > { %1932 = vmatpush.msra.mxu1 %v1733_v55  ;;  %2020 = vmatpush.msrb.mxu0 %v9575_v29  ;;  %v9623_v15 = vld [vmem:[#allocation67_spill] sm:$0xff]  ;;  %9624 = vst [vmem:[#allocation65_spill] sm:$0xff] %v7320_v14  ;;  %v4697_v55 = vunpack.i.l.bf16 %v7093_v23  ;;  %v1730_v29 = vsel %vm1679_vm13, %v4533_v10, %v4537_v56  ;;  %v1731_v19 = vsel %vm1679_vm13, %v4537_v56, %v9626_v37  ;;  %v4617_v10 = vunpack.i.l.bf16 %v7129_v51  ;;  %v9631_v37 = vld [vmem:[#allocation98_spill] sm:$0xff] }
 0x4b6   : > { %v4919_v9 = vpack.i.bf16 %v9623_v15, %v9622_v36  ;;  %1962 = vmatpush.msra.mxu2 %v9625_v61  ;;  %4925 = vrot.lane.b32.xlu2 %v4924_v30, %s5373_s0  ;;  %v1728_v30 = vsel %vm1679_vm13, %v4447_v0, %v4448_v59  ;;  %v7337_v61 = vld [vmem:[#allocation2 + $0x90] sm:$0xff]  ;;  %v9628_v56 = vunpack.i.l.bf16 %v6839_v28 }
 0x4b7   : > { %4945 = vrot.lane.b32.xlu0 %v4944_v16, %s5373_s0  ;;  %1875 = vmatpush.msrb.mxu3 %v1730_v29  ;;  %v4693_v16 = vunpack.i.h.bf16 %v7057_v2 }
 0x4b8   : > { %4920 = vrot.lane.b32.xlu1 %v4919_v9, %s5373_s0  ;;  %1933 = vmatpush.msra.mxu1 %v1731_v19  ;;  %v4618_v9 = vunpack.i.h.bf16 %v7129_v51  ;;  %v1729_v29 = vsel %vm1679_vm13, %v4448_v59, %v9628_v56  ;;  %v9629_v19 = vunpack.i.l.bf16 %v7266_v25  ;;  %v9339_v51 = vunpack.i.l.bf16 %v7057_v2  ;;  %v9640_v25 = vld [vmem:[#allocation126_spill] sm:$0xff] }
 0x4b9   : > { %1963 = vmatpush.msra.mxu2 %v9627_v49  ;;  %2021 = vmatpush.msrb.mxu0 %v6216_v21  ;;  %v1726_v60 = vsel %vm1679_vm13, %v4693_v16, %v4697_v55  ;;  %v9632_v21 = vunpack.i.h.bf16 %v6993_v26  ;;  %v1727_v49 = vsel %vm1679_vm13, %v4697_v55, %v9335_v31  ;;  %v4527_v56 = vunpack.i.l.bf16 %v6874_v54  ;;  %v9634_v16 = vld [vmem:[#allocation91_spill] sm:$0xff]  ;;  %v9637_v31 = vld [vmem:[#allocation114_spill] sm:$0xff] }
 0x4ba   : > { %1876 = vmatpush.msrb.mxu3 %v1728_v30  ;;  %1934 = vmatpush.msra.mxu1 %v1729_v29  ;;  %v7351_v0 = vsel %vm2380_vm9, %v4738_v39, %v9629_v19  ;;  %v1724_v29 = vsel %vm1679_vm13, %v4617_v10, %v4618_v9  ;;  %v1725_v55 = vsel %vm1679_vm13, %v4618_v9, %v9339_v51  ;;  %v4523_v10 = vunpack.i.h.bf16 %v9640_v25 }
 0x4bb   : > { %9630 = vst [vmem:[#allocation51_spill] sm:$0xff] %v7351_v0  ;;  %1862 = vmatmul.f32.gmra.mxu2 %v7337_v61  ;;  %2022 = vmatpush.msrb.mxu0 %v9631_v37  ;;  %v7362_v59 = vpop.permute.xlu2 %4800  ;;  %v7364_v39 = vpop.permute.xlu1 %4640  ;;  %v4442_v19 = vunpack.i.l.bf16 %v6869_v40  ;;  %v4758_v9 = vunpack.i.h.bf16 %v7217_v22  ;;  %v9643_v40 = vunpack.i.h.bf16 %v6874_v54  ;;  %v4687_v22 = vunpack.i.l.bf16 %v7060_v35 }
 0x4bc   : > { %1964 = vmatpush.msra.mxu2 %v9632_v21  ;;  %1877 = vmatpush.msrb.mxu3 %v1726_v60  ;;  %9633 = vst [vmem:[#allocation64_spill] sm:$0xff] %v7362_v59  ;;  %v7370_v26 = vpop.permute.xlu0 %4770  ;;  %v9635_v60 = vunpack.i.l.bf16 %v6977_v4  ;;  %v9636_v21 = vld [vmem:[#allocation50_spill] sm:$0xff]  ;;  %v9639_v59 = vld [vmem:[#allocation60_spill] sm:$0xff]  ;;  %v9641_v4 = vld [vmem:[#allocation53_spill] sm:$0xff]  ;;  %v1722_v51 = vsel %vm1679_vm13, %v4523_v10, %v4527_v56  ;;  %v9646_v10 = vunpack.i.l.bf16 %v6606_v45 }
 0x4bd   : > { %1935 = vmatpush.msra.mxu1 %v1727_v49  ;;  %2023 = vmatpush.msrb.mxu0 %v9634_v16  ;;  %v4934_v30 = vpack.i.bf16 %v9637_v31, %v9636_v21  ;;  %v9638_v49 = vld [vmem:[#allocation66_spill] sm:$0xff] }
 0x4be   : > { %1965 = vmatpush.msra.mxu2 %v9635_v60  ;;  %1878 = vmatpush.msrb.mxu3 %v1724_v29  ;;  %v4959_v0 = vpack.i.bf16 %v9639_v59, %v9638_v49  ;;  %v4949_v29 = vpack.i.bf16 %v9612_v44, %v9641_v4  ;;  %v9642_v60 = vunpack.i.h.bf16 %v6706_v20  ;;  %v7401_v20 = vld [vmem:[#allocation2 + $0xd0] sm:$0xff]  ;;  %v9663_v59 = vunpack.i.h.bf16 %v9582_v50 }
 0x4bf   : > { %1936 = vmatpush.msra.mxu1 %v1725_v55  ;;  %2024 = vmatpush.msrb.mxu0 %v9571_v34  ;;  %v1723_v34 = vsel %vm1679_vm13, %v4527_v56, %v9643_v40  ;;  %v9342_v55 = vunpack.i.l.bf16 %v9640_v25  ;;  %v1720_v56 = vsel %vm1679_vm13, %v4442_v19, %v4443_v1  ;;  %v9647_v40 = vld [vmem:[#allocation40_spill] sm:$0xff]  ;;  %v4783_v44 = vunpack.i.h.bf16 %v7310_v18 }
 0x4c0   : > { %1966 = vmatpush.msra.mxu2 %v9642_v60  ;;  %4935 = vrot.lane.b32.xlu2 %v4934_v30, %s5373_s0  ;;  %v9644_v30 = vunpack.i.l.bf16 %v7320_v14  ;;  %v4613_v60 = vunpack.i.h.bf16 %v7090_v41 }
 0x4c1   : > { %4950 = vrot.lane.b32.xlu0 %v4949_v29, %s5373_s0  ;;  %4960 = vrot.lane.b32.xlu1 %v4959_v0, %s5373_s0  ;;  %v4683_v29 = vunpack.i.h.bf16 %v7038_v42 }
 0x4c2   : > { %1879 = vmatpush.msrb.mxu3 %v1722_v51  ;;  %1937 = vmatpush.msra.mxu1 %v1723_v34  ;;  %v7406_v0 = vsel %vm2380_vm9, %v4758_v9, %v9644_v30  ;;  %v4612_v51 = vunpack.i.l.bf16 %v7090_v41  ;;  %v1721_v9 = vsel %vm1679_vm13, %v4443_v1, %v9342_v55 }
 0x4c3   : > { %9645 = vst [vmem:[#allocation43_spill] sm:$0xff] %v7406_v0  ;;  %1967 = vmatpush.msra.mxu2 %v9646_v10  ;;  %2025 = vmatpush.msrb.mxu0 %v9647_v40  ;;  %v7419_v34 = vpop.permute.xlu2 %4810  ;;  %v7421_v30 = vpop.permute.xlu1 %4645  ;;  %v9649_v10 = vunpack.i.h.bf16 %v9576_v24  ;;  %v1718_v1 = vsel %vm1679_vm13, %v4683_v29, %v4687_v22  ;;  %v4517_v0 = vunpack.i.l.bf16 %v6853_v32 }
 0x4c4   : > { %1880 = vmatpush.msrb.mxu3 %v1720_v56  ;;  %1938 = vmatpush.msra.mxu1 %v1721_v9  ;;  %v7424_v45 = vpop.permute.xlu0 %4785  ;;  %v9650_v56 = vld [vmem:[#allocation32_spill] sm:$0xff]  ;;  %v9653_v9 = vunpack.i.h.bf16 %v7060_v35  ;;  %v1716_v29 = vsel %vm1679_vm13, %v4612_v51, %v4613_v60  ;;  %v4437_v51 = vunpack.i.l.bf16 %v6841_v46 }
 0x4c5   : > { %1865 = vmatmul.f32.gmra.mxu2 %v7401_v20  ;;  %9648 = vst [vmem:[#allocation113_spill] sm:$0xff] %v7424_v45  ;;  %v9651_v40 = vmax.f32 %v9650_v56, 0.0  ;;  %v9655_v56 = vld [vmem:[#allocation28_spill] sm:$0xff]  ;;  %1917 = vmatmul.f32.gmra.mxu0 %v7271_v6 }
 0x4c6   : > { %1968 = vmatpush.msra.mxu2 %v9649_v10  ;;  %v1719_v55 = vsel %vm1679_vm13, %v4687_v22, %v9653_v9  ;;  %1881 = vmatpush.msrb.mxu3 %v1718_v1  ;;  %v9654_v10 = vunpack.i.l.bf16 %v9579_v48  ;;  %v9656_v19 = vmax.f32 %v9655_v56, 0.0  ;;  %v9657_v22 = vunpack.i.l.bf16 %v7038_v42  ;;  %v9658_v1 = vld [vmem:[#allocation119_spill] sm:$0xff]  ;;  %v9659_v9 = vld [vmem:[#allocation37_spill] sm:$0xff] }
 0x4c7   : > { %3934 = vmatpush.msk.msrb.mxu0 %vm5956_vm5, %v9651_v40  ;;  %1939 = vmatpush.msra.mxu1 %v1719_v55  ;;  %v4513_v55 = vunpack.i.h.bf16 %v9658_v1  ;;  %v4939_v41 = vpack.i.bf16 %v9597_v33, %v9659_v9  ;;  %v9660_v48 = vld [vmem:[#allocation115_spill] sm:$0xff]  ;;  %v9662_v56 = vld [vmem:[#allocation93_spill] sm:$0xff] }
 0x4c8   : > { %1969 = vmatpush.msra.mxu2 %v9654_v10  ;;  %v1717_v40 = vsel %vm1679_vm13, %v4613_v60, %v9657_v22  ;;  %1882 = vmatpush.msrb.mxu3 %v1716_v29  ;;  %v9661_v10 = vld [vmem:[#allocation88_spill] sm:$0xff]  ;;  %v4964_v14 = vpack.i.bf16 %v6844_v11, %v9662_v56  ;;  %v9664_v60 = vld [vmem:[#allocation27_spill] sm:$0xff]  ;;  %v9666_v29 = vunpack.i.h.bf16 %v7370_v26 }
 0x4c9   : > { %3935 = vmatpush.msk.msrb.mxu0 %vm5956_vm5, %v9656_v19  ;;  %1940 = vmatpush.msra.mxu1 %v1717_v40  ;;  %v4954_v24 = vpack.i.bf16 %v9661_v10, %v9660_v48  ;;  %v4438_v19 = vunpack.i.h.bf16 %v6841_v46  ;;  %v9665_v22 = vmax.f32 %v9664_v60, 0.0  ;;  %v9667_v40 = vunpack.i.h.bf16 %v7253_v13 }
 0x4ca   : > { %1970 = vmatpush.msra.mxu2 %v9663_v59  ;;  %4940 = vrot.lane.b32.xlu2 %v4939_v41, %s5373_s0  ;;  %v1714_v50 = vsel %vm1679_vm13, %v4513_v55, %v4517_v0  ;;  %v9351_v46 = vunpack.i.l.bf16 %v9658_v1  ;;  %v9350_v59 = vunpack.i.h.bf16 %v7255_v12  ;;  %v9668_v60 = vunpack.i.h.bf16 %v6853_v32  ;;  %v9671_v55 = vld [vmem:[#allocation22_spill] sm:$0xff] }
 0x4cb   : > { %3936 = vmatpush.msk.msrb.mxu0 %vm5956_vm5, %v9665_v22  ;;  %v7472_v9 = vsel %vm2380_vm9, %v9667_v40, %v9666_v29  ;;  %4955 = vrot.lane.b32.xlu0 %v4954_v24, %s5373_s0  ;;  %v7483_v33 = vpop.permute.xlu2 %4820  ;;  %v7485_v29 = vpop.permute.xlu1 %4725  ;;  %v9670_v24 = vunpack.i.l.bf16 %v9585_v63  ;;  %v9672_v40 = vmax.f32 %v9671_v55, 0.0 }
 0x4cc   : > { %4965 = vrot.lane.b32.xlu1 %v4964_v14, %s5373_s0  ;;  %1883 = vmatpush.msrb.mxu3 %v1714_v50  ;;  %v1715_v22 = vsel %vm1679_vm13, %v4517_v0, %v9668_v60  ;;  %v7488_v41 = vpop.permute.xlu0 %4805  ;;  %v9345_v14 = vunpack.i.l.bf16 %v7424_v45  ;;  %v1712_v0 = vsel %vm1679_vm13, %v4437_v51, %v4438_v19  ;;  %v1713_v50 = vsel %vm1679_vm13, %v4438_v19, %v9351_v46  ;;  %v7501_v60 = vld [vmem:[#allocation2 + $0x18] sm:$0xff] }
 0x4cd   : > { %1941 = vmatpush.msra.mxu1 %v1715_v22  ;;  %9669 = vst [vmem:[#allocation107_spill] sm:$0xff] %v7488_v41  ;;  %1971 = vmatpush.msra.mxu2 %v9670_v24  ;;  %v9673_v22 = vunpack.i.l.bf16 %v7419_v34  ;;  %v9674_v19 = vunpack.i.h.bf16 %v7177_v52  ;;  %v9676_v24 = vld [vmem:[#allocation134_spill] sm:$0xff]  ;;  %v9679_v52 = vld [vmem:[#allocation133_spill] sm:$0xff] }
 0x4ce   : > { %3937 = vmatpush.msk.msrb.mxu0 %vm5956_vm5, %v9672_v40  ;;  %1884 = vmatpush.msrb.mxu3 %v1712_v0  ;;  %v7521_v51 = vsel %vm2895_vm15, %v4783_v44, %v9345_v14  ;;  %v9680_v40 = vld [vmem:[#allocation54_spill] sm:$0xff]  ;;  %v9681_v0 = vld [vmem:[#allocation123_spill] sm:$0xff]  ;;  %v9684_v44 = vld [vmem:[#allocation129_spill] sm:$0xff]  ;;  %v9712_v14 = vunpack.i.l.bf16 %v7057_v2 }
 0x4cf   : > { %v7508_v63 = vsel %vm2380_vm9, %v9350_v59, %v9673_v22  ;;  %1942 = vmatpush.msra.mxu1 %v1713_v50  ;;  %2072 = vmatpush.msrb.mxu2 %v9621_v53  ;;  %9675 = vst [vmem:[#allocation34_spill] sm:$0xff] %v7521_v51  ;;  %v9677_v53 = vld [vmem:[#allocation108_spill] sm:$0xff]  ;;  %v4969_v50 = vpack.i.bf16 %v9616_v27, %v9681_v0  ;;  %v9688_v27 = vld [vmem:[#allocation81_spill] sm:$0xff]  ;;  %v9729_v45 = vld [vmem:[#allocation30_spill] sm:$0xff] }
 0x4d0   : > { %2130 = vmatpush.msra.mxu0 %v9606_v47  ;;  %1885 = vmatmul.f32.vlgmr.msrb.gmra.mxu3 %v7501_v60  ;;  %v9678_v47 = vunpack.i.l.bf16 %v7127_v7  ;;  %v9683_v7 = vld [vmem:[#allocation87_spill] sm:$0xff]  ;;  %v9730_v51 = vmax.f32 %v9729_v45, 0.0  ;;  %v9733_v45 = vld [vmem:[#allocation29_spill] sm:$0xff]  ;;  %v9768_v41 = vld [vmem:[#allocation78_spill] sm:$0xff] }
 0x4d1   : > { %1943 = vmatmul.f32.vlgmr.msra.gmra.mxu1 %v7501_v60  ;;  %1972 = vmatmul.f32.vlgmr.msra.gmra.mxu2 %v7222_v3 }
 0x4d2   : > { %1985 = vmatpush.msra.mxu3 %v9674_v19  ;;  %2043 = vmatpush.msrb.mxu1 %v9676_v24  ;;  %v4984_v19 = vpack.i.bf16 %v9684_v44, %v9683_v7  ;;  %v9685_v24 = vld [vmem:[#allocation116_spill] sm:$0xff] }
 0x4d3   : > { %2073 = vmatpush.msrb.mxu2 %v9677_v53  ;;  %2131 = vmatpush.msra.mxu0 %v9622_v36  ;;  %v7528_v55 = vpop.permute.xlu2 %4830  ;;  %v7530_v3 = vpop.permute.xlu1 %4730  ;;  %v9682_v36 = vunpack.i.h.bf16 %v6899_v62  ;;  %v4994_v53 = vpack.i.bf16 %v9634_v16, %v9685_v24  ;;  %v7551_v62 = vld [vmem:[#allocation2 + $0x58] sm:$0xff] }
 0x4d4   : > { %1986 = vmatpush.msra.mxu3 %v9678_v47  ;;  %2044 = vmatpush.msrb.mxu1 %v9679_v52  ;;  %v7536_v22 = vpop.permute.xlu0 %4815  ;;  %v9686_v47 = vld [vmem:[#allocation84_spill] sm:$0xff]  ;;  %v9692_v52 = vld [vmem:[#allocation95_spill] sm:$0xff] }
 0x4d5   : > { %2074 = vmatpush.msrb.mxu2 %v9680_v40  ;;  %2132 = vmatpush.msra.mxu0 %v9603_v38  ;;  %v9687_v38 = vunpack.i.l.bf16 %v6867_v57  ;;  %v9690_v57 = vunpack.i.h.bf16 %v7135_v43  ;;  %v9346_v40 = vunpack.i.l.bf16 %v7170_v8  ;;  %v9697_v43 = vld [vmem:[#allocation76_spill] sm:$0xff] }
 0x4d6   : > { %1987 = vmatpush.msra.mxu3 %v9682_v36  ;;  %2045 = vmatpush.msrb.mxu1 %v9686_v47  ;;  %v9694_v36 = vld [vmem:[#allocation128_spill] sm:$0xff] }
 0x4d7   : > { %4970 = vrot.lane.b32.xlu2 %v4969_v50, %s5373_s0  ;;  %4985 = vrot.lane.b32.xlu0 %v4984_v19, %s5373_s0  ;;  %v9693_v50 = vunpack.i.l.bf16 %v7088_v58  ;;  %v9696_v19 = vld [vmem:[#allocation44_spill] sm:$0xff] }
 0x4d8   : > { %4995 = vrot.lane.b32.xlu1 %v4994_v53, %s5373_s0  ;;  %2075 = vmatpush.msrb.mxu2 %v9641_v4  ;;  %v9698_v53 = vunpack.i.h.bf16 %v6887_v17  ;;  %v9699_v47 = vld [vmem:[#allocation80_spill] sm:$0xff]  ;;  %v9703_v17 = vld [vmem:[#allocation47_spill] sm:$0xff] }
 0x4d9   : > { %2133 = vmatpush.msra.mxu0 %v9636_v21  ;;  %1988 = vmatpush.msra.mxu3 %v9687_v38  ;;  %v9700_v38 = vld [vmem:[#allocation120_spill] sm:$0xff] }
 0x4da   : > { %1920 = vmatmul.f32.gmra.mxu0 %v7337_v61  ;;  %2046 = vmatpush.msrb.mxu1 %v9688_v27  ;;  %v9701_v27 = vld [vmem:[#allocation109_spill] sm:$0xff] }
 0x4db   : > { %2076 = vmatpush.msrb.mxu2 %v9662_v56  ;;  %2134 = vmatpush.msra.mxu0 %v9661_v10  ;;  %v7560_v16 = vpop.permute.xlu2 %4840  ;;  %v7562_v4 = vpop.permute.xlu1 %4745  ;;  %v9347_v56 = vunpack.i.h.bf16 %v7530_v3  ;;  %v9691_v10 = vld [vmem:[#allocation100_spill] sm:$0xff] }
 0x4dc   : > { %1888 = vmatmul.f32.gmra.mxu3 %v7551_v62  ;;  %9689 = vst [vmem:[#allocation49_spill] sm:$0xff] %v7560_v16  ;;  %1946 = vmatmul.f32.gmra.mxu1 %v7551_v62  ;;  %v7566_v21 = vpop.permute.xlu0 %4825 }
 0x4dd   : > { %1975 = vmatmul.f32.gmra.mxu2 %v7271_v6  ;;  %1989 = vmatpush.msra.mxu3 %v9690_v57  ;;  %v9695_v6 = vld [vmem:[#allocation48_spill] sm:$0xff]  ;;  %v4999_v57 = vpack.i.bf16 %v9701_v27, %v9700_v38  ;;  %v7592_v58 = vsel %vm2380_vm9, %v9347_v56, %v9346_v40  ;;  %v9717_v56 = vld [vmem:[#allocation38_spill] sm:$0xff] }
 0x4de   : > { %2047 = vmatpush.msrb.mxu1 %v6844_v11  ;;  %2077 = vmatpush.msrb.mxu2 %v9691_v10  ;;  %v4974_v11 = vpack.i.bf16 %v9631_v37, %v9697_v43  ;;  %v9702_v10 = vld [vmem:[#allocation61_spill] sm:$0xff] }
 0x4df   : > { %2135 = vmatpush.msra.mxu0 %v9692_v52  ;;  %1990 = vmatpush.msra.mxu3 %v9693_v50 }
 0x4e0   : > { %2048 = vmatpush.msrb.mxu1 %v9694_v36  ;;  %2078 = vmatpush.msrb.mxu2 %v9695_v6  ;;  %v9704_v36 = vld [vmem:[#allocation45_spill] sm:$0xff]  ;;  %v9705_v6 = vunpack.i.l.bf16 %v6839_v28  ;;  %v9708_v28 = vunpack.i.h.bf16 %v7093_v23  ;;  %v9714_v23 = vld [vmem:[#allocation42_spill] sm:$0xff] }
 0x4e1   : > { %2136 = vmatpush.msra.mxu0 %v9696_v19  ;;  %1991 = vmatpush.msra.mxu3 %v9698_v53  ;;  %v7606_v53 = vld [vmem:[#allocation2 + $0x98] sm:$0xff] }
 0x4e2   : > { %2049 = vmatpush.msrb.mxu1 %v9699_v47  ;;  %4975 = vrot.lane.b32.xlu2 %v4974_v11, %s5373_s0  ;;  %v9706_v11 = vld [vmem:[#allocation75_spill] sm:$0xff] }
 0x4e3   : > { %4990 = vrot.lane.b32.xlu0 %v9702_v10, %s5373_s0  ;;  %5000 = vrot.lane.b32.xlu1 %v4999_v57, %s5373_s0  ;;  %v7599_v37 = vpop.permute.xlu2 %4850  ;;  %v7601_v50 = vpop.permute.xlu1 %4750  ;;  %v9348_v57 = vunpack.i.l.bf16 %v7560_v16  ;;  %v9707_v10 = vld [vmem:[#allocation85_spill] sm:$0xff] }
 0x4e4   : > { %2079 = vmatpush.msrb.mxu2 %v9703_v17  ;;  %2137 = vmatpush.msra.mxu0 %v9704_v36  ;;  %v7608_v47 = vpop.permute.xlu0 %4835  ;;  %v9349_v17 = vunpack.i.h.bf16 %v7421_v30 }
 0x4e5   : > { %1992 = vmatpush.msra.mxu3 %v9705_v6  ;;  %1923 = vmatmul.f32.gmra.mxu0 %v7401_v20  ;;  %v9709_v6 = vld [vmem:[#allocation92_spill] sm:$0xff] }
 0x4e6   : > { %2050 = vmatpush.msrb.mxu1 %v9706_v11  ;;  %2080 = vmatpush.msrb.mxu2 %v9683_v7  ;;  %v7628_v7 = vsel %vm2380_vm9, %v9349_v17, %v9348_v57  ;;  %v9711_v11 = vld [vmem:[#allocation89_spill] sm:$0xff]  ;;  %v9718_v57 = vunpack.i.h.bf16 %v6874_v54  ;;  %v9719_v17 = vld [vmem:[#allocation71_spill] sm:$0xff]  ;;  %v9354_v54 = vunpack.i.h.bf16 %v7485_v29 }
 0x4e7   : > { %2138 = vmatpush.msra.mxu0 %v9707_v10  ;;  %1891 = vmatmul.f32.gmra.mxu3 %v7606_v53  ;;  %9710 = vst [vmem:[#allocation94_spill] sm:$0xff] %v7628_v7  ;;  %v5014_v2 = vpack.i.bf16 %v9707_v10, %v9719_v17  ;;  %v9723_v10 = vld [vmem:[#allocation39_spill] sm:$0xff] }
 0x4e8   : > { %1949 = vmatmul.f32.gmra.mxu1 %v7606_v53  ;;  %1978 = vmatmul.f32.gmra.mxu2 %v7337_v61  ;;  %v9713_v61 = vld [vmem:[#allocation121_spill] sm:$0xff] }
 0x4e9   : > { %1993 = vmatpush.msra.mxu3 %v9708_v28  ;;  %2051 = vmatpush.msrb.mxu1 %v9684_v44  ;;  %v9715_v28 = vld [vmem:[#allocation117_spill] sm:$0xff] }
 0x4ea   : > { %2081 = vmatpush.msrb.mxu2 %v9709_v6  ;;  %2139 = vmatpush.msra.mxu0 %v9711_v11  ;;  %v4979_v44 = vpack.i.bf16 %v9692_v52, %v9715_v28  ;;  %v7652_v52 = vld [vmem:[#allocation2] sm:$0xff] }
 0x4eb   : > { %1994 = vmatpush.msra.mxu3 %v9712_v14  ;;  %2052 = vmatpush.msrb.mxu1 %v9713_v61  ;;  %v7637_v6 = vpop.permute.xlu2 %4860  ;;  %v7639_v40 = vpop.permute.xlu1 %4775  ;;  %v9720_v14 = vld [vmem:[#allocation125_spill] sm:$0xff] }
 0x4ec   : > { %2082 = vmatpush.msrb.mxu2 %v9714_v23  ;;  %9716 = vst [vmem:[#allocation106_spill] sm:$0xff] %v7639_v40  ;;  %2140 = vmatpush.msra.mxu0 %v9717_v56  ;;  %v5004_v61 = vpack.i.bf16 %v9696_v19, %v9720_v14  ;;  %v7648_v59 = vpop.permute.xlu0 %4845  ;;  %v9721_v23 = vld [vmem:[#allocation74_spill] sm:$0xff] }
 0x4ed   : > { %1995 = vmatpush.msra.mxu3 %v9718_v57  ;;  %2053 = vmatpush.msrb.mxu1 %v9721_v23  ;;  %v9722_v57 = vld [vmem:[#allocation41_spill] sm:$0xff]  ;;  %v7660_v19 = vld [vmem:[#allocation2 + $0xd8] sm:$0xff]  ;;  %v9724_v23 = vunpack.i.l.bf16 %v9640_v25 }
 0x4ee   : > { %4980 = vrot.lane.b32.xlu2 %v4979_v44, %s5373_s0  ;;  %5015 = vrot.lane.b32.xlu0 %v5014_v2, %s5373_s0  ;;  %v9725_v44 = vld [vmem:[#allocation31_spill] sm:$0xff]  ;;  %v7755_v2 = vld [vmem:[#allocation2 + $0x8] sm:$0xff] }
 0x4ef   : > { %5005 = vrot.lane.b32.xlu1 %v5004_v61, %s5373_s0  ;;  %2083 = vmatpush.msrb.mxu2 %v9722_v57  ;;  %v9726_v46 = vmax.f32 %v9725_v44, 0.0  ;;  %v9728_v61 = vunpack.i.l.bf16 %v7599_v37 }
 0x4f0   : > { %2141 = vmatpush.msra.mxu0 %v9723_v10  ;;  %1996 = vmatpush.msra.mxu3 %v9724_v23 }
 0x4f1   : > { %2030 = vmatmul.f32.vlgmr.msrb.gmra.mxu0 %v7652_v52  ;;  %2054 = vmatpush.msrb.mxu1 %v9623_v15  ;;  %v7675_v57 = vsel %vm2380_vm9, %v9354_v54, %v9728_v61  ;;  %v9734_v61 = vmax.f32 %v9733_v45, 0.0  ;;  %v9738_v45 = vld [vmem:[#allocation24_spill] sm:$0xff] }
 0x4f2   : > { %3938 = vmatpush.msk.msrb.mxu2 %vm5946_vm4, %v9726_v46  ;;  %3942 = vmatpush.msk.msra.mxu0 %vm5965_vm6, %v9730_v51  ;;  %v9732_v46 = vunpack.i.h.bf16 %v7060_v35  ;;  %v9735_v51 = vld [vmem:[#allocation35_spill] sm:$0xff]  ;;  %v9737_v35 = vunpack.i.l.bf16 %v7038_v42  ;;  %v9739_v8 = vmax.f32 %v9738_v45, 0.0  ;;  %v9745_v45 = vld [vmem:[#allocation110_spill] sm:$0xff] }
 0x4f3   : > { %1894 = vmatmul.f32.gmra.mxu3 %v7660_v19  ;;  %1952 = vmatmul.f32.gmra.mxu1 %v7660_v19  ;;  %v7684_v15 = vpop.permute.xlu1 %4790  ;;  %v9736_v54 = vmax.f32 %v9735_v51, 0.0 }
 0x4f4   : > { %1981 = vmatmul.f32.gmra.mxu2 %v7401_v20  ;;  %1997 = vmatpush.msra.mxu3 %v9732_v46  ;;  %v7689_v23 = vpop.permute.xlu0 %4855  ;;  %v7691_v44 = vpop.permute.xlu2 %4880  ;;  %v4843_v46 = vunpack.i.h.bf16 %v7560_v16  ;;  %v9744_v20 = vunpack.i.h.bf16 %v6853_v32  ;;  %v9748_v32 = vld [vmem:[#allocation19_spill] sm:$0xff] }
 0x4f5   : > { %2055 = vmatpush.msrb.mxu1 %v9700_v38  ;;  %3939 = vmatpush.msk.msrb.mxu2 %vm5946_vm4, %v9734_v61  ;;  %v9740_v61 = vld [vmem:[#allocation21_spill] sm:$0xff]  ;;  %v9356_v38 = vunpack.i.l.bf16 %v7310_v18 }
 0x4f6   : > { %3943 = vmatpush.msk.msra.mxu0 %vm5965_vm6, %v9736_v54  ;;  %1998 = vmatpush.msra.mxu3 %v9737_v35  ;;  %v9741_v51 = vmax.f32 %v9740_v61, 0.0  ;;  %v9742_v54 = vld [vmem:[#allocation70_spill] sm:$0xff]  ;;  %v7727_v61 = vld [vmem:[#allocation2 + $0x40] sm:$0xff] }
 0x4f7   : > { %2056 = vmatpush.msrb.mxu1 %v9637_v31  ;;  %3940 = vmatpush.msk.msrb.mxu2 %vm5946_vm4, %v9739_v8  ;;  %v5009_v42 = vpack.i.bf16 %v9704_v36, %v9742_v54  ;;  %v9743_v35 = vld [vmem:[#allocation62_spill] sm:$0xff]  ;;  %v5019_v8 = vpack.i.bf16 %v9711_v11, %v9745_v45  ;;  %v4837_v36 = vunpack.i.l.bf16 %v7608_v47 }
 0x4f8   : > { %3944 = vmatpush.msk.msra.mxu0 %vm5965_vm6, %v9741_v51  ;;  %v5029_v31 = vpack.i.bf16 %v9723_v10, %v9743_v35  ;;  %1999 = vmatpush.msra.mxu3 %v9744_v20  ;;  %v9746_v10 = vunpack.i.l.bf16 %v7648_v59  ;;  %v9750_v20 = vunpack.i.h.bf16 %v7639_v40  ;;  %v9766_v40 = vld [vmem:[#allocation63_spill] sm:$0xff] }
 0x4f9   : > { %2057 = vmatpush.msrb.mxu1 %v9638_v49  ;;  %5010 = vrot.lane.b32.xlu2 %v5009_v42, %s5373_s0  ;;  %v9749_v49 = vmax.f32 %v9748_v32, 0.0  ;;  %v9755_v32 = vld [vmem:[#allocation58_spill] sm:$0xff] }
 0x4fa   : > { %5030 = vrot.lane.b32.xlu0 %v5029_v31, %s5373_s0  ;;  %v7733_v51 = vsel %vm2380_vm9, %v4843_v46, %v9746_v10  ;;  %5020 = vrot.lane.b32.xlu1 %v5019_v8, %s5373_s0  ;;  %v7746_v42 = vsel %vm2895_vm15, %v9750_v20, %v9356_v38  ;;  %v4833_v31 = vunpack.i.h.bf16 %v7528_v55  ;;  %v9752_v46 = vld [vmem:[#allocation26_spill] sm:$0xff]  ;;  %v9754_v8 = vunpack.i.l.bf16 %v9658_v1  ;;  %v9757_v20 = vld [vmem:[#allocation124_spill] sm:$0xff] }
 0x4fb   : > { %9747 = vst [vmem:[#allocation99_spill] sm:$0xff] %v7733_v51  ;;  %3941 = vmatpush.msk.msrb.mxu2 %vm5946_vm4, %v9749_v49  ;;  %v9753_v10 = vmax.f32 %v9752_v46, 0.0  ;;  %2033 = vmatmul.f32.gmra.mxu0 %v7727_v61  ;;  %v9756_v49 = vld [vmem:[#allocation130_spill] sm:$0xff]  ;;  %v9759_v1 = vunpack.i.h.bf16 %v7608_v47 }
 0x4fc   : > { %9751 = vst [vmem:[#allocation36_spill] sm:$0xff] %v7746_v42  ;;  %2000 = vmatpush.msra.mxu3 %v9754_v8  ;;  %2058 = vmatpush.msrb.mxu1 %v9755_v32  ;;  %v2411_v38 = vsel %vm2380_vm9, %v4833_v31, %v4837_v36  ;;  %v7762_v11 = vpop.permute.xlu0 %4865  ;;  %v7764_v46 = vpop.permute.xlu2 %4895  ;;  %v9760_v8 = vld [vmem:[#allocation132_spill] sm:$0xff]  ;;  %v4643_v31 = vunpack.i.h.bf16 %v7364_v39  ;;  %v4642_v32 = vunpack.i.l.bf16 %v7364_v39  ;;  %v9763_v42 = vld [vmem:[#allocation83_spill] sm:$0xff]  ;;  %v9769_v39 = vld [vmem:[#allocation145_spill] sm:$0xff] }
 0x4fd   : > { %3945 = vmatpush.msk.msra.mxu0 %vm5965_vm6, %v9753_v10  ;;  %9758 = vst [vmem:[#allocation101_spill] sm:$0xff] %v7764_v46  ;;  %2001 = vmatmul.f32.vlgmr.msra.gmra.mxu3 %v7501_v60  ;;  %v2412_v25 = vsel %vm2380_vm9, %v4837_v36, %v9759_v1  ;;  %v7771_v10 = vpop.permute.xlu1 %4795  ;;  %v9762_v60 = vld [vmem:[#allocation118_spill] sm:$0xff]  ;;  %v9764_v36 = vld [vmem:[#allocation55_spill] sm:$0xff]  ;;  %v9765_v1 = vld [vmem:[#allocation56_spill] sm:$0xff] }
 0x4fe   : > { %2101 = vmatpush.msrb.mxu3 %v9756_v49  ;;  %2159 = vmatpush.msra.mxu1 %v9757_v20  ;;  %v9761_v20 = vld [vmem:[#allocation131_spill] sm:$0xff]  ;;  %v5024_v18 = vpack.i.bf16 %v9717_v56, %v9762_v60  ;;  %v5044_v16 = vpack.i.bf16 %v9765_v1, %v9764_v36  ;;  %v9362_v49 = vunpack.i.h.bf16 %v9769_v39 }
 0x4ff   : > { %2059 = vmatmul.f32.vlgmr.msrb.gmra.mxu1 %v7755_v2  ;;  %2088 = vmatmul.f32.vlgmr.msrb.gmra.mxu2 %v7652_v52  ;;  %v7791_v56 = vld [vmem:[#allocation2 + $0x80] sm:$0xff] }
 0x500   : > { %2102 = vmatpush.msrb.mxu3 %v9760_v8  ;;  %2160 = vmatpush.msra.mxu1 %v9761_v20  ;;  %v9767_v8 = vld [vmem:[#allocation33_spill] sm:$0xff]  ;;  %v9772_v20 = vunpack.i.l.bf16 %v7528_v55 }
 0x501   : > { %2541 = vmatpush.msra.mxu2 %v2411_v38  ;;  %2599 = vmatpush.msrb.mxu0 %v2412_v25  ;;  %v5034_v7 = vpack.i.bf16 %v9767_v8, %v9766_v40  ;;  %v9770_v38 = vld [vmem:[#allocation82_spill] sm:$0xff]  ;;  %v2409_v25 = vsel %vm2380_vm9, %v4642_v32, %v4643_v31  ;;  %v9775_v32 = vunpack.i.l.bf16 %v9769_v39 }
 0x502   : > { %2103 = vmatpush.msrb.mxu3 %v9763_v42  ;;  %2161 = vmatpush.msra.mxu1 %v9768_v41  ;;  %v9771_v42 = vld [vmem:[#allocation79_spill] sm:$0xff]  ;;  %v2410_v41 = vsel %vm2380_vm9, %v4643_v31, %v9772_v20  ;;  %v4823_v20 = vunpack.i.h.bf16 %v7483_v33 }
 0x503   : > { %5025 = vrot.lane.b32.xlu2 %v5024_v18, %s5373_s0  ;;  %5045 = vrot.lane.b32.xlu0 %v5044_v16, %s5373_s0  ;;  %v9773_v18 = vld [vmem:[#allocation144_spill] sm:$0xff]  ;;  %v2408_v31 = vsel %vm2380_vm9, %v9775_v32, %v9362_v49  ;;  %v9779_v49 = vld [vmem:[#allocation149_spill] sm:$0xff] }
 0x504   : > { %5035 = vrot.lane.b32.xlu1 %v5034_v7, %s5373_s0  ;;  %2104 = vmatpush.msrb.mxu3 %v9770_v38  ;;  %v4467_v8 = vunpack.i.l.bf16 %v9773_v18  ;;  %v7802_v16 = vld [vmem:[#allocation2 + $0x48] sm:$0xff]  ;;  %v7811_v38 = vpop.permute.xlu2 %4910 }
 0x505   : > { %2162 = vmatpush.msra.mxu1 %v9771_v42  ;;  %2542 = vmatpush.msra.mxu2 %v2409_v25  ;;  %v9774_v7 = vld [vmem:[#allocation148_spill] sm:$0xff]  ;;  %9776 = vst [vmem:[#allocation103_spill] sm:$0xff] %v7811_v38  ;;  %v7813_v42 = vpop.permute.xlu0 %4885 }
 0x506   : > { %2600 = vmatpush.msrb.mxu0 %v2410_v41  ;;  %2105 = vmatpush.msrb.mxu3 %v9681_v0  ;;  %v4827_v0 = vunpack.i.l.bf16 %v7566_v21  ;;  %v9777_v41 = vld [vmem:[#allocation127_spill] sm:$0xff]  ;;  %v1163_v25 = vld [vmem:[%s9091_s8 + $0x8] sm:$0xff]  ;;  %v9364_v38 = vunpack.i.l.bf16 %v7813_v42 }
 0x507   : > { %2036 = vmatmul.f32.gmra.mxu0 %v7791_v56  ;;  %2163 = vmatpush.msra.mxu1 %v9715_v28  ;;  %v7818_v28 = vpop.permute.xlu1 %4870 }
 0x508   : > { %2543 = vmatpush.msra.mxu2 %v9774_v7  ;;  %2601 = vmatpush.msrb.mxu0 %v2408_v31  ;;  %v9778_v7 = vunpack.i.h.bf16 %v9773_v18  ;;  %v4638_v31 = vunpack.i.h.bf16 %v7312_v5  ;;  %v9781_v18 = vunpack.i.h.bf16 %v7566_v21 }
 0x509   : > { %2004 = vmatmul.f32.gmra.mxu3 %v7551_v62  ;;  %2062 = vmatmul.f32.gmra.mxu1 %v7802_v16  ;;  %v4637_v62 = vunpack.i.l.bf16 %v7312_v5  ;;  %v9782_v5 = vld [vmem:[#allocation102_spill] sm:$0xff] }
 0x50a   : > { %2091 = vmatmul.f32.gmra.mxu2 %v7727_v61  ;;  %2106 = vmatpush.msrb.mxu3 %v9777_v41  ;;  %v2405_v32 = vsel %vm2380_vm9, %v4467_v8, %v9778_v7  ;;  %v9780_v41 = vld [vmem:[#allocation77_spill] sm:$0xff]  ;;  %v2404_v8 = vsel %vm2380_vm9, %v4827_v0, %v9781_v18  ;;  %v9783_v7 = vld [vmem:[#allocation111_spill] sm:$0xff] }
 0x50b   : > { %2164 = vmatpush.msra.mxu1 %v9720_v14  ;;  %2544 = vmatpush.msra.mxu2 %v2405_v32  ;;  %v2403_v14 = vsel %vm2380_vm9, %v4823_v20, %v4827_v0  ;;  %v5039_v32 = vpack.i.bf16 %v9783_v7, %v9782_v5  ;;  %v7851_v0 = vld [vmem:[#allocation2 + $0xc0] sm:$0xff]  ;;  %v4883_v20 = vunpack.i.h.bf16 %v7691_v44 }
 0x50c   : > { %2602 = vmatpush.msrb.mxu0 %v9779_v49  ;;  %2107 = vmatpush.msrb.mxu3 %v9780_v41  ;;  %v1165_v49 = vld [vmem:[%s9091_s8 + $0x18] sm:$0xff] }
 0x50d   : > { %2165 = vmatpush.msra.mxu1 %v9742_v54  ;;  %2545 = vmatpush.msra.mxu2 %v2403_v14  ;;  %v9784_v41 = vld [vmem:[#allocation142_spill] sm:$0xff]  ;;  %v2401_v54 = vsel %vm2380_vm9, %v4637_v62, %v4638_v31  ;;  %v7854_v18 = vpop.permute.xlu0 %4900  ;;  %v9786_v14 = vunpack.i.l.bf16 %v7483_v33  ;;  %v7866_v62 = vld [vmem:[#allocation2 + $0x88] sm:$0xff] }
 0x50e   : > { %2603 = vmatpush.msrb.mxu0 %v2404_v8  ;;  %v9365_v51 = vunpack.i.h.bf16 %v9784_v41  ;;  %5040 = vrot.lane.b32.xlu2 %v5039_v32, %s5373_s0  ;;  %9785 = vst [vmem:[#allocation67_spill] sm:$0xff] %v7854_v18 }
 0x50f   : > { %3241 = vperm.xlu0 %4088, %v1163_v25   ;;  %3251 = vperm.xlu1 %4086, %v1165_v49   ;;  %v2402_v8 = vsel %vm2380_vm9, %v4638_v31, %v9786_v14  ;;  %v7862_v25 = vpop.permute.xlu1 %4875  ;;  %v9790_v31 = vunpack.i.l.bf16 %v9784_v41  ;;  %v4817_v14 = vunpack.i.l.bf16 %v7536_v22 }
 0x510   : > { %2108 = vmatpush.msrb.mxu3 %v9697_v43  ;;  %2166 = vmatpush.msra.mxu1 %v9719_v17  ;;  %v7860_v32 = vpop.permute.xlu2 %4925  ;;  %v9788_v43 = vld [vmem:[#allocation141_spill] sm:$0xff]  ;;  %v7871_v17 = vsel %vm2895_vm15, %v4883_v20, %v9364_v38  ;;  %v4813_v20 = vunpack.i.h.bf16 %v7419_v34 }
 0x511   : > { %2546 = vmatpush.msra.mxu2 %v2401_v54  ;;  %9787 = vst [vmem:[#allocation98_spill] sm:$0xff] %v7860_v32  ;;  %v4462_v49 = vunpack.i.l.bf16 %v9788_v43  ;;  %2604 = vmatpush.msrb.mxu0 %v2402_v8  ;;  %v2400_v54 = vsel %vm2380_vm9, %v9790_v31, %v9365_v51  ;;  %v9793_v38 = vunpack.i.h.bf16 %v9788_v43  ;;  %v4632_v51 = vunpack.i.l.bf16 %v7255_v12  ;;  %v9795_v8 = vld [vmem:[#allocation69_spill] sm:$0xff]  ;;  %v9799_v32 = vld [vmem:[#allocation68_spill] sm:$0xff] }
 0x512   : > { %2109 = vmatpush.msrb.mxu3 %v9685_v24  ;;  %9789 = vst [vmem:[#allocation91_spill] sm:$0xff] %v7871_v17  ;;  %2039 = vmatmul.f32.gmra.mxu0 %v7851_v0  ;;  %v9791_v24 = vld [vmem:[#allocation146_spill] sm:$0xff] }
 0x513   : > { %2167 = vmatpush.msra.mxu1 %v9745_v45  ;;  %2547 = vmatpush.msra.mxu2 %v9791_v24  ;;  %v9792_v45 = vld [vmem:[#allocation122_spill] sm:$0xff]  ;;  %v2397_v31 = vsel %vm2380_vm9, %v4462_v49, %v9793_v38  ;;  %v9794_v24 = vld [vmem:[#allocation147_spill] sm:$0xff] }
 0x514   : > { %2605 = vmatpush.msrb.mxu0 %v2400_v54  ;;  %2007 = vmatmul.f32.gmra.mxu3 %v7606_v53  ;;  %v1164_v53 = vld [vmem:[%s9091_s8 + $0x10] sm:$0xff]  ;;  %v1162_v38 = vld [vmem:[%s9091_s8] sm:$0xff] }
 0x515   : > { %2065 = vmatmul.f32.gmra.mxu1 %v7866_v62  ;;  %2094 = vmatmul.f32.gmra.mxu2 %v7791_v56  ;;  %v7903_v43 = vpop.permute.xlu0 %4915 }
 0x516   : > { %2110 = vmatpush.msrb.mxu3 %v9792_v45  ;;  %2168 = vmatpush.msra.mxu1 %v9762_v60  ;;  %v2395_v45 = vsel %vm2380_vm9, %v4813_v20, %v4817_v14  ;;  %9796 = vst [vmem:[#allocation50_spill] sm:$0xff] %v7903_v43  ;;  %v9797_v60 = vunpack.i.h.bf16 %v7536_v22 }
 0x517   : > { %2548 = vmatpush.msra.mxu2 %v2397_v31  ;;  %2606 = vmatpush.msrb.mxu0 %v9794_v24  ;;  %v4898_v31 = vunpack.i.h.bf16 %v7764_v46  ;;  %v7910_v24 = vpop.permute.xlu1 %4890  ;;  %v9803_v46 = vld [vmem:[#allocation135_spill] sm:$0xff] }
 0x518   : > { %2111 = vmatpush.msrb.mxu3 %v9795_v8  ;;  %2169 = vmatpush.msra.mxu1 %v9743_v35  ;;  %v2396_v49 = vsel %vm2380_vm9, %v4817_v14, %v9797_v60  ;;  %v9798_v8 = vld [vmem:[#allocation139_spill] sm:$0xff]  ;;  %v9800_v35 = vunpack.i.h.bf16 %v7255_v12  ;;  %v9801_v14 = vunpack.i.l.bf16 %v7854_v18  ;;  %v4553_v54 = vunpack.i.h.bf16 %v9803_v46  ;;  %v7931_v12 = vld [vmem:[#allocation2 + $0xc8] sm:$0xff] }
 0x519   : > { %2549 = vmatpush.msra.mxu2 %v2395_v45  ;;  %v4557_v20 = vunpack.i.l.bf16 %v9798_v8  ;;  %2607 = vmatpush.msrb.mxu0 %v2396_v49  ;;  %v9805_v49 = vunpack.i.h.bf16 %v9798_v8 }
 0x51a   : > { %3246 = vperm.xlu2 %4087, %v1164_v53   ;;  %3236 = vperm.xlu1 %4086, %v1162_v38   ;;  %v2393_v45 = vsel %vm2380_vm9, %v4632_v51, %v9800_v35  ;;  %v7918_v43 = vpop.permute.xlu2 %4935  ;;  %v7923_v60 = vsel %vm2895_vm15, %v4898_v31, %v9801_v14  ;;  %v9804_v53 = vld [vmem:[#allocation138_spill] sm:$0xff]  ;;  %v9806_v31 = vld [vmem:[#allocation105_spill] sm:$0xff]  ;;  %v9808_v14 = vld [vmem:[#allocation104_spill] sm:$0xff] }
 0x51b   : > { %2112 = vmatpush.msrb.mxu3 %v9799_v32  ;;  %9802 = vst [vmem:[#allocation114_spill] sm:$0xff] %v7923_v60  ;;  %2170 = vmatpush.msra.mxu1 %v9766_v40  ;;  %v4458_v38 = vunpack.i.h.bf16 %v9804_v53  ;;  %v4457_v32 = vunpack.i.l.bf16 %v9804_v53  ;;  %v2391_v51 = vsel %vm2380_vm9, %v4553_v54, %v4557_v20  ;;  %v2392_v40 = vsel %vm2380_vm9, %v4557_v20, %v9805_v49  ;;  %v9810_v60 = vld [vmem:[#allocation60_spill] sm:$0xff] }
 0x51c   : > { %2550 = vmatpush.msra.mxu2 %v2393_v45  ;;  %2608 = vmatpush.msrb.mxu0 %v7508_v63  ;;  %v4417_v35 = vunpack.i.l.bf16 %v9806_v31  ;;  %v9807_v45 = vld [vmem:[#allocation90_spill] sm:$0xff]  ;;  %v4373_v53 = vunpack.i.h.bf16 %v9808_v14 }
 0x51d   : > { %2113 = vmatpush.msrb.mxu3 %v9701_v27  ;;  %2146 = vmatmul.f32.vlgmr.msra.gmra.mxu0 %v7652_v52  ;;  %v9370_v27 = vunpack.i.l.bf16 %v9803_v46  ;;  %v4873_v52 = vunpack.i.h.bf16 %v7818_v28  ;;  %v7946_v54 = vpop.permute.xlu0 %4930  ;;  %v4328_v20 = vunpack.i.h.bf16 %v9807_v45 }
 0x51e   : > { %2171 = vmatpush.msra.mxu1 %v9782_v5  ;;  %2551 = vmatpush.msra.mxu2 %v2391_v51  ;;  %v4872_v5 = vunpack.i.l.bf16 %v7818_v28  ;;  %v4372_v51 = vunpack.i.l.bf16 %v9808_v14 }
 0x51f   : > { %2609 = vmatpush.msrb.mxu0 %v2392_v40  ;;  %2010 = vmatmul.f32.gmra.mxu3 %v7660_v19  ;;  %v2389_v19 = vsel %vm2380_vm9, %v4457_v32, %v4458_v38  ;;  %v7954_v49 = vpop.permute.xlu1 %4905  ;;  %v2390_v28 = vsel %vm2380_vm9, %v4458_v38, %v9370_v27  ;;  %v9809_v40 = vld [vmem:[#allocation73_spill] sm:$0xff]  ;;  %v2387_v14 = vsel %vm2380_vm9, %v4328_v20, %v4417_v35  ;;  %v9814_v20 = vld [vmem:[#allocation59_spill] sm:$0xff] }
 0x520   : > { %2068 = vmatmul.f32.gmra.mxu1 %v7931_v12  ;;  %2097 = vmatmul.f32.gmra.mxu2 %v7851_v0  ;;  %v4282_v63 = vunpack.i.l.bf16 %v9809_v40  ;;  %v2443_v38 = vsel %vm2380_vm9, %v4872_v5, %v4873_v52  ;;  %v9812_v27 = vld [vmem:[#allocation57_spill] sm:$0xff]  ;;  %v4767_v5 = vunpack.i.l.bf16 %v7253_v13 }
 0x521   : > { %2114 = vmatpush.msrb.mxu3 %v9660_v48  ;;  %2172 = vmatpush.msra.mxu1 %v9783_v7  ;;  %v9811_v7 = vunpack.i.h.bf16 %v9806_v31  ;;  %v4193_v18 = vunpack.i.h.bf16 %v9812_v27  ;;  %v2385_v48 = vsel %vm2380_vm9, %v4372_v51, %v4373_v53 }
 0x522   : > { %2552 = vmatpush.msra.mxu2 %v2389_v19  ;;  %2610 = vmatpush.msrb.mxu0 %v2390_v28  ;;  %v9813_v28 = vld [vmem:[#allocation72_spill] sm:$0xff] }
 0x523   : > { %2115 = vmatpush.msrb.mxu3 %v9810_v60  ;;  %2173 = vmatpush.msra.mxu1 %v9764_v36  ;;  %v2388_v19 = vsel %vm2380_vm9, %v4417_v35, %v9811_v7  ;;  %v4238_v17 = vunpack.i.h.bf16 %v9813_v28  ;;  %v4237_v60 = vunpack.i.l.bf16 %v9813_v28  ;;  %v9815_v36 = vunpack.i.l.bf16 %v9807_v45 }
 0x524   : > { %2553 = vmatpush.msra.mxu2 %v2387_v14  ;;  %2611 = vmatpush.msrb.mxu0 %v2388_v19  ;;  %v7975_v32 = vpop.permute.xlu2 %4940  ;;  %v4772_v14 = vunpack.i.l.bf16 %v7370_v26  ;;  %v2383_v7 = vsel %vm2380_vm9, %v4193_v18, %v4282_v63  ;;  %v4192_v19 = vunpack.i.l.bf16 %v9812_v27  ;;  %v8213_v27 = vld [vmem:[#allocation2 + $0xa0] sm:$0xff] }
 0x525   : > { %2116 = vmatpush.msrb.mxu3 %v9814_v20  ;;  %2174 = vmatpush.msra.mxu1 %v9765_v1  ;;  %v2386_v35 = vsel %vm2380_vm9, %v4373_v53, %v9815_v36  ;;  %v9816_v1 = vunpack.i.h.bf16 %v9809_v40  ;;  %v2381_v53 = vsel %vm2380_vm9, %v4237_v60, %v4238_v17  ;;  %v9817_v60 = vld [vmem:[#allocation65_spill] sm:$0xff] }
 0x526   : > { %2554 = vmatpush.msra.mxu2 %v2385_v48  ;;  %2612 = vmatpush.msrb.mxu0 %v2386_v35  ;;  %v9373_v48 = vunpack.i.l.bf16 %v7975_v32  ;;  %v2444_v18 = vsel %vm2380_vm9, %v4873_v52, %v4772_v14  ;;  %v4763_v36 = vunpack.i.h.bf16 %v9817_v60  ;;  %v9818_v52 = vunpack.i.h.bf16 %v7608_v47 }
 0x527   : > { %2570 = vmatpush.msra.mxu3 %v2443_v38  ;;  %2149 = vmatmul.f32.gmra.mxu0 %v7727_v61  ;;  %v2384_v51 = vsel %vm2380_vm9, %v4282_v63, %v9816_v1  ;;  %v9374_v61 = vunpack.i.h.bf16 %v7684_v15  ;;  %v2382_v63 = vsel %vm2380_vm9, %v4238_v17, %v4192_v19  ;;  %v9819_v35 = vunpack.i.h.bf16 %v7253_v13 }
 0x528   : > { %2555 = vmatpush.msra.mxu2 %v2383_v7  ;;  %2613 = vmatpush.msrb.mxu0 %v2384_v51  ;;  %v4753_v1 = vunpack.i.h.bf16 %v7601_v50  ;;  %v4752_v47 = vunpack.i.l.bf16 %v7601_v50  ;;  %v9820_v51 = vunpack.i.l.bf16 %v7528_v55  ;;  %v9823_v50 = vunpack.i.l.bf16 %v9817_v60 }
 0x529   : > { %2117 = vmatmul.f32.vlgmr.msrb.gmra.mxu3 %v7755_v2  ;;  %v7995_v38 = vpop.permute.xlu0 %4945  ;;  %2175 = vmatmul.f32.vlgmr.msra.gmra.mxu1 %v7755_v2  ;;  %v2441_v7 = vsel %vm2380_vm9, %v4767_v5, %v9819_v35  ;;  %v4943_v2 = vunpack.i.h.bf16 %v7975_v32  ;;  %v8017_v17 = vsel %vm2895_vm15, %v9374_v61, %v9373_v48  ;;  %v9821_v5 = vld [vmem:[#allocation43_spill] sm:$0xff]  ;;  %v4748_v35 = vunpack.i.h.bf16 %v7562_v4 }
 0x52a   : > { %2556 = vmatpush.msra.mxu2 %v2381_v53  ;;  %v4947_v28 = vunpack.i.l.bf16 %v7995_v38  ;;  %v8003_v20 = vpop.permute.xlu1 %4920  ;;  %2614 = vmatpush.msrb.mxu0 %v2382_v63  ;;  %v4867_v53 = vunpack.i.l.bf16 %v7762_v11  ;;  %v2440_v55 = vsel %vm2380_vm9, %v9823_v50, %v4763_v36  ;;  %v9824_v63 = vld [vmem:[#allocation112_spill] sm:$0xff]  ;;  %v9376_v50 = vunpack.i.l.bf16 %v7637_v6 }
 0x52b   : > { %2628 = vmatpush.msrb.mxu1 %v2444_v18  ;;  %2571 = vmatpush.msra.mxu3 %v2441_v7  ;;  %v9822_v18 = vunpack.i.h.bf16 %v9769_v39  ;;  %v4747_v7 = vunpack.i.l.bf16 %v7562_v4  ;;  %v4863_v39 = vunpack.i.h.bf16 %v7637_v6  ;;  %v4853_v48 = vunpack.i.h.bf16 %v7599_v37 }
 0x52c   : > { %2657 = vmatpush.msrb.mxu2 %v9818_v52  ;;  %v2926_v13 = vsel %vm2895_vm15, %v4943_v2, %v4947_v28  ;;  %v4757_v52 = vunpack.i.l.bf16 %v9824_v63  ;;  %v9825_v2 = vld [vmem:[#allocation137_spill] sm:$0xff]  ;;  %v9836_v61 = vunpack.i.h.bf16 %v7530_v3 }
 0x52d   : > { %2629 = vmatpush.msrb.mxu1 %v7472_v9  ;;  %2572 = vmatpush.msra.mxu3 %v9821_v5  ;;  %v4868_v9 = vunpack.i.h.bf16 %v7762_v11  ;;  %v4948_v5 = vunpack.i.h.bf16 %v7995_v38  ;;  %v9383_v38 = vunpack.i.h.bf16 %v7946_v54 }
 0x52e   : > { %2658 = vmatpush.msrb.mxu2 %v9820_v51  ;;  %3048 = vmatpush.msra.mxu0 %v2926_v13  ;;  %v9826_v51 = vunpack.i.l.bf16 %v9825_v2  ;;  %v2437_v13 = vsel %vm2380_vm9, %v4752_v47, %v4753_v1  ;;  %v2438_v4 = vsel %vm2380_vm9, %v4753_v1, %v4757_v52  ;;  %v2435_v47 = vsel %vm2380_vm9, %v4863_v39, %v4867_v53  ;;  %v9828_v2 = vld [vmem:[#allocation97_spill] sm:$0xff] }
 0x52f   : > { %2152 = vmatmul.f32.gmra.mxu0 %v7791_v56  ;;  %2630 = vmatpush.msrb.mxu1 %v2440_v55  ;;  %v4797_v56 = vunpack.i.l.bf16 %v7771_v10  ;;  %v9827_v55 = vunpack.i.h.bf16 %v7566_v21  ;;  %v2433_v21 = vsel %vm2380_vm9, %v4747_v7, %v4748_v35 }
 0x530   : > { %2659 = vmatpush.msrb.mxu2 %v9822_v18  ;;  %v8047_v18 = vld [vmem:[#allocation2 + $0x20] sm:$0xff]  ;;  %2573 = vmatpush.msra.mxu3 %v2437_v13 }
 0x531   : > { %2120 = vmatmul.f32.gmra.mxu3 %v7802_v16  ;;  %2178 = vmatmul.f32.gmra.mxu1 %v7802_v16  ;;  %v2436_v16 = vsel %vm2380_vm9, %v4867_v53, %v4868_v9  ;;  %v2924_v39 = vsel %vm2895_vm15, %v4948_v5, %v4797_v56  ;;  %v2434_v53 = vsel %vm2380_vm9, %v4748_v35, %v9376_v50  ;;  %v4857_v5 = vunpack.i.l.bf16 %v7689_v23  ;;  %v9837_v50 = vld [vmem:[#allocation52_spill] sm:$0xff] }
 0x532   : > { %2660 = vmatpush.msrb.mxu2 %v9826_v51  ;;  %2631 = vmatpush.msrb.mxu1 %v2438_v4  ;;  %v9375_v51 = vunpack.i.h.bf16 %v9828_v2  ;;  %v9829_v4 = vunpack.i.l.bf16 %v7483_v33  ;;  %v9830_v33 = vunpack.i.h.bf16 %v9784_v41  ;;  %v9832_v35 = vunpack.i.l.bf16 %v9828_v2 }
 0x533   : > { %2574 = vmatpush.msra.mxu3 %v2435_v47  ;;  %2557 = vmatmul.f32.vlgmr.msra.gmra.mxu2 %v8047_v18  ;;  %v8063_v13 = vpop.permute.xlu0 %4950  ;;  %v8065_v1 = vpop.permute.xlu1 %4960  ;;  %v4798_v47 = vunpack.i.h.bf16 %v7771_v10 }
 0x534   : > { %2661 = vmatpush.msrb.mxu2 %v9827_v55  ;;  %2632 = vmatpush.msrb.mxu1 %v2436_v16  ;;  %v4732_v55 = vunpack.i.l.bf16 %v7530_v3  ;;  %v4952_v7 = vunpack.i.l.bf16 %v8063_v13  ;;  %v4858_v16 = vunpack.i.h.bf16 %v7689_v23  ;;  %v2427_v3 = vsel %vm2380_vm9, %v4853_v48, %v4857_v5 }
 0x535   : > { %2575 = vmatpush.msra.mxu3 %v2433_v21  ;;  %3049 = vmatpush.msra.mxu0 %v2924_v39  ;;  %v2432_v21 = vsel %vm2380_vm9, %v9832_v35, %v9375_v51  ;;  %v9833_v39 = vld [vmem:[#allocation64_spill] sm:$0xff]  ;;  %v9874_v23 = vunpack.i.l.bf16 %v7599_v37 }
 0x536   : > { %2662 = vmatpush.msrb.mxu2 %v9829_v4  ;;  %2633 = vmatpush.msrb.mxu1 %v2434_v53  ;;  %v9831_v4 = vld [vmem:[#allocation51_spill] sm:$0xff]  ;;  %v4803_v53 = vunpack.i.h.bf16 %v9833_v39  ;;  %v4802_v41 = vunpack.i.l.bf16 %v9833_v39  ;;  %v2429_v35 = vsel %vm2380_vm9, %v4732_v55, %v9836_v61  ;;  %v2428_v61 = vsel %vm2380_vm9, %v4857_v5, %v4858_v16  ;;  %v9839_v55 = vld [vmem:[#allocation152_spill] sm:$0xff] }
 0x537   : > { %2155 = vmatmul.f32.gmra.mxu0 %v7851_v0  ;;  %2576 = vmatpush.msra.mxu3 %v9831_v4  ;;  %v9834_v0 = vld [vmem:[#allocation136_spill] sm:$0xff] }
 0x538   : > { %2663 = vmatpush.msrb.mxu2 %v9830_v33  ;;  %2634 = vmatpush.msrb.mxu1 %v2432_v21  ;;  %v4727_v33 = vunpack.i.l.bf16 %v7485_v29  ;;  %v9835_v4 = vunpack.i.l.bf16 %v9834_v0  ;;  %v2922_v21 = vsel %vm2895_vm15, %v4798_v47, %v4802_v41  ;;  %v2920_v51 = vsel %vm2895_vm15, %v4803_v53, %v4952_v7  ;;  %v8364_v37 = vld [vmem:[#allocation2 + $0xe8] sm:$0xff] }
 0x539   : > { %2123 = vmatmul.f32.gmra.mxu3 %v7866_v62  ;;  %2181 = vmatmul.f32.gmra.mxu1 %v7866_v62  ;;  %v4723_v62 = vunpack.i.h.bf16 %v9837_v50  ;;  %v9838_v0 = vunpack.i.h.bf16 %v7536_v22  ;;  %v4477_v47 = vunpack.i.l.bf16 %v9839_v55  ;;  %v9840_v53 = vunpack.i.l.bf16 %v7419_v34 }
 0x53a   : > { %2664 = vmatpush.msrb.mxu2 %v9835_v4  ;;  %2577 = vmatpush.msra.mxu3 %v2429_v35  ;;  %v9841_v4 = vunpack.i.h.bf16 %v7485_v29  ;;  %v9842_v35 = vunpack.i.h.bf16 %v9798_v8  ;;  %v9843_v34 = vunpack.i.l.bf16 %v9837_v50  ;;  %v4848_v29 = vunpack.i.h.bf16 %v7648_v59 }
 0x53b   : > { %2635 = vmatpush.msrb.mxu1 %v7592_v58  ;;  %v8115_v58 = vpop.permute.xlu2 %4970  ;;  %3050 = vmatpush.msra.mxu0 %v2922_v21  ;;  %v4647_v8 = vunpack.i.l.bf16 %v7421_v30  ;;  %v2923_v10 = vsel %vm2895_vm15, %v4802_v41, %v9383_v38 }
 0x53c   : > { %2665 = vmatpush.msrb.mxu2 %v9838_v0  ;;  %2578 = vmatpush.msra.mxu3 %v2427_v3  ;;  %v2425_v22 = vsel %vm2380_vm9, %v4727_v33, %v9841_v4  ;;  %v2424_v21 = vsel %vm2380_vm9, %v9843_v34, %v4723_v62  ;;  %v8138_v33 = vld [vmem:[#allocation2 + $0x60] sm:$0xff]  ;;  %v9845_v0 = vunpack.i.h.bf16 %v9839_v55  ;;  %v4973_v34 = vunpack.i.h.bf16 %v8115_v58 }
 0x53d   : > { %2636 = vmatpush.msrb.mxu1 %v2428_v61  ;;  %3051 = vmatpush.msra.mxu0 %v2920_v51  ;;  %v9844_v51 = vld [vmem:[#allocation86_spill] sm:$0xff]  ;;  %v9846_v61 = vunpack.i.l.bf16 %v9803_v46  ;;  %v9847_v4 = vld [vmem:[#allocation155_spill] sm:$0xff]  ;;  %v9851_v46 = vunpack.i.l.bf16 %v7648_v59 }
 0x53e   : > { %2666 = vmatpush.msrb.mxu2 %v9840_v53  ;;  %v8123_v48 = vpop.permute.xlu1 %4965  ;;  %2579 = vmatpush.msra.mxu3 %v2425_v22  ;;  %v2421_v3 = vsel %vm2380_vm9, %v4477_v47, %v9845_v0  ;;  %v9848_v22 = vld [vmem:[#allocation151_spill] sm:$0xff] }
 0x53f   : > { %2637 = vmatpush.msrb.mxu1 %v7675_v57  ;;  %v4967_v5 = vunpack.i.l.bf16 %v8123_v48  ;;  %2615 = vmatmul.f32.vlgmr.msrb.gmra.mxu0 %v8047_v18  ;;  %v4953_v57 = vunpack.i.h.bf16 %v8063_v13  ;;  %v9850_v55 = vld [vmem:[#allocation99_spill] sm:$0xff]  ;;  %v2420_v47 = vsel %vm2380_vm9, %v9851_v46, %v4848_v29  ;;  %v9856_v46 = vld [vmem:[#allocation94_spill] sm:$0xff] }
 0x540   : > { %2667 = vmatpush.msrb.mxu2 %v9842_v35  ;;  %2580 = vmatpush.msra.mxu3 %v9844_v51  ;;  %v9377_v35 = vunpack.i.h.bf16 %v9848_v22 }
 0x541   : > { %2638 = vmatpush.msrb.mxu1 %v2424_v21  ;;  %2126 = vmatmul.f32.gmra.mxu3 %v7931_v12  ;;  %v2918_v53 = vsel %vm2895_vm15, %v4953_v57, %v4967_v5  ;;  %v9852_v21 = vld [vmem:[#allocation150_spill] sm:$0xff]  ;;  %v9853_v57 = vunpack.i.h.bf16 %v7421_v30  ;;  %v9388_v30 = vunpack.i.h.bf16 %v7954_v49 }
 0x542   : > { %2184 = vmatmul.f32.gmra.mxu1 %v7931_v12  ;;  %2668 = vmatpush.msrb.mxu2 %v9846_v61  ;;  %v9849_v12 = vunpack.i.h.bf16 %v9806_v31  ;;  %v4472_v51 = vunpack.i.l.bf16 %v9852_v21  ;;  %v8169_v31 = vpop.permute.xlu0 %4955  ;;  %v9854_v61 = vld [vmem:[#allocation107_spill] sm:$0xff] }
 0x543   : > { %2581 = vmatpush.msra.mxu3 %v2421_v3  ;;  %2639 = vmatpush.msrb.mxu1 %v9847_v4  ;;  %v2417_v0 = vsel %vm2380_vm9, %v4647_v8, %v9853_v57  ;;  %v8167_v3 = vpop.permute.xlu2 %4975  ;;  %v4807_v4 = vunpack.i.l.bf16 %v9854_v61  ;;  %v9857_v8 = vunpack.i.h.bf16 %v9809_v40  ;;  %v9858_v57 = vld [vmem:[#allocation153_spill] sm:$0xff]  ;;  %v9860_v40 = vunpack.i.h.bf16 %v9852_v21 }
 0x544   : > { %2560 = vmatmul.f32.gmra.mxu2 %v8138_v33  ;;  %3052 = vmatpush.msra.mxu0 %v2918_v53  ;;  %v4972_v53 = vunpack.i.l.bf16 %v8115_v58  ;;  %v9389_v21 = vunpack.i.l.bf16 %v7862_v25  ;;  %v4978_v63 = vunpack.i.h.bf16 %v8167_v3 }
 0x545   : > { %2669 = vmatpush.msrb.mxu2 %v9849_v12  ;;  %2582 = vmatpush.msra.mxu3 %v9850_v55  ;;  %v9855_v12 = vunpack.i.l.bf16 %v9807_v45  ;;  %v4968_v55 = vunpack.i.h.bf16 %v8123_v48  ;;  %v9859_v45 = vunpack.i.l.bf16 %v9848_v22 }
 0x546   : > { %2640 = vmatpush.msrb.mxu1 %v2420_v47  ;;  %v8176_v47 = vpop.f32.mrf.mxu2 }
 0x547   : > { %2670 = vmatpush.msrb.mxu2 %v9855_v12  ;;  %2583 = vmatpush.msra.mxu3 %v2417_v0  ;;  %v2416_v0 = vsel %vm2380_vm9, %v9859_v45, %v9377_v35  ;;  %v8189_v12 = vld [vmem:[#allocation2 + $0x28] sm:$0xff]  ;;  %v2927_v45 = vsel %vm2895_vm15, %v4947_v28, %v9388_v30  ;;  %v8205_v35 = vpop.f32.mrf.mxu0 }
 0x548   : > { %2641 = vmatpush.msrb.mxu1 %v9856_v46  ;;  %2618 = vmatmul.f32.gmra.mxu0 %v8138_v33  ;;  %v2916_v46 = vsel %vm2895_vm15, %v4973_v34, %v4807_v4  ;;  %v2950_v34 = vsel %vm2895_vm15, %v4968_v55, %v4972_v53  ;;  %v4808_v55 = vunpack.i.h.bf16 %v9854_v61 }
 0x549   : > { %2671 = vmatpush.msrb.mxu2 %v9857_v8  ;;  %2584 = vmatpush.msra.mxu3 %v9858_v57  ;;  %v2413_v8 = vsel %vm2380_vm9, %v4472_v51, %v9860_v40  ;;  %v9386_v57 = vunpack.i.l.bf16 %v8003_v20  ;;  %v9861_v51 = vld [vmem:[#allocation154_spill] sm:$0xff]  ;;  %v9381_v40 = vunpack.i.l.bf16 %v7918_v43 }
 0x54a   : > { %2642 = vmatpush.msrb.mxu1 %v2416_v0  ;;  %3053 = vmatpush.msra.mxu0 %v2916_v46  ;;  %v8220_v28 = vpop.permute.xlu1 %4995  ;;  %v9379_v0 = vunpack.i.h.bf16 %v8169_v31  ;;  %v4882_v46 = vunpack.i.l.bf16 %v7691_v44 }
 0x54b   : > { %2672 = vmatpush.msrb.mxu2 %v4192_v19  ;;  %2585 = vmatpush.msra.mxu3 %v2413_v8  ;;  %v4878_v19 = vunpack.i.h.bf16 %v7862_v25  ;;  %v9862_v8 = vunpack.i.h.bf16 %v7370_v26  ;;  %v9387_v26 = vunpack.i.l.bf16 %v7910_v24 }
 0x54c   : > { %2643 = vmatpush.msrb.mxu1 %v9861_v51  ;;  %2586 = vmatmul.f32.vlgmr.msra.gmra.mxu3 %v8189_v12  ;;  %v8240_v51 = vpop.permute.xlu0 %4985  ;;  %v2919_v13 = vsel %vm2895_vm15, %v4967_v5, %v9379_v0  ;;  %v8287_v5 = vld [vmem:[#allocation2 + $0xe0] sm:$0xff] }
 0x54d   : > { %2644 = vmatmul.f32.vlgmr.msrb.gmra.mxu1 %v8189_v12  ;;  %2686 = vmatpush.msrb.mxu3 %v4772_v14  ;;  %v2925_v14 = vsel %vm2895_vm15, %v4797_v56, %v9386_v57  ;;  %v8250_v56 = vld [vmem:[#allocation2 + $0x68] sm:$0xff]  ;;  %v2914_v60 = vsel %vm2895_vm15, %v4878_v19, %v4882_v46  ;;  %v4988_v41 = vunpack.i.h.bf16 %v8240_v51  ;;  %v9384_v19 = vunpack.i.l.bf16 %v8240_v51 }
 0x54e   : > { %3106 = vmatpush.msra.mxu2 %v2927_v45  ;;  %3081 = vmatpush.msra.mxu1 %v2950_v34  ;;  %v8234_v45 = vpop.permute.xlu2 %4980  ;;  %v2948_v34 = vsel %vm2895_vm15, %v4808_v55, %v9389_v21  ;;  %v2921_v55 = vsel %vm2895_vm15, %v4952_v7, %v9381_v40  ;;  %v8262_v39 = vpop.f32.mrf.mxu2 }
 0x54f   : > { %2687 = vmatpush.msrb.mxu3 %v9862_v8  ;;  %2563 = vmatmul.f32.gmra.mxu2 %v8213_v27  ;;  %v9382_v8 = vunpack.i.l.bf16 %v8167_v3  ;;  %v9378_v7 = vunpack.i.h.bf16 %v8234_v45  ;;  %v8278_v48 = vpop.f32.mrf.mxu1  ;;  %v4982_v59 = vunpack.i.l.bf16 %v8234_v45 }
 0x550   : > { %3107 = vmatpush.msra.mxu2 %v2925_v14  ;;  %2621 = vmatmul.f32.gmra.mxu0 %v8213_v27  ;;  %v9380_v14 = vunpack.i.l.bf16 %v8220_v28 }
 0x551   : > { %2688 = vmatpush.msrb.mxu3 %v4763_v36  ;;  %3082 = vmatpush.msra.mxu1 %v2948_v34  ;;  %v4888_v36 = vunpack.i.h.bf16 %v7813_v42  ;;  %v9863_v34 = vld [vmem:[#allocation91_spill] sm:$0xff]  ;;  %v2917_v11 = vsel %vm2895_vm15, %v4807_v4, %v9378_v7  ;;  %v9390_v4 = vunpack.i.l.bf16 %v7954_v49 }
 0x552   : > { %3108 = vmatpush.msra.mxu2 %v2923_v10  ;;  %3054 = vmatpush.msra.mxu0 %v2914_v60  ;;  %v4893_v10 = vunpack.i.h.bf16 %v7910_v24  ;;  %v8289_v60 = vpop.f32.mrf.mxu0  ;;  %v9868_v7 = vld [vmem:[#allocation67_spill] sm:$0xff] }
 0x553   : > { %2689 = vmatpush.msrb.mxu3 %v4757_v52  ;;  %3083 = vmatpush.msra.mxu1 %v9863_v34  ;;  %v2912_v52 = vsel %vm2895_vm15, %v4888_v36, %v9387_v26  ;;  %v9864_v34 = vunpack.i.l.bf16 %v7637_v6  ;;  %v2910_v36 = vsel %vm2895_vm15, %v4978_v63, %v9384_v19  ;;  %v9865_v6 = vld [vmem:[#allocation101_spill] sm:$0xff]  ;;  %v9867_v63 = vld [vmem:[#allocation103_spill] sm:$0xff]  ;;  %v4903_v0 = vunpack.i.h.bf16 %v9868_v7 }
 0x554   : > { %2589 = vmatmul.f32.gmra.mxu3 %v8250_v56  ;;  %3109 = vmatpush.msra.mxu2 %v2921_v55  ;;  %v2944_v55 = vsel %vm2895_vm15, %v4893_v10, %v9382_v8  ;;  %v9385_v61 = vunpack.i.l.bf16 %v9865_v6  ;;  %v9392_v19 = vunpack.i.l.bf16 %v7946_v54 }
 0x555   : > { %2647 = vmatmul.f32.gmra.mxu1 %v8250_v56  ;;  %2690 = vmatpush.msrb.mxu3 %v4868_v9  ;;  %v4998_v9 = vunpack.i.h.bf16 %v8220_v28  ;;  %v8308_v10 = vpop.permute.xlu1 %5000 }
 0x556   : > { %3110 = vmatpush.msra.mxu2 %v2919_v13  ;;  %3055 = vmatpush.msra.mxu0 %v2912_v52  ;;  %v2942_v13 = vsel %vm2895_vm15, %v4988_v41, %v9380_v14  ;;  %v9866_v52 = vunpack.i.h.bf16 %v9828_v2  ;;  %v4912_v41 = vunpack.i.l.bf16 %v9867_v63  ;;  %v9869_v14 = vld [vmem:[#allocation50_spill] sm:$0xff]  ;;  %v8404_v44 = vpop.permute.xlu2 %5010 }
 0x557   : > { %2691 = vmatpush.msrb.mxu3 %v9864_v34  ;;  %3084 = vmatpush.msra.mxu1 %v2944_v55  ;;  %v8315_v55 = vld [vmem:[#allocation2 + $0xa8] sm:$0xff]  ;;  %v9394_v34 = vunpack.i.h.bf16 %v9867_v63  ;;  %v9395_v40 = vunpack.i.h.bf16 %v9869_v14  ;;  %v4917_v8 = vunpack.i.l.bf16 %v9869_v14  ;;  %v9870_v2 = vld [vmem:[#allocation46_spill] sm:$0xff]  ;;  %v2908_v38 = vsel %vm2895_vm15, %v4998_v9, %v9385_v61 }
 0x558   : > { %3111 = vmatpush.msra.mxu2 %v2917_v11  ;;  %2624 = vmatmul.f32.gmra.mxu0 %v8287_v5  ;;  %v8320_v11 = vpop.f32.mrf.mxu3  ;;  %v2906_v9 = vsel %vm2895_vm15, %v4903_v0, %v9390_v4  ;;  %v9872_v61 = vld [vmem:[#allocation114_spill] sm:$0xff]  ;;  %v4957_v4 = vunpack.i.l.bf16 %v8169_v31 }
 0x559   : > { %2692 = vmatpush.msrb.mxu3 %v9866_v52  ;;  %2566 = vmatmul.f32.gmra.mxu2 %v8287_v5  ;;  %v9871_v52 = vunpack.i.l.bf16 %v9870_v2  ;;  %v9393_v2 = vunpack.i.h.bf16 %v8308_v10  ;;  %v8344_v57 = vpop.f32.mrf.mxu1  ;;  %v2938_v21 = vsel %vm2895_vm15, %v4912_v41, %v9394_v34  ;;  %v2904_v0 = vsel %vm2895_vm15, %v4917_v8, %v9395_v40 }
 0x55a   : > { %3056 = vmatpush.msra.mxu0 %v2910_v36  ;;  %3085 = vmatpush.msra.mxu1 %v2942_v13  ;;  %v8332_v36 = vpop.f32.mrf.mxu2  ;;  %v4923_v13 = vunpack.i.h.bf16 %v8003_v20 }
 0x55b   : > { %2693 = vmatpush.msrb.mxu3 %v9871_v52  ;;  %v5002_v52 = vunpack.i.l.bf16 %v8308_v10 }
 0x55c   : > { %2592 = vmatmul.f32.gmra.mxu3 %v8315_v55  ;;  %3057 = vmatpush.msra.mxu0 %v2908_v38  ;;  %v9873_v38 = vld [vmem:[#allocation98_spill] sm:$0xff] }
 0x55d   : > { %2650 = vmatmul.f32.gmra.mxu1 %v8315_v55  ;;  %2694 = vmatpush.msrb.mxu3 %v4858_v16  ;;  %v4928_v26 = vunpack.i.h.bf16 %v9873_v38  ;;  %v9391_v30 = vunpack.i.l.bf16 %v9873_v38  ;;  %v8350_v16 = vpop.permute.xlu0 %4990 }
 0x55e   : > { %3086 = vmatpush.msra.mxu1 %v9872_v61  ;;  %3058 = vmatpush.msra.mxu0 %v2906_v9  ;;  %v8358_v61 = vpop.f32.mrf.mxu0  ;;  %v4792_v9 = vunpack.i.l.bf16 %v7684_v15 }
 0x55f   : > { %2695 = vmatpush.msrb.mxu3 %v9874_v23  ;;  %v2936_v41 = vsel %vm2895_vm15, %v4923_v13, %v9391_v30  ;;  %v2902_v8 = vsel %vm2895_vm15, %v4928_v26, %v9392_v19  ;;  %v4963_v13 = vunpack.i.h.bf16 %v8065_v1  ;;  %v9877_v26 = vld [vmem:[#allocation106_spill] sm:$0xff] }
 0x560   : > { %3087 = vmatpush.msra.mxu1 %v2938_v21  ;;  %3059 = vmatpush.msra.mxu0 %v2904_v0  ;;  %v2934_v21 = vsel %vm2895_vm15, %v5002_v52, %v9393_v2  ;;  %v9875_v0 = vld [vmem:[#allocation143_spill] sm:$0xff]  ;;  %v4777_v19 = vunpack.i.l.bf16 %v9877_v26  ;;  %v8386_v52 = vpop.f32.mrf.mxu3 }
 0x561   : > { %2696 = vmatpush.msrb.mxu3 %v4723_v62  ;;  %2673 = vmatmul.f32.vlgmr.msrb.gmra.mxu2 %v8047_v18  ;;  %v8376_v23 = vpop.permute.xlu1 %5005  ;;  %v4938_v62 = vunpack.i.h.bf16 %v7918_v43  ;;  %v4962_v18 = vunpack.i.l.bf16 %v8065_v1  ;;  %v9876_v30 = vunpack.i.l.bf16 %v9875_v0  ;;  %v9878_v0 = vunpack.i.h.bf16 %v7684_v15 }
 0x562   : > { %3088 = vmatpush.msra.mxu1 %v2936_v41  ;;  %3060 = vmatpush.msra.mxu0 %v2902_v8  ;;  %v5008_v50 = vunpack.i.h.bf16 %v8376_v23  ;;  %v4992_v8 = vunpack.i.l.bf16 %v8350_v16  ;;  %v5007_v40 = vunpack.i.l.bf16 %v8376_v23 }
 0x563   : > { %2697 = vmatpush.msrb.mxu3 %v9876_v30  ;;  %v4993_v30 = vunpack.i.h.bf16 %v8350_v16  ;;  %v2932_v2 = vsel %vm2895_vm15, %v4938_v62, %v4957_v4  ;;  %v2930_v15 = vsel %vm2895_vm15, %v4962_v18, %v4963_v13  ;;  %v8416_v62 = vld [vmem:[#allocation2 + $0x30] sm:$0xff] }
 0x564   : > { %2595 = vmatmul.f32.gmra.mxu3 %v8364_v37  ;;  %3089 = vmatpush.msra.mxu1 %v2934_v21  ;;  %v2915_v41 = vsel %vm2895_vm15, %v4882_v46, %v5008_v50  ;;  %v2900_v21 = vsel %vm2895_vm15, %v4792_v9, %v9878_v0  ;;  %v8406_v46 = vpop.f32.mrf.mxu2  ;;  %v9881_v9 = vld [vmem:[#allocation34_spill] sm:$0xff] }
 0x565   : > { %2653 = vmatmul.f32.gmra.mxu1 %v8364_v37  ;;  %2698 = vmatpush.msrb.mxu3 %v4848_v29  ;;  %v9879_v29 = vld [vmem:[#allocation49_spill] sm:$0xff]  ;;  %v8418_v0 = vpop.f32.mrf.mxu1  ;;  %v2928_v18 = vsel %vm2895_vm15, %v4992_v8, %v4993_v30 }
 0x566   : > { %3061 = vmatpush.msra.mxu0 %v2900_v21  ;;  %3090 = vmatpush.msra.mxu1 %v2932_v2  ;;  %v9880_v34 = vunpack.i.l.bf16 %v9879_v29  ;;  %v9882_v2 = vunpack.i.h.bf16 %v9848_v22  ;;  %v8422_v21 = vpop.permute.xlu0 %5015  ;;  %v8434_v22 = vld [vmem:[#allocation2 + $0x38] sm:$0xff] }
 0x567   : > { %3112 = vmatpush.msra.mxu2 %v2915_v41  ;;  %v8431_v41 = vpop.f32.mrf.mxu0 }
 0x568   : > { %2699 = vmatpush.msrb.mxu3 %v9880_v34  ;;  %3062 = vmatpush.msra.mxu0 %v9881_v9  ;;  %v9883_v34 = vunpack.i.h.bf16 %v9877_v26  ;;  %v5012_v9 = vunpack.i.l.bf16 %v8404_v44 }
 0x569   : > { %3091 = vmatpush.msra.mxu1 %v2930_v15  ;;  %2676 = vmatmul.f32.gmra.mxu2 %v8138_v33  ;;  %v5013_v15 = vunpack.i.h.bf16 %v8404_v44  ;;  %v9886_v33 = vunpack.i.l.bf16 %v7862_v25  ;;  %v9888_v25 = vunpack.i.l.bf16 %v7910_v24 }
 0x56a   : > { %2700 = vmatpush.msrb.mxu3 %v9882_v2  ;;  %v2896_v29 = vsel %vm2895_vm15, %v4777_v19, %v9883_v34  ;;  %v9884_v2 = vld [vmem:[#allocation140_spill] sm:$0xff]  ;;  %v2951_v19 = vsel %vm2895_vm15, %v4972_v53, %v4982_v59  ;;  %v5018_v34 = vunpack.i.h.bf16 %v8422_v21 }
 0x56b   : > { %3063 = vmatpush.msra.mxu0 %v2896_v29  ;;  %3092 = vmatpush.msra.mxu1 %v2928_v18  ;;  %v9885_v26 = vunpack.i.l.bf16 %v9884_v2  ;;  %v2949_v8 = vsel %vm2895_vm15, %v9886_v33, %v5007_v40  ;;  %v9887_v29 = vunpack.i.h.bf16 %v7954_v49  ;;  %v5017_v18 = vunpack.i.l.bf16 %v8422_v21  ;;  %v8460_v2 = vpop.f32.mrf.mxu3  ;;  %v8467_v33 = vpop.permute.xlu2 %5025 }
 0x56c   : > { %3064 = vmatmul.f32.vlgmr.msra.gmra.mxu0 %v8416_v62  ;;  %v8453_v58 = vpop.permute.xlu1 %5020  ;;  %v2913_v53 = vsel %vm2895_vm15, %v9888_v25, %v5013_v15  ;;  %v9893_v25 = vunpack.i.l.bf16 %v8167_v3  ;;  %v5028_v3 = vunpack.i.h.bf16 %v8467_v33 }
 0x56d   : > { %2701 = vmatpush.msrb.mxu3 %v9885_v26  ;;  %3164 = vmatpush.msrb.mxu0 %v9887_v29  ;;  %v9889_v26 = vunpack.i.l.bf16 %v8003_v20  ;;  %v5023_v24 = vunpack.i.h.bf16 %v8453_v58  ;;  %v9891_v20 = vunpack.i.l.bf16 %v8240_v51  ;;  %v9894_v51 = vunpack.i.l.bf16 %v7918_v43 }
 0x56e   : > { %2702 = vmatmul.f32.vlgmr.msrb.gmra.mxu3 %v8189_v12  ;;  %3946 = vmatmul.msk.f32.vlgmr.msra.gmra.mxu1 %vm986_vm7, %v8434_v22  ;;  %v9890_v12 = vunpack.i.l.bf16 %v7813_v42  ;;  %v9892_v42 = vunpack.i.h.bf16 %v7946_v54 }
 0x56f   : > { %3139 = vmatpush.msra.mxu3 %v2951_v19  ;;  %3197 = vmatpush.msrb.mxu1 %v4982_v59  ;;  %v8469_v59 = vpop.f32.mrf.mxu2  ;;  %v2911_v29 = vsel %vm2895_vm15, %v9891_v20, %v5018_v34  ;;  %v2031_v20 = vpop.f32.mrf.mxu0 }
 0x570   : > { %3165 = vmatpush.msrb.mxu0 %v9889_v26  ;;  %3113 = vmatpush.msra.mxu2 %v2913_v53  ;;  %v2947_v19 = vsel %vm2895_vm15, %v9890_v12, %v5012_v9  ;;  %v2945_v53 = vsel %vm2895_vm15, %v9893_v25, %v5017_v18  ;;  %v8485_v26 = vld [vmem:[#allocation2 + $0x78] sm:$0xff]  ;;  %v8487_v12 = vpop.f32.mrf.mxu1  ;;  %v9896_v25 = vunpack.i.l.bf16 %v8220_v28  ;;  %v1887_v28 = vadd.f32 %v8320_v11, %v8176_v47 }
 0x571   : > { %3140 = vmatpush.msra.mxu3 %v2949_v8  ;;  %3198 = vmatpush.msrb.mxu1 %v5007_v40  ;;  %v5022_v8 = vunpack.i.l.bf16 %v8453_v58  ;;  %v8483_v40 = vld [vmem:[#allocation2 + $0x70] sm:$0xff] }
 0x572   : > { %3166 = vmatpush.msrb.mxu0 %v9892_v42  ;;  %3114 = vmatpush.msra.mxu2 %v2911_v29  ;;  %v5027_v29 = vunpack.i.l.bf16 %v8467_v33  ;;  %v9897_v33 = vunpack.i.h.bf16 %v8169_v31 }
 0x573   : > { %3141 = vmatpush.msra.mxu3 %v2947_v19  ;;  %3199 = vmatpush.msrb.mxu1 %v5012_v9  ;;  %v8489_v19 = vpop.permute.xlu0 %5030  ;;  %v9895_v9 = vunpack.i.l.bf16 %v9865_v6  ;;  %v2943_v43 = vsel %vm2895_vm15, %v9896_v25, %v5022_v8  ;;  %v5041_v11 = vpop.permute.xlu2 %5040 }
 0x574   : > { %3167 = vmatpush.msrb.mxu0 %v9894_v51  ;;  %2679 = vmatmul.f32.gmra.mxu2 %v8213_v27  ;;  %v5033_v27 = vunpack.i.h.bf16 %v8489_v19 }
 0x575   : > { %3142 = vmatpush.msra.mxu3 %v2945_v53  ;;  %3200 = vmatpush.msrb.mxu1 %v5017_v18  ;;  %v2909_v42 = vsel %vm2895_vm15, %v9895_v9, %v5023_v24  ;;  %v5032_v18 = vunpack.i.l.bf16 %v8489_v19  ;;  %v9899_v53 = vunpack.i.l.bf16 %v7954_v49  ;;  %v9900_v19 = vunpack.i.l.bf16 %v9868_v7 }
 0x576   : > { %3067 = vmatmul.f32.gmra.mxu0 %v8483_v40  ;;  %2705 = vmatmul.f32.gmra.mxu3 %v8250_v56  ;;  %v8512_v6 = vpop.permute.xlu1 %5035  ;;  %v9898_v56 = vunpack.i.h.bf16 %v8234_v45  ;;  %v8525_v25 = vpop.f32.mrf.mxu3  ;;  %v9901_v49 = vunpack.i.h.bf16 %v9869_v14  ;;  %v9903_v14 = vunpack.i.l.bf16 %v7946_v54  ;;  %v5043_v54 = vunpack.i.h.bf16 %v5041_v11 }
 0x577   : > { %3947 = vmatmul.msk.f32.gmra.mxu1 %vm986_vm7, %v8485_v26  ;;  %3168 = vmatpush.msrb.mxu0 %v9897_v33  ;;  %v2907_v51 = vsel %vm2895_vm15, %v9899_v53, %v5028_v3  ;;  %v2941_v9 = vsel %vm2895_vm15, %v9900_v19, %v5027_v29  ;;  %v5037_v47 = vunpack.i.l.bf16 %v8512_v6  ;;  %v8528_v45 = vpop.f32.mrf.mxu2  ;;  %v2032_v33 = vadd.f32 %v2031_v20, %v1887_v28 }
 0x578   : > { %3201 = vmatpush.msrb.mxu1 %v5022_v8  ;;  %3115 = vmatpush.msra.mxu2 %v2909_v42  ;;  %v5038_v8 = vunpack.i.h.bf16 %v8512_v6  ;;  %v2905_v7 = vsel %vm2895_vm15, %v9901_v49, %v5033_v27  ;;  %v2034_v20 = vpop.f32.mrf.mxu0  ;;  %v1890_v19 = vadd.f32 %v8386_v52, %v8262_v39  ;;  %v1160_v39 = vld [vmem:[#allocation2 + $0xf0] sm:$0xff]  ;;  %v1161_v52 = vld [vmem:[#allocation2 + $0xf8] sm:$0xff] }
 0x579   : > { %3143 = vmatpush.msra.mxu3 %v2943_v43  ;;  %3169 = vmatpush.msrb.mxu0 %v9898_v56  ;;  %v8538_v43 = vld [vmem:[#allocation2 + $0xb0] sm:$0xff]  ;;  %v8540_v56 = vld [vmem:[#allocation2 + $0xb8] sm:$0xff] }
 0x57a   : > { %3202 = vmatpush.msrb.mxu1 %v5027_v29  ;;  %3116 = vmatpush.msra.mxu2 %v2907_v51  ;;  %v9902_v29 = vunpack.i.h.bf16 %v9867_v63  ;;  %v2903_v63 = vsel %vm2895_vm15, %v9903_v14, %v5038_v8 }
 0x57b   : > { %3144 = vmatpush.msra.mxu3 %v2941_v9  ;;  %3170 = vmatpush.msrb.mxu0 %v5008_v50  ;;  %v5042_v50 = vunpack.i.l.bf16 %v5041_v11  ;;  %v5046_v53 = vpop.permute.xlu0 %5045  ;;  %v9908_v11 = vld [vmem:[#allocation36_spill] sm:$0xff] }
 0x57c   : > { %3203 = vmatpush.msrb.mxu1 %v5032_v18  ;;  %v2939_v42 = vsel %vm2895_vm15, %v9902_v29, %v5032_v18  ;;  %3117 = vmatpush.msra.mxu2 %v2905_v7  ;;  %v2060_v23 = vpop.f32.mrf.mxu1  ;;  %v9904_v18 = vunpack.i.l.bf16 %v9873_v38  ;;  %v9906_v38 = vunpack.i.h.bf16 %v8308_v10 }
 0x57d   : > { %3145 = vmatpush.msra.mxu3 %v2939_v42  ;;  %3171 = vmatpush.msrb.mxu0 %v5013_v15  ;;  %v8555_v15 = vadd.f32 %v2060_v23, %v2032_v33 }
 0x57e   : > { %2682 = vmatmul.f32.gmra.mxu2 %v8287_v5  ;;  %2708 = vmatmul.f32.gmra.mxu3 %v8315_v55  ;;  %v2937_v44 = vsel %vm2895_vm15, %v9904_v18, %v5037_v47  ;;  %v9905_v5 = vld [vmem:[#allocation113_spill] sm:$0xff]  ;;  %v5047_v55 = vunpack.i.l.bf16 %v5046_v53  ;;  %v2935_v51 = vsel %vm2895_vm15, %v9906_v38, %v5042_v50  ;;  %v1948_v38 = vadd.f32 %v8344_v57, %v8289_v60 }
 0x57f   : > { %3070 = vmatmul.f32.gmra.mxu0 %v8538_v43  ;;  %v4788_v28 = vunpack.i.h.bf16 %v9905_v5  ;;  %3948 = vmatmul.msk.f32.gmra.mxu1 %vm986_vm7, %v8540_v56  ;;  %v9907_v21 = vunpack.i.l.bf16 %v9905_v5  ;;  %v1979_v58 = vpop.f32.mrf.mxu2  ;;  %v1954_v57 = vadd.f32 %v8487_v12, %v8431_v41 }
 0x580   : > { %3172 = vmatpush.msrb.mxu0 %v5018_v34  ;;  %3204 = vmatpush.msrb.mxu1 %v5037_v47  ;;  %v2002_v9 = vpop.f32.mrf.mxu3  ;;  %v2035_v47 = vadd.f32 %v2034_v20, %v1890_v19 }
 0x581   : > { %3118 = vmatpush.msra.mxu2 %v2903_v63  ;;  %3146 = vmatpush.msra.mxu3 %v2937_v44  ;;  %v2899_v34 = vsel %vm2895_vm15, %v9907_v21, %v4788_v28  ;;  %v2003_v10 = vadd.f32 %v2002_v9, %v8469_v59 }
 0x582   : > { %3173 = vmatpush.msrb.mxu0 %v5023_v24  ;;  %3205 = vmatpush.msrb.mxu1 %v5042_v50  ;;  %v5048_v24 = vunpack.i.h.bf16 %v5046_v53 }
 0x583   : > { %3119 = vmatpush.msra.mxu2 %v8017_v17  ;;  %3147 = vmatpush.msra.mxu3 %v2935_v51  ;;  %v2933_v17 = vsel %vm2895_vm15, %v4957_v4, %v5043_v54 }
 0x584   : > { %3174 = vmatpush.msrb.mxu0 %v5028_v3  ;;  %3206 = vmatpush.msrb.mxu1 %v5043_v54  ;;  %v2931_v3 = vsel %vm2895_vm15, %v4963_v13, %v5047_v55  ;;  %v2037_v31 = vpop.f32.mrf.mxu0  ;;  %v9909_v13 = vunpack.i.l.bf16 %v7975_v32 }
 0x585   : > { %3120 = vmatpush.msra.mxu2 %v2899_v34  ;;  %3148 = vmatpush.msra.mxu3 %v2933_v17 }
 0x586   : > { %3175 = vmatpush.msrb.mxu0 %v5033_v27  ;;  %2711 = vmatmul.f32.gmra.mxu3 %v8364_v37  ;;  %v2063_v4 = vpop.f32.mrf.mxu1  ;;  %v2929_v37 = vsel %vm2895_vm15, %v4993_v30, %v5048_v24  ;;  %v1893_v27 = vadd.f32 %v8460_v2, %v8332_v36  ;;  %v9910_v30 = vld [vmem:[#allocation96_spill] sm:$0xff] }
 0x587   : > { %3207 = vmatpush.msrb.mxu1 %v5047_v55  ;;  %3121 = vmatpush.msra.mxu2 %v9908_v11  ;;  %v8588_v1 = vadd.f32 %v2063_v4, %v2035_v47  ;;  %v1982_v6 = vpop.f32.mrf.mxu2 }
 0x588   : > { %3149 = vmatpush.msra.mxu3 %v2931_v3  ;;  %3073 = vmatmul.f32.gmra.mxu0 %v1160_v39  ;;  %v2038_v32 = vadd.f32 %v2037_v31, %v1893_v27 }
 0x589   : > { %3949 = vmatmul.msk.f32.gmra.mxu1 %vm986_vm7, %v1161_v52  ;;  %3176 = vmatpush.msrb.mxu0 %v5038_v8  ;;  %v9911_v8 = vunpack.i.l.bf16 %v9910_v30 }
 0x58a   : > { %3208 = vmatpush.msrb.mxu1 %v5048_v24  ;;  %3150 = vmatpush.msra.mxu3 %v2929_v37 }
 0x58b   : > { %3122 = vmatmul.f32.vlgmr.msra.gmra.mxu2 %v8416_v62  ;;  %3177 = vmatpush.msrb.mxu0 %v9909_v13 }
 0x58c   : > { %v2005_v59 = vpop.f32.mrf.mxu3 }
 0x58d   : > { %3178 = vmatpush.msrb.mxu0 %v4788_v28  ;;  %v2006_v16 = vadd.f32 %v2005_v59, %v8528_v45 }
 0x58e   : > { %3950 = vmatmul.msk.f32.vlgmr.msra.gmra.mxu3 %vm986_vm7, %v8434_v22 }
 0x58f   : > { %3179 = vmatpush.msrb.mxu0 %v9911_v8  ;;  %v2040_v49 = vpop.f32.mrf.mxu0  ;;  %v2089_v2 = vpop.f32.mrf.mxu2 }
 0x590   : > { %3180 = vmatmul.f32.vlgmr.msrb.gmra.mxu0 %v8416_v62  ;;  %v1896_v62 = vadd.f32 %v8525_v25, %v8406_v46 }
 0x591   : > { %3954 = vmatmul.msk.f32.vlgmr.msrb.gmra.mxu1 %vm986_vm7, %v8434_v22 }
 0x592   : > { %v2066_v7 = vpop.f32.mrf.mxu1  ;;  %v2041_v42 = vadd.f32 %v2040_v49, %v1896_v62 }
 0x593   : > { %3125 = vmatmul.f32.gmra.mxu2 %v8483_v40  ;;  %v8604_v36 = vadd.f32 %v2066_v7, %v2038_v32 }
 0x596   : > { %3951 = vmatmul.msk.f32.gmra.mxu3 %vm986_vm7, %v8485_v26 }
 0x597   : > { %v2008_v22 = vpop.f32.mrf.mxu3  ;;  %v2092_v46 = vpop.f32.mrf.mxu2 }
 0x598   : > { %3183 = vmatmul.f32.gmra.mxu0 %v8483_v40  ;;  %v2009_v45 = vadd.f32 %v2008_v22, %v1979_v58  ;;  %v2093_v51 = vadd.f32 %v2092_v46, %v1948_v38 }
 0x599   : > { %3955 = vmatmul.msk.f32.gmra.mxu1 %vm986_vm7, %v8485_v26 }
 0x59a   : > { %v2147_v29 = vpop.f32.mrf.mxu0 }
 0x59b   : > { %3128 = vmatmul.f32.gmra.mxu2 %v8538_v43  ;;  %v2148_v33 = vadd.f32 %v2147_v29, %v2003_v10 }
 0x59d   : > { %v2069_v14 = vpop.f32.mrf.mxu1 }
 0x59e   : > { %3952 = vmatmul.msk.f32.gmra.mxu3 %vm986_vm7, %v8540_v56  ;;  %v8616_v63 = vadd.f32 %v2069_v14, %v2041_v42 }
 0x59f   : > { %v2095_v44 = vpop.f32.mrf.mxu2 }
 0x5a0   : > { %3186 = vmatmul.f32.gmra.mxu0 %v8538_v43  ;;  %v1945_v43 = vadd.f32 %v8278_v48, %v8205_v35  ;;  %v1951_v48 = vadd.f32 %v8418_v0, %v8358_v61 }
 0x5a1   : > { %3956 = vmatmul.msk.f32.gmra.mxu1 %vm986_vm7, %v8540_v56 }
 0x5a2   : > { %v2011_v40 = vpop.f32.mrf.mxu3  ;;  %v2090_v18 = vadd.f32 %v2089_v2, %v1945_v43  ;;  %v2096_v58 = vadd.f32 %v2095_v44, %v1951_v48 }
 0x5a3   : > { %3131 = vmatmul.f32.gmra.mxu2 %v1160_v39  ;;  %v2012_v26 = vadd.f32 %v2011_v40, %v1982_v6 }
 0x5a4   : > { %v2150_v25 = vpop.f32.mrf.mxu0 }
 0x5a5   : > { %v2151_v23 = vadd.f32 %v2150_v25, %v2006_v16 }
 0x5a6   : > { %3953 = vmatmul.msk.f32.gmra.mxu3 %vm986_vm7, %v1161_v52  ;;  %v2176_v50 = vpop.f32.mrf.mxu1 }
 0x5a7   : > { %v8623_v20 = vadd.f32 %v2176_v50, %v2148_v33  ;;  %v2098_v9 = vpop.f32.mrf.mxu2 }
 0x5a8   : > { %3189 = vmatmul.f32.gmra.mxu0 %v1160_v39  ;;  %v2099_v11 = vadd.f32 %v2098_v9, %v1954_v57  ;;  %v8660_v9 = vpop.permute.xlu1 %3251 }
 0x5a9   : > { %3957 = vmatmul.msk.f32.gmra.mxu1 %vm986_vm7, %v1161_v52 }
 0x5ac   : > { %v2118_v56 = vpop.f32.mrf.mxu3  ;;  %v2153_v28 = vpop.f32.mrf.mxu0 }
 0x5ad   : > { %v2119_v5 = vadd.f32 %v2118_v56, %v2090_v18  ;;  %v2154_v53 = vadd.f32 %v2153_v28, %v2009_v45 }
 0x5ae   : > { %v2179_v54 = vpop.f32.mrf.mxu1 }
 0x5af   : > { %v8627_v55 = vadd.f32 %v2179_v54, %v2151_v23 }
 0x5b4   : > { %v2121_v19 = vpop.f32.mrf.mxu3  ;;  %v2156_v34 = vpop.f32.mrf.mxu0 }
 0x5b5   : > { %v2122_v21 = vadd.f32 %v2121_v19, %v2093_v51  ;;  %v2157_v17 = vadd.f32 %v2156_v34, %v2012_v26 }
 0x5b6   : > { %v2182_v10 = vpop.f32.mrf.mxu1  ;;  %v2558_v52 = vpop.f32.mrf.mxu2 }
 0x5b7   : > { %v8631_v35 = vadd.f32 %v2182_v10, %v2154_v53 }
 0x5bc   : > { %v2124_v24 = vpop.f32.mrf.mxu3  ;;  %v2616_v60 = vpop.f32.mrf.mxu0 }
 0x5bd   : > { %v2125_v39 = vadd.f32 %v2124_v24, %v2096_v58 }
 0x5bf   : > { %v2185_v3 = vpop.f32.mrf.mxu1 }
 0x5c0   : > { %v8635_v47 = vadd.f32 %v2185_v3, %v2157_v17 }
 0x5c4   : > { %v2127_v31 = vpop.f32.mrf.mxu3 }
 0x5c5   : > { %v2128_v4 = vadd.f32 %v2127_v31, %v2099_v11  ;;  %v2619_v27 = vpop.f32.mrf.mxu0  ;;  %v9913_v11 = vld [vmem:[#allocation15_spill] sm:$0xff] }
 0x5c7   : > { %v2561_v37 = vpop.f32.mrf.mxu2 }
 0x5ca   : > { %v2645_v13 = vpop.f32.mrf.mxu1 }
 0x5cb   : > { %v2646_v59 = vadd.f32 %v2645_v13, %v2616_v60  ;;  %v9912_v60 = vld [vmem:[#allocation18_spill] sm:$0xff] }
 0x5cc   : > { %v3282_v31 = vadd.s32 %v9913_v11, %v9912_v60 }
 0x5cd   : > { %v8639_v16 = vadd.f32 %v2646_v59, %v2119_v5  ;;  %v2622_v32 = vpop.f32.mrf.mxu0  ;;  %v3237_v59 = vpop.permute.xlu1 %3236 }
 0x5ce   : > { %vm3285_vm1 = vcmp.ge.s32.totalorder %v3282_v31, 0  ;;  %vm3288_vm2 = vcmp.lt.s32.totalorder %v3282_v31, 512 }
 0x5cf   : > { %v2587_v61 = vpop.f32.mrf.mxu3  ;;  %vm8678_vm9 = vmand %vm3285_vm1, %vm3288_vm2 }
 0x5d2   : > { %v2648_v0 = vpop.f32.mrf.mxu1  ;;  %v2564_v6 = vpop.f32.mrf.mxu2 }
 0x5d3   : > { %v2649_v30 = vadd.f32 %v2648_v0, %v2619_v27 }
 0x5d5   : > { %v8641_v8 = vadd.f32 %v2649_v30, %v2122_v21  ;;  %v2625_v42 = vpop.f32.mrf.mxu0 }
 0x5d7   : > { %v2590_v49 = vpop.f32.mrf.mxu3 }
 0x5d8   : > { %v2591_v7 = vadd.f32 %v2590_v49, %v2561_v37 }
 0x5da   : > { %v8644_v41 = vadd.f32 %v2591_v7, %v8588_v1  ;;  %v2651_v12 = vpop.f32.mrf.mxu1  ;;  %v9915_v7 = vld [vmem:[#allocation17_spill] sm:$0xff] }
 0x5db   : > { %v2652_v62 = vadd.f32 %v2651_v12, %v2622_v32  ;;  %vm3284_vm6 = vcmp.ge.s32.totalorder %v9915_v7, 0  ;;  %vm3287_vm8 = vcmp.lt.s32.totalorder %v9915_v7, 512 }
 0x5dc   : > { %v2567_v2 = vpop.f32.mrf.mxu2  ;;  %vm8691_vm15 = vmand %vm3284_vm6, %vm3287_vm8 }
 0x5dd   : > { %v8646_v22 = vadd.f32 %v2652_v62, %v2125_v39 }
 0x5df   : > { %v2593_v45 = vpop.f32.mrf.mxu3 }
 0x5e0   : > { %v2594_v29 = vadd.f32 %v2593_v45, %v2564_v6 }
 0x5e2   : > { %v8649_v33 = vadd.f32 %v2594_v29, %v8604_v36  ;;  %v2654_v14 = vpop.f32.mrf.mxu1 }
 0x5e3   : > { %v2655_v46 = vadd.f32 %v2654_v14, %v2625_v42 }
 0x5e4   : > { %v2674_v26 = vpop.f32.mrf.mxu2 }
 0x5e5   : > { %v8651_v40 = vadd.f32 %v2655_v46, %v2128_v4 }
 0x5e7   : > { %v2596_v25 = vpop.f32.mrf.mxu3 }
 0x5e8   : > { %v2597_v23 = vadd.f32 %v2596_v25, %v2567_v2  ;;  %v3312_v25 = vld [vmem:[%s9092_s9 + $0x10] sm:$0xff] }
 0x5e9   : > { %v3065_v1 = vpop.f32.mrf.mxu0 }
 0x5ea   : > { %v2724_v50 = vadd.f32 %v2597_v23, %v8616_v63  ;;  %v2588_v63 = vadd.f32 %v2587_v61, %v2558_v52 }
 0x5eb   : > { %v3094_v43 = vpop.f32.mrf.mxu1 }
 0x5ec   : > { %v2677_v18 = vpop.f32.mrf.mxu2  ;;  %v3095_v48 = vadd.f32 %v3094_v43, %v3065_v1  ;;  %v2715_v39 = vadd.f32 %v2588_v63, %v8555_v15  ;;  %v9914_v15 = vld [vmem:[#allocation16_spill] sm:$0xff]  ;;  %v3242_v43 = vpop.permute.xlu0 %3241 }
 0x5ed   : > { %vm3283_vm4 = vcmp.ge.s32.totalorder %v9914_v15, 0  ;;  %vm3286_vm5 = vcmp.lt.s32.totalorder %v9914_v15, 512 }
 0x5ee   : > { %v3222_v4 = vadd.f32 %v3095_v48, %v2715_v39  ;;  %vm8683_vm13 = vmand %vm3283_vm4, %vm3286_vm5 }
 0x5f0   : > { %v8671_v0 = vadd.f32 %v3237_v59, %v3222_v4  ;;  %v3247_v4 = vpop.permute.xlu2 %3246 }
 0x5f1   : > { %v2703_v44 = vpop.f32.mrf.mxu3 }
 0x5f2   : > { %v2704_v24 = vadd.f32 %v2703_v44, %v2674_v26  ;;  %v3266_v29 = vmax.f32 %v8671_v0, 0.0 }
 0x5f3   : > { %v3068_v56 = vpop.f32.mrf.mxu0 }
 0x5f4   : > { %v3097_v5 = vpop.f32.mrf.mxu1  ;;  %v2717_v13 = vadd.f32 %v2704_v24, %v8623_v20 }
 0x5f5   : > { %v3098_v6 = vadd.f32 %v3097_v5, %v3068_v56 }
 0x5f7   : > { %v2680_v53 = vpop.f32.mrf.mxu2  ;;  %v3225_v14 = vadd.f32 %v3098_v6, %v8644_v41  ;;  %v3298_v41 = vsel %vm8683_vm13, %v3266_v29, 0.0 }
 0x5f9   : > { %v2706_v28 = vpop.f32.mrf.mxu3  ;;  %v8702_v56 = vadd.f32 %v3242_v43, %v3225_v14 }
 0x5fa   : > { %v2707_v32 = vadd.f32 %v2706_v28, %v2677_v18 }
 0x5fb   : > { %v3269_v24 = vmax.f32 %v8702_v56, 0.0  ;;  %v3311_v56 = vld [vmem:[%s9092_s9 + $0x8] sm:$0xff] }
 0x5fc   : > { %v8654_v54 = vpop.f32.mrf.mxu0  ;;  %v8656_v36 = vpop.f32.mrf.mxu1 }
 0x5fd   : > { %v3101_v15 = vadd.f32 %v8656_v36, %v8654_v54 }
 0x601   : > { %v2709_v38 = vpop.f32.mrf.mxu3  ;;  %v8658_v51 = vpop.f32.mrf.mxu2 }
 0x602   : > { %v2710_v28 = vadd.f32 %v2709_v38, %v2680_v53 }
 0x604   : > { %v2723_v53 = vadd.f32 %v2710_v28, %v8631_v35  ;;  %v3318_v28 = vld [vmem:[%s9093_s10] sm:$0xff] }
 0x605   : > { %v3074_v19 = vpop.f32.mrf.mxu0 }
 0x606   : > { %v3103_v21 = vpop.f32.mrf.mxu1 }
 0x607   : > { %v3104_v34 = vadd.f32 %v3103_v21, %v3074_v19 }
 0x609   : > { %v3231_v17 = vadd.f32 %v3104_v34, %v2724_v50  ;;  %v8662_v10 = vpop.f32.mrf.mxu3 }
 0x60b   : > { %v8665_v58 = vadd.f32 %v8660_v9, %v3231_v17 }
 0x60d   : > { %v3181_v57 = vpop.f32.mrf.mxu0 }
 0x60e   : > { %v3123_v3 = vpop.f32.mrf.mxu2  ;;  %v3210_v37 = vpop.f32.mrf.mxu1 }
 0x60f   : > { %v3211_v52 = vadd.f32 %v3210_v37, %v3181_v57  ;;  %v3301_v37 = vsel %vm8683_vm13, %v3269_v24, 0.0 }
 0x611   : > { %v3152_v27 = vpop.f32.mrf.mxu3  ;;  %v3224_v61 = vadd.f32 %v3211_v52, %v2717_v13  ;;  %v2713_v13 = vadd.f32 %v8662_v10, %v8658_v51 }
 0x612   : > { %v3153_v30 = vadd.f32 %v3152_v27, %v3123_v3 }
 0x613   : > { %v3256_v49 = vadd.f32 %v3237_v59, %v3224_v61 }
 0x614   : > { %v3223_v20 = vadd.f32 %v3153_v30, %v8639_v16  ;;  %v2720_v16 = vadd.f32 %v2707_v32, %v8627_v55  ;;  %v2726_v32 = vadd.f32 %v2713_v13, %v8635_v47 }
 0x615   : > { %v3268_v62 = vmax.f32 %v3256_v49, 0.0  ;;  %v3184_v45 = vpop.f32.mrf.mxu0 }
 0x616   : > { %v3126_v2 = vpop.f32.mrf.mxu2  ;;  %v8688_v46 = vadd.f32 %v3237_v59, %v3223_v20  ;;  %v3213_v26 = vpop.f32.mrf.mxu1 }
 0x617   : > { %v3300_v23 = vsel %vm8678_vm9, %v3268_v62, 0.0  ;;  %v3214_v1 = vadd.f32 %v3213_v26, %v3184_v45  ;;  %v3228_v45 = vadd.f32 %v3101_v15, %v8649_v33 }
 0x618   : > { %v3267_v50 = vmax.f32 %v8688_v46, 0.0 }
 0x619   : > { %v3155_v18 = vpop.f32.mrf.mxu3  ;;  %v3227_v44 = vadd.f32 %v3214_v1, %v2720_v16  ;;  %v8759_v26 = vadd.f32 %v3247_v4, %v3228_v45 }
 0x61a   : > { %v3299_v55 = vsel %vm8691_vm15, %v3267_v50, 0.0  ;;  %v3156_v5 = vadd.f32 %v3155_v18, %v3126_v2  ;;  %v3275_v18 = vmax.f32 %v8665_v58, 0.0 }
 0x61b   : > { %v3259_v19 = vadd.f32 %v3242_v43, %v3227_v44  ;;  %v8708_v21 = vpack.i.bf16 %v3299_v55, %v3298_v41 }
 0x61c   : > { %v3226_v34 = vadd.f32 %v3156_v5, %v8641_v8  ;;  %v3307_v41 = vsel %vm8683_vm13, %v3275_v18, 0.0 }
 0x61d   : > { %v3271_v63 = vmax.f32 %v3259_v19, 0.0  ;;  %5055 = vrot.lane.b32.xlu0 %v8708_v21, %s5365_s23  ;;  %5050 = vrot.lane.b32.xlu2 %v8708_v21, %s5364_s20  ;;  %v3187_v48 = vpop.f32.mrf.mxu0  ;;  %v3319_v19 = vld [vmem:[%s9093_s10 + $0x8] sm:$0xff] }
 0x61e   : > { %v3129_v17 = vpop.f32.mrf.mxu2  ;;  %v8716_v39 = vadd.f32 %v3242_v43, %v3226_v34  ;;  %v3216_v3 = vpop.f32.mrf.mxu1 }
 0x61f   : > { %v3303_v38 = vsel %vm8678_vm9, %v3271_v63, 0.0  ;;  %v3217_v8 = vadd.f32 %v3216_v3, %v3187_v48  ;;  %v3321_v63 = vld [vmem:[%s9093_s10 + $0x18] sm:$0xff] }
 0x620   : > { %v3270_v57 = vmax.f32 %v8716_v39, 0.0  ;;  %v8722_v60 = vpack.i.bf16 %v3300_v23, %v3303_v38 }
 0x621   : > { %v3158_v11 = vpop.f32.mrf.mxu3  ;;  %v3230_v31 = vadd.f32 %v3217_v8, %v2723_v53 }
 0x622   : > { %v3302_v35 = vsel %vm8691_vm15, %v3270_v57, 0.0  ;;  %5070 = vrot.lane.b32.xlu1 %v8722_v60, %s5365_s23  ;;  %v3159_v27 = vadd.f32 %v3158_v11, %v3129_v17 }
 0x623   : > { %v3262_v52 = vadd.f32 %v3247_v4, %v3230_v31  ;;  %v5209_v59 = vpack.i.bf16 %v3302_v35, %v3301_v37 }
 0x624   : > { %v3229_v7 = vadd.f32 %v3159_v27, %v8646_v22 }
 0x625   : > { %v3274_v61 = vmax.f32 %v3262_v52, 0.0  ;;  %5065 = vrot.lane.b32.xlu0 %v8708_v21, %s5368_s25  ;;  %5060 = vrot.lane.b32.xlu2 %v8708_v21, %s5363_s7  ;;  %v3190_v6 = vpop.f32.mrf.mxu0 }
 0x626   : > { %v3219_v30 = vpop.f32.mrf.mxu1  ;;  %v3132_v10 = vpop.f32.mrf.mxu2  ;;  %v8751_v47 = vadd.f32 %v3247_v4, %v3229_v7 }
 0x627   : > { %v3306_v51 = vsel %vm8678_vm9, %v3274_v61, 0.0  ;;  %v3220_v49 = vadd.f32 %v3219_v30, %v3190_v6 }
 0x628   : > { %v3273_v23 = vmax.f32 %v8751_v47, 0.0  ;;  %v3310_v47 = vld [vmem:[%s9092_s9] sm:$0xff] }
 0x629   : > { %v3161_v20 = vpop.f32.mrf.mxu3  ;;  %v3233_v62 = vadd.f32 %v3220_v49, %v2726_v32 }
 0x62a   : > { %v3162_v2 = vadd.f32 %v3161_v20, %v3132_v10  ;;  %5080 = vrot.lane.b32.xlu1 %v8722_v60, %s5368_s25  ;;  %v3305_v1 = vsel %vm8691_vm15, %v3273_v23, 0.0 }
 0x62b   : > { %v3265_v14 = vadd.f32 %v8660_v9, %v3233_v62 }
 0x62c   : > { %v3232_v54 = vadd.f32 %v3162_v2, %v8651_v40  ;;  %v3272_v40 = vmax.f32 %v8759_v26, 0.0 }
 0x62d   : > { %v3277_v36 = vmax.f32 %v3265_v14, 0.0  ;;  %5075 = vrot.lane.b32.xlu0 %v8722_v60, %s5363_s7  ;;  %5085 = vrot.lane.b32.xlu2 %v5209_v59, %s5365_s23 }
 0x62e   : > { %v8757_v22 = vadd.f32 %v8660_v9, %v3232_v54  ;;  %v3304_v9 = vsel %vm8683_vm13, %v3272_v40, 0.0 }
 0x62f   : > { %v3309_v33 = vsel %vm8678_vm9, %v3277_v36, 0.0  ;;  %v5104_v12 = vpack.i.bf16 %v3305_v1, %v3304_v9 }
 0x630   : > { %v5144_v16 = vpack.i.bf16 %v3306_v51, %v3309_v33  ;;  %v3276_v43 = vmax.f32 %v8757_v22, 0.0 }
 0x632   : > { %5095 = vrot.lane.b32.xlu1 %v5209_v59, %s5368_s25  ;;  %v3308_v44 = vsel %vm8691_vm15, %v3276_v43, 0.0 }
 0x633   : > { %v5174_v55 = vpack.i.bf16 %v3308_v44, %v3307_v41 }
 0x635   : > { %5090 = vrot.lane.b32.xlu0 %v5209_v59, %s5363_s7  ;;  %5100 = vrot.lane.b32.xlu2 %v5209_v59, %s5364_s20 }
 0x63a   : > { %5105 = vrot.lane.b32.xlu1 %v5104_v12, %s5365_s23 }
 0x63d   : > { %5110 = vrot.lane.b32.xlu0 %v5104_v12, %s5363_s7  ;;  %5120 = vrot.lane.b32.xlu2 %v5104_v12, %s5364_s20 }
 0x642   : > { %5115 = vrot.lane.b32.xlu1 %v5104_v12, %s5368_s25 }
 0x645   : > { %5125 = vrot.lane.b32.xlu0 %v5104_v12, %s5367_s16  ;;  %5145 = vrot.lane.b32.xlu2 %v5144_v16, %s5364_s20 }
 0x64a   : > { %5130 = vrot.lane.b32.xlu1 %v5144_v16, %s5365_s23 }
 0x64d   : > { %5165 = vrot.lane.b32.xlu2 %v5144_v16, %s5367_s16  ;;  %5135 = vrot.lane.b32.xlu0 %v5144_v16, %s5363_s7 }
 0x652   : > { %5140 = vrot.lane.b32.xlu1 %v5144_v16, %s5368_s25 }
 0x655   : > { %5175 = vrot.lane.b32.xlu2 %v5174_v55, %s5363_s7  ;;  %5150 = vrot.lane.b32.xlu0 %v5174_v55, %s5365_s23  ;;  %s3753_s23 = sshll.u32 %s9027_s14, 4  ;;  %s3754_s23 = int_to_ptr.vmem [resolvable:$true] %s3753_s23 }
 0x65a   : > { %5160 = vrot.lane.b32.xlu1 %v8708_v21, %s5367_s16 }
 0x65d   : > { %5180 = vrot.lane.b32.xlu2 %v5174_v55, %s5368_s25  ;;  %5155 = vrot.lane.b32.xlu0 %v5209_v59, %s5367_s16  ;;  %s3739_s25 = scalar_lea.sflag [#allocation4], %s475_s26 }
 0x662   : > { %5200 = vrot.lane.b32.xlu1 %v5174_v55, %s5367_s16 }
 0x665   : > { %5185 = vrot.lane.b32.xlu2 %v5174_v55, %s5364_s20  ;;  %5170 = vrot.lane.b32.xlu0 %v8722_v60, %s5364_s20  ;;  %s3752_s20 = scalar_lea.hbm %s9094_s11, %s3978_s17 }
 0x666   : > { %s3755_s22 = sshll.u32 %s3752_s20, 4  ;;  %s3756_s22 = int_to_ptr.hbm [resolvable:$true] %s3755_s22 }
 0x66a   : > { %5205 = vrot.lane.b32.xlu1 %v5174_v55, %s5366_s28 }
 0x66d   : > { %5190 = vrot.lane.b32.xlu2 %v5104_v12, %s5366_s28  ;;  %5195 = vrot.lane.b32.xlu0 %v8722_v60, %s5367_s16  ;;  %s5273_s16 = sshra.s32 %s3756_s22, 4  ;;  %s5274_s16 = int_to_ptr.hbm [resolvable:$true] %s5273_s16 }
 0x66e   : > { %s5275_s0 = scalar_lea.hbm %s5274_s16, 64  ;;  %p5280_p10 = scmp.lt.s32.totalorder %s5274_s16, %s9094_s11 }
 0x66f   : > { %p5276_p6 = scmp.ne.s32.totalorder %s5274_s16, %s5275_s0 }
 0x671   : > { %p5277_p7 = pnand %p5276_p6, %p5489_p3 }
 0x672   : > { %5210 = vrot.lane.b32.xlu1 %v5209_v59, %s5366_s28 }
 0x673   : > { %p5278_p9 = pneg %p5277_p7 }
 0x675   : > { %5215 = vrot.lane.b32.xlu2 %v8708_v21, %s5366_s28  ;;  %5220 = vrot.lane.b32.xlu0 %v5144_v16, %s5366_s28  ;;  %v3320_v21 = vld [vmem:[%s9093_s10 + $0x10] sm:$0xff] }
 0x677   : > { %v8814_v5 = vpop.permute.xlu2 %5050 }
 0x67a   : > { %5225 = vrot.lane.b32.xlu1 %v8722_v60, %s5366_s28  ;;  %s5279_s28 = scalar_lea.hbm %s9094_s11, 256 }
 0x67b   : > { %p5281_p11 = scmp.lt.s32.totalorder %s5279_s28, %s5275_s0 }
 0x67d   : > { %3576 = vperm.xlu2 %4087, %v3318_v28   ;;  %3581 = vperm.xlu0 %4088, %v3319_v19   ;;  %p5282_p12 = por %p5281_p11, %p5280_p10 }
 0x67f   : > { %v8824_v34 = vpop.permute.xlu2 %5060  ;;  %p5283_p13 = pnand %p5282_p12, %p5278_p9 }
 0x682   : > { %3586 = vperm.xlu1 %4086, %v3320_v21  }
 0x685   : > { %3591 = vperm.xlu2 %4087, %v3321_v63  }
 0x687   : > { %v8832_v17 = vpop.permute.xlu2 %5085 }
 0x688   : > { %v5088_v9 = vunpack.i.h.bf16 %v8832_v17 }
 0x68f   : > { %v8834_v48 = vpop.permute.xlu0 %5055  ;;  %v8836_v3 = vpop.permute.xlu2 %5100 }
 0x694   : > { %v8838_v53 = vpop.permute.xlu1 %5070 }
 0x697   : > { %v8840_v38 = vpop.permute.xlu0 %5065  ;;  %v8842_v8 = vpop.permute.xlu2 %5120 }
 0x698   : > { %v5068_v20 = vunpack.i.h.bf16 %v8840_v38  ;;  %v5067_v62 = vunpack.i.l.bf16 %v8840_v38  ;;  %v5087_v38 = vunpack.i.l.bf16 %v8832_v17 }
 0x69a   : > { %v3558_v36 = vsel %vm654_vm3, %v5067_v62, %v5068_v20 }
 0x69c   : > { %v8844_v60 = vpop.permute.xlu1 %5080 }
 0x69f   : > { %v8846_v11 = vpop.permute.xlu0 %5075  ;;  %v8848_v31 = vpop.permute.xlu2 %5145 }
 0x6a4   : > { %v5096_v4 = vpop.permute.xlu1 %5095 }
 0x6a5   : > { %v5098_v10 = vunpack.i.h.bf16 %v5096_v4  ;;  %v5097_v49 = vunpack.i.l.bf16 %v5096_v4  ;;  %v5083_v4 = vunpack.i.h.bf16 %v8844_v60 }
 0x6a7   : > { %v8850_v37 = vpop.permute.xlu0 %5090  ;;  %v8852_v35 = vpop.permute.xlu2 %5165  ;;  %v3560_v14 = vsel %vm654_vm3, %v5097_v49, %v5098_v10  ;;  %v5057_v49 = vunpack.i.l.bf16 %v8834_v48 }
 0x6ac   : > { %v5106_v13 = vpop.permute.xlu1 %5105 }
 0x6ad   : > { %v5108_v12 = vunpack.i.h.bf16 %v5106_v13  ;;  %v5107_v44 = vunpack.i.l.bf16 %v5106_v13 }
 0x6af   : > { %v8854_v52 = vpop.permute.xlu0 %5110  ;;  %v8856_v59 = vpop.permute.xlu2 %5175 }
 0x6b4   : > { %v5116_v27 = vpop.permute.xlu1 %5115 }
 0x6b5   : > { %v5118_v30 = vunpack.i.h.bf16 %v5116_v27  ;;  %v5117_v15 = vunpack.i.l.bf16 %v5116_v27  ;;  %v5082_v27 = vunpack.i.l.bf16 %v8844_v60  ;;  %v3442_v60 = vsel %vm609_vm12, %v5107_v44, %v5108_v12 }
 0x6b7   : > { %v8858_v61 = vpop.permute.xlu0 %5125  ;;  %v5181_v6 = vpop.permute.xlu2 %5180  ;;  %v3562_v2 = vsel %vm654_vm3, %v5117_v15, %v5118_v30  ;;  %v5072_v15 = vunpack.i.l.bf16 %v8838_v53  ;;  %v3561_v17 = vsel %vm654_vm3, %v5098_v10, %v5082_v27  ;;  %v5178_v10 = vunpack.i.h.bf16 %v8856_v59 }
 0x6b8   : > { %v5183_v32 = vunpack.i.h.bf16 %v5181_v6  ;;  %v5182_v51 = vunpack.i.l.bf16 %v5181_v6 }
 0x6ba   : > { %v3564_v7 = vsel %vm654_vm3, %v5182_v51, %v5183_v32 }
 0x6bb   : > { %3639 = vmatpush.msrb.mxu3 %v3564_v7  ;;  %v5073_v7 = vunpack.i.h.bf16 %v8838_v53  ;;  %v5177_v53 = vunpack.i.l.bf16 %v8856_v59 }
 0x6bc   : > { %v5131_v45 = vpop.permute.xlu1 %5130 }
 0x6bd   : > { %3640 = vmatpush.msrb.mxu3 %v3562_v2  ;;  %v5133_v28 = vunpack.i.h.bf16 %v5131_v45  ;;  %v5132_v19 = vunpack.i.l.bf16 %v5131_v45  ;;  %v5063_v2 = vunpack.i.h.bf16 %v8824_v34  ;;  %v5062_v45 = vunpack.i.l.bf16 %v8824_v34 }
 0x6bf   : > { %v8865_v54 = vpop.permute.xlu0 %5135  ;;  %3641 = vmatpush.msrb.mxu3 %v3560_v14  ;;  %v3559_v14 = vsel %vm654_vm3, %v5068_v20, %v5083_v4  ;;  %v5112_v20 = vunpack.i.l.bf16 %v8854_v52  ;;  %v5167_v4 = vunpack.i.l.bf16 %v8852_v35 }
 0x6c0   : > { %v5138_v44 = vunpack.i.h.bf16 %v8865_v54 }
 0x6c1   : > { %3642 = vmatpush.msrb.mxu3 %v3558_v36  ;;  %v5137_v36 = vunpack.i.l.bf16 %v8865_v54  ;;  %v5078_v54 = vunpack.i.h.bf16 %v8846_v11 }
 0x6c4   : > { %v5141_v33 = vpop.permute.xlu1 %5140 }
 0x6c5   : > { %v5143_v16 = vunpack.i.h.bf16 %v5141_v33  ;;  %v5142_v1 = vunpack.i.l.bf16 %v5141_v33  ;;  %v3441_v33 = vsel %vm609_vm12, %v5088_v9, %v5072_v15  ;;  %v5128_v15 = vunpack.i.h.bf16 %v8858_v61 }
 0x6c7   : > { %v5151_v41 = vpop.permute.xlu0 %5150  ;;  %v3565_v55 = vsel %vm654_vm3, %v5183_v32, %v5142_v1  ;;  %v3563_v6 = vsel %vm654_vm3, %v5118_v30, %v5143_v16  ;;  %v5058_v32 = vunpack.i.h.bf16 %v8834_v48  ;;  %v3443_v30 = vsel %vm609_vm12, %v5108_v12, %v5133_v28  ;;  %v5186_v16 = vpop.permute.xlu2 %5185 }
 0x6c8   : > { %v5153_v21 = vunpack.i.h.bf16 %v5151_v41  ;;  %v5152_v63 = vunpack.i.l.bf16 %v5151_v41  ;;  %3697 = vmatpush.msra.mxu1 %v3565_v55  ;;  %v3440_v48 = vsel %vm609_vm12, %v5087_v38, %v5088_v9  ;;  %v5113_v12 = vunpack.i.h.bf16 %v8854_v52 }
 0x6c9   : > { %v3438_v34 = vsel %vm609_vm12, %v5057_v49, %v5058_v32  ;;  %v3439_v59 = vsel %vm609_vm12, %v5058_v32, %v5073_v7  ;;  %v3398_v9 = vsel %vm594_vm11, %v5062_v45, %v5063_v2  ;;  %v5093_v41 = vunpack.i.h.bf16 %v8850_v37 }
 0x6ca   : > { %v3444_v13 = vsel %vm609_vm12, %v5152_v63, %v5153_v21  ;;  %v3445_v51 = vsel %vm609_vm12, %v5153_v21, %v5132_v19  ;;  %3698 = vmatpush.msra.mxu1 %v3563_v6  ;;  %v5092_v55 = vunpack.i.l.bf16 %v8850_v37  ;;  %v3404_v28 = vsel %vm594_vm11, %v5177_v53, %v5178_v10 }
 0x6cb   : > { %3606 = vmatpush.msrb.mxu2 %v3444_v13  ;;  %3664 = vmatpush.msra.mxu0 %v3445_v51  ;;  %v3405_v19 = vsel %vm594_vm11, %v5178_v10, %v5137_v36  ;;  %v5103_v21 = vunpack.i.h.bf16 %v8836_v3  ;;  %v5123_v52 = vunpack.i.h.bf16 %v8842_v8  ;;  %v5077_v63 = vunpack.i.l.bf16 %v8846_v11 }
 0x6cc   : > { %v8883_v62 = vpop.permute.xlu1 %5160  ;;  %3699 = vmatpush.msra.mxu1 %v3561_v17  ;;  %v5168_v38 = vunpack.i.h.bf16 %v8852_v35  ;;  %v3402_v37 = vsel %vm594_vm11, %v5112_v20, %v5113_v12  ;;  %v3403_v27 = vsel %vm594_vm11, %v5113_v12, %v5138_v44  ;;  %v5127_v13 = vunpack.i.l.bf16 %v8858_v61 }
 0x6cd   : > { %3607 = vmatpush.msrb.mxu2 %v3442_v60  ;;  %3665 = vmatpush.msra.mxu0 %v3443_v30  ;;  %v5188_v11 = vunpack.i.h.bf16 %v5186_v16  ;;  %v5187_v49 = vunpack.i.l.bf16 %v5186_v16  ;;  %v3400_v17 = vsel %vm594_vm11, %v5092_v55, %v5093_v41  ;;  %v3401_v7 = vsel %vm594_vm11, %v5093_v41, %v5077_v63 }
 0x6ce   : > { %3700 = vmatpush.msra.mxu1 %v3559_v14  ;;  %v5148_v14 = vunpack.i.h.bf16 %v8848_v31  ;;  %v5147_v10 = vunpack.i.l.bf16 %v8848_v31  ;;  %v3399_v53 = vsel %vm594_vm11, %v5063_v2, %v5078_v54  ;;  %v5162_v16 = vunpack.i.l.bf16 %v8883_v62 }
 0x6cf   : > { %v8893_v1 = vpop.permute.xlu0 %5155  ;;  %3608 = vmatpush.msrb.mxu2 %v3440_v48  ;;  %3666 = vmatpush.msra.mxu0 %v3441_v33  ;;  %v5122_v48 = vunpack.i.l.bf16 %v8842_v8  ;;  %v8925_v36 = vpop.permute.xlu2 %5190  ;;  %v5163_v33 = vunpack.i.h.bf16 %v8883_v62  ;;  %v3523_v8 = vsel %vm639_vm0, %v5128_v15, %v5168_v38  ;;  %v3364_v31 = vsel %vm579_vm10, %v5187_v49, %v5188_v11 }
 0x6d0   : > { %v5158_v35 = vunpack.i.h.bf16 %v8893_v1  ;;  %v5157_v60 = vunpack.i.l.bf16 %v8893_v1  ;;  %v3522_v1 = vsel %vm639_vm0, %v5127_v13, %v5128_v15  ;;  %v3365_v2 = vsel %vm579_vm10, %v5188_v11, %v5147_v10 }
 0x6d1   : > { %3609 = vmatpush.msrb.mxu2 %v3438_v34  ;;  %3667 = vmatpush.msra.mxu0 %v3439_v59  ;;  %v5102_v34 = vunpack.i.l.bf16 %v8836_v3  ;;  %v5053_v20 = vunpack.i.h.bf16 %v8814_v5  ;;  %v5052_v44 = vunpack.i.l.bf16 %v8814_v5  ;;  %v5193_v59 = vunpack.i.h.bf16 %v8925_v36 }
 0x6d2   : > { %v3520_v62 = vsel %vm639_vm0, %v5157_v60, %v5158_v35  ;;  %v3362_v41 = vsel %vm579_vm10, %v5122_v48, %v5123_v52  ;;  %v3363_v55 = vsel %vm579_vm10, %v5123_v52, %v5148_v14  ;;  %v3518_v5 = vsel %vm639_vm0, %v5162_v16, %v5163_v33  ;;  %v3316_v60 = vld [vmem:[%s9092_s9 + $0x30] sm:$0xff] }
 0x6d3   : > { %3610 = vmatpush.msrb.mxu2 %v3404_v28  ;;  %3668 = vmatpush.msra.mxu0 %v3405_v19  ;;  %v5192_v19 = vunpack.i.l.bf16 %v8925_v36  ;;  %v3360_v38 = vsel %vm579_vm10, %v5102_v34, %v5103_v21 }
 0x6d4   : > { %v5201_v6 = vpop.permute.xlu1 %5200 }
 0x6d5   : > { %3611 = vmatpush.msrb.mxu2 %v3402_v37  ;;  %3669 = vmatpush.msra.mxu0 %v3403_v27  ;;  %v5203_v51 = vunpack.i.h.bf16 %v5201_v6  ;;  %v5202_v32 = vunpack.i.l.bf16 %v5201_v6  ;;  %v3358_v6 = vsel %vm579_vm10, %v5052_v44, %v5053_v20 }
 0x6d7   : > { %v5171_v30 = vpop.permute.xlu0 %5170  ;;  %3612 = vmatpush.msrb.mxu2 %v3400_v17  ;;  %3670 = vmatpush.msra.mxu0 %v3401_v7  ;;  %v3524_v45 = vsel %vm639_vm0, %v5202_v32, %v5203_v51  ;;  %v3525_v61 = vsel %vm639_vm0, %v5203_v51, %v5167_v4  ;;  %v3482_v51 = vsel %vm624_vm14, %v5192_v19, %v5193_v59  ;;  %v3314_v7 = vld [vmem:[%s9092_s9 + $0x20] sm:$0xff] }
 0x6d8   : > { %3643 = vmatpush.msrb.mxu3 %v3524_v45  ;;  %3701 = vmatpush.msra.mxu1 %v3525_v61  ;;  %v5172_v12 = vunpack.i.l.bf16 %v5171_v30 }
 0x6d9   : > { %3613 = vmatpush.msrb.mxu2 %v3398_v9  ;;  %3671 = vmatpush.msra.mxu0 %v3399_v53  ;;  %v5173_v9 = vunpack.i.h.bf16 %v5171_v30  ;;  %v3317_v30 = vld [vmem:[%s9092_s9 + $0x38] sm:$0xff] }
 0x6da   : > { %3644 = vmatpush.msrb.mxu3 %v3522_v1  ;;  %3702 = vmatpush.msra.mxu1 %v3523_v8  ;;  %v3361_v4 = vsel %vm579_vm10, %v5103_v21, %v5172_v12  ;;  %v5216_v21 = vpop.permute.xlu2 %5215 }
 0x6db   : > { %3614 = vmatpush.msrb.mxu2 %v3364_v31  ;;  %3672 = vmatpush.msra.mxu0 %v3365_v2  ;;  %v3359_v15 = vsel %vm579_vm10, %v5053_v20, %v5173_v9  ;;  %v5218_v22 = vunpack.i.h.bf16 %v5216_v21  ;;  %v5217_v49 = vunpack.i.l.bf16 %v5216_v21 }
 0x6dc   : > { %v5206_v28 = vpop.permute.xlu1 %5205  ;;  %3645 = vmatpush.msrb.mxu3 %v3520_v62 }
 0x6dd   : > { %3615 = vmatpush.msrb.mxu2 %v3362_v41  ;;  %3673 = vmatpush.msra.mxu0 %v3363_v55  ;;  %v5208_v54 = vunpack.i.h.bf16 %v5206_v28  ;;  %v5207_v63 = vunpack.i.l.bf16 %v5206_v28  ;;  %v3478_v39 = vsel %vm624_vm14, %v5217_v49, %v5218_v22 }
 0x6de   : > { %3646 = vmatpush.msrb.mxu3 %v3518_v5 }
 0x6df   : > { %v5196_v52 = vpop.permute.xlu0 %5195  ;;  %3616 = vmatpush.msrb.mxu2 %v3360_v38  ;;  %3674 = vmatpush.msra.mxu0 %v3361_v4  ;;  %v3484_v37 = vsel %vm624_vm14, %v5207_v63, %v5208_v54 }
 0x6e0   : > { %v5197_v27 = vunpack.i.l.bf16 %v5196_v52  ;;  %3647 = vmatpush.msrb.mxu3 %v3484_v37  ;;  %v5198_v13 = vunpack.i.h.bf16 %v5196_v52 }
 0x6e1   : > { %3617 = vmatpush.msrb.mxu2 %v3358_v6  ;;  %3675 = vmatpush.msra.mxu0 %v3359_v15 }
 0x6e2   : > { %v3521_v3 = vsel %vm639_vm0, %v5158_v35, %v5197_v27  ;;  %3648 = vmatpush.msrb.mxu3 %v3482_v51  ;;  %v3519_v58 = vsel %vm639_vm0, %v5163_v33, %v5198_v13  ;;  %v3315_v35 = vld [vmem:[%s9092_s9 + $0x28] sm:$0xff]  ;;  %v3577_v61 = vpop.permute.xlu2 %3576 }
 0x6e3   : > { %3959 = vmatpush.msk.msrb.mxu2 %vm8683_vm13, %v3275_v18  ;;  %3967 = vmatpush.msk.msra.mxu0 %vm8691_vm15, %v3276_v43 }
 0x6e4   : > { %3703 = vmatpush.msra.mxu1 %v3521_v3  ;;  %v5211_v32 = vpop.permute.xlu1 %5210 }
 0x6e5   : > { %3960 = vmatpush.msk.msrb.mxu2 %vm8683_vm13, %v3272_v40  ;;  %3968 = vmatpush.msk.msra.mxu0 %vm8691_vm15, %v3273_v23  ;;  %v5213_v18 = vunpack.i.h.bf16 %v5211_v32  ;;  %v5212_v11 = vunpack.i.l.bf16 %v5211_v32 }
 0x6e6   : > { %3704 = vmatpush.msra.mxu1 %v3519_v58 }
 0x6e7   : > { %v5221_v43 = vpop.permute.xlu0 %5220  ;;  %3961 = vmatpush.msk.msrb.mxu2 %vm8683_vm13, %v3269_v24  ;;  %3969 = vmatpush.msk.msra.mxu0 %vm8691_vm15, %v3270_v57  ;;  %v3480_v26 = vsel %vm624_vm14, %v5212_v11, %v5213_v18  ;;  %v3313_v57 = vld [vmem:[%s9092_s9 + $0x18] sm:$0xff] }
 0x6e8   : > { %v5223_v23 = vunpack.i.h.bf16 %v5221_v43  ;;  %v5222_v40 = vunpack.i.l.bf16 %v5221_v43  ;;  %3649 = vmatpush.msrb.mxu3 %v3480_v26 }
 0x6e9   : > { %3962 = vmatpush.msk.msrb.mxu2 %vm8683_vm13, %v3266_v29  ;;  %3970 = vmatpush.msk.msra.mxu0 %vm8691_vm15, %v3267_v50 }
 0x6ea   : > { %3622 = vmatmul.f32.vlgmr.msrb.gmra.mxu2 %v3310_v47  ;;  %3680 = vmatmul.f32.vlgmr.msra.gmra.mxu0 %v3310_v47  ;;  %v3485_v24 = vsel %vm624_vm14, %v5208_v54, %v5222_v40  ;;  %v3483_v0 = vsel %vm624_vm14, %v5193_v59, %v5223_v23  ;;  %v3592_v6 = vpop.permute.xlu2 %3591 }
 0x6eb   : > { %3705 = vmatpush.msra.mxu1 %v3485_v24  ;;  %3650 = vmatpush.msrb.mxu3 %v3478_v39 }
 0x6ec   : > { %3963 = vmatmul.msk.f32.vlgmr.msrb.gmra.mxu3 %vm986_vm7, %v3311_v56  ;;  %v5226_v29 = vpop.permute.xlu1 %5225 }
 0x6ed   : > { %3706 = vmatpush.msra.mxu1 %v3483_v0  ;;  %v5227_v42 = vunpack.i.l.bf16 %v5226_v29  ;;  %v5228_v46 = vunpack.i.h.bf16 %v5226_v29 }
 0x6ef   : > { %v3481_v50 = vsel %vm624_vm14, %v5213_v18, %v5227_v42  ;;  %v3479_v17 = vsel %vm624_vm14, %v5218_v22, %v5228_v46  ;;  %v3582_v12 = vpop.permute.xlu0 %3581 }
 0x6f0   : > { %3707 = vmatpush.msra.mxu1 %v3481_v50 }
 0x6f2   : > { %3625 = vmatmul.f32.gmra.mxu2 %v3312_v25  ;;  %3683 = vmatmul.f32.gmra.mxu0 %v3312_v25 }
 0x6f3   : > { %3708 = vmatpush.msra.mxu1 %v3479_v17 }
 0x6f4   : > { %3964 = vmatmul.msk.f32.gmra.mxu3 %vm986_vm7, %v3313_v57  ;;  %3971 = vmatmul.msk.f32.vlgmr.msra.gmra.mxu1 %vm986_vm7, %v3311_v56  ;;  %v3587_v19 = vpop.permute.xlu1 %3586 }
 0x6fa   : > { %3628 = vmatmul.f32.gmra.mxu2 %v3314_v7  ;;  %3686 = vmatmul.f32.gmra.mxu0 %v3314_v7 }
 0x6fc   : > { %3965 = vmatmul.msk.f32.gmra.mxu3 %vm986_vm7, %v3315_v35  ;;  %3972 = vmatmul.msk.f32.gmra.mxu1 %vm986_vm7, %v3313_v57 }
 0x702   : > { %3631 = vmatmul.f32.gmra.mxu2 %v3316_v60  ;;  %3689 = vmatmul.f32.gmra.mxu0 %v3316_v60 }
 0x704   : > { %3966 = vmatmul.msk.f32.gmra.mxu3 %vm986_vm7, %v3317_v30  ;;  %3973 = vmatmul.msk.f32.gmra.mxu1 %vm986_vm7, %v3315_v35 }
 0x70c   : > { %3974 = vmatmul.msk.f32.gmra.mxu1 %vm986_vm7, %v3317_v30 }
 0x767   : > { %v3681_v45 = vpop.f32.mrf.mxu0 }
 0x768   : > { %v3682_v53 = vadd.f32 %v3681_v45, %v3577_v61 }
 0x76d   : > { %v3623_v48 = vpop.f32.mrf.mxu2 }
 0x76e   : > { %v3624_v14 = vadd.f32 %v3623_v48, %v3577_v61 }
 0x76f   : > { %v3652_v10 = vpop.f32.mrf.mxu3  ;;  %v3684_v33 = vpop.f32.mrf.mxu0 }
 0x770   : > { %v3653_v36 = vadd.f32 %v3652_v10, %v3624_v14  ;;  %v3685_v44 = vadd.f32 %v3684_v33, %v3582_v12 }
 0x771   : > { %v3710_v16 = vpop.f32.mrf.mxu1 }
 0x772   : > { %v3722_v1 = vmax.f32 %v3653_v36, 0.0  ;;  %v3711_v8 = vadd.f32 %v3710_v16, %v3682_v53 }
 0x774   : > { %3730 = vst [vmem:[%s9027_s14] sm:$0xff] %v3722_v1  ;;  %v3723_v34 = vmax.f32 %v3711_v8, 0.0 }
 0x775   : > { %v3626_v31 = vpop.f32.mrf.mxu2 }
 0x776   : > { %3731 = vst [vmem:[%s9027_s14 + $0x8] sm:$0xff] %v3723_v34  ;;  %v3627_v2 = vadd.f32 %v3626_v31, %v3582_v12 }
 0x777   : > { %v3655_v20 = vpop.f32.mrf.mxu3  ;;  %v3687_v55 = vpop.f32.mrf.mxu0 }
 0x778   : > { %v3656_v62 = vadd.f32 %v3655_v20, %v3627_v2  ;;  %v3688_v38 = vadd.f32 %v3687_v55, %v3587_v19 }
 0x779   : > { %v3713_v59 = vpop.f32.mrf.mxu1 }
 0x77a   : > { %v3724_v9 = vmax.f32 %v3656_v62, 0.0  ;;  %v3714_v41 = vadd.f32 %v3713_v59, %v3685_v44 }
 0x77c   : > { %3732 = vst [vmem:[%s9027_s14 + $0x10] sm:$0xff] %v3724_v9  ;;  %v3725_v28 = vmax.f32 %v3714_v41, 0.0 }
 0x77d   : > { %v3629_v54 = vpop.f32.mrf.mxu2 }
 0x77e   : > { %3733 = vst [vmem:[%s9027_s14 + $0x18] sm:$0xff] %v3725_v28  ;;  %v3630_v63 = vadd.f32 %v3629_v54, %v3587_v19 }
 0x77f   : > { %v3658_v5 = vpop.f32.mrf.mxu3  ;;  %v3690_v13 = vpop.f32.mrf.mxu0 }
 0x780   : > { %v3659_v4 = vadd.f32 %v3658_v5, %v3630_v63  ;;  %v3691_v32 = vadd.f32 %v3690_v13, %v3592_v6 }
 0x781   : > { %v3716_v52 = vpop.f32.mrf.mxu1 }
 0x782   : > { %v3726_v37 = vmax.f32 %v3659_v4, 0.0  ;;  %v3717_v27 = vadd.f32 %v3716_v52, %v3688_v38 }
 0x784   : > { %3734 = vst [vmem:[%s9027_s14 + $0x20] sm:$0xff] %v3726_v37  ;;  %v3727_v15 = vmax.f32 %v3717_v27, 0.0 }
 0x785   : > { %v3632_v51 = vpop.f32.mrf.mxu2 }
 0x786   : > { %3735 = vst [vmem:[%s9027_s14 + $0x28] sm:$0xff] %v3727_v15  ;;  %v3633_v3 = vadd.f32 %v3632_v51, %v3592_v6 }
 0x787   : > { %v3661_v21 = vpop.f32.mrf.mxu3 }
 0x788   : > { %v3662_v58 = vadd.f32 %v3661_v21, %v3633_v3 }
 0x789   : > { %v3719_v18 = vpop.f32.mrf.mxu1 }
 0x78a   : > { %v3728_v11 = vmax.f32 %v3662_v58, 0.0  ;;  %v3720_v22 = vadd.f32 %v3719_v18, %v3691_v32 }
 0x78c   : > { %3736 = vst [vmem:[%s9027_s14 + $0x30] sm:$0xff] %v3728_v11  ;;  %v3729_v49 = vmax.f32 %v3720_v22, 0.0 }
 0x78e   : > { %3737 = vst [vmem:[%s9027_s14 + $0x38] sm:$0xff] %v3729_v49 }
 0x78f   : > { %5286 = shalt.err (!%p5283_p13)
}
 0x790   : > { %s5374_s26 = smov 256   ;;  %s5375_s14 = smov 512  }
 0x791   : > { %s5376_s15 = smov 16  }
 0x792   : > { %3991 = dma.vmem_to_hbm [thread:$0]  (%p5489_p3), %s3754_s23, 1024, %s3756_s22, %s3739_s25, %s5374_s26, %s5375_s14, %s5376_s15  }
 0x793 PF: > { %s9922_s17 = sld [smem:[#allocation8_spill]]  ;;  %p4003_p0 = scmp.ge.s32.totalorder %s5357_s24, 2 }
 0x795   : > { %p3998_p1 = pnand %p4003_p0, %p5498_p8 }
 0x797   : > { %p3999_p2 = pneg %p3998_p1 }
 0x799   : > { %s3770_s21 = sand.u32 1, %s9922_s17  }
 0x79a   : > { %s3771_s20 = scalar_lea.sflag [#allocation4], %s3770_s21 }
 0x79b   : > { %5324 = dma.done.wait (%p3999_p2), %s3771_s20, 1024  }
 0x79c   : > { %5326 = vsyncadd (%p3999_p2), %s3771_s20, 4294966272  ;;  %s25_s24 = sadd.s32 1, %s5357_s24   ;;  %s9924_s16 = sld [smem:[#allocation14_spill]] }
 0x79d   : > { %p22_p4 = scmp.ge.s32.totalorder %s25_s24, 6   ;;  %s9925_s20 = sld [smem:[#allocation9_spill]] }
 0x79e   : > { %s9926_s21 = sld [smem:[#allocation10_spill]]  ;;  %s9929_s17 = smov %s5333_s18 }
 0x79f   : > { %s9927_s22 = sld [smem:[#allocation11_spill]]  ;;  %s9930_s18 = smov %s5337_s19 }
 0x7a0   : > { %s9928_s23 = sld [smem:[#allocation12_spill]]  ;;  %24 = sbr.rel (!%p22_p4) target bundleno = 9 (0x9), region = 110 }
 0x7a2   : > { %s9931_s19 = smov %s9924_s16 }
 0x7a5   :  { %3777 = vsyncpa [#allocation3], 1 }
 0x7a6   :  { %3779 = vsyncpa [#allocation3 + $0x1], 1 }
 0x7a7   :  { %3780 = vsyncpa [#allocation4], 1 }
 0x7a8   :  { %3782 = vsyncpa [#allocation4 + $0x1], 1 }

</bundles_post_ra>
